<compile_context>
chip_gen: v7x
topology: tpu7x:2x2x1
jax: 0.10.0
libtpu: 0.0.40
codegen_flags: <defaults>
</compile_context>

<pallas_src>
import functools

import jax
import jax.numpy as jnp
from jax import lax
from jax.experimental import pallas as pl
from jax.experimental.pallas import tpu as pltpu


def _round_up(x, m):
    return (x + m - 1) // m * m


def _gcn_fused_kernel(n_classes, xs_bf_ref, xs_ref, d_ref, adj_ref,
                      w1_ref, w2_ref, out_ref, hs_bf_ref, hs_f32_ref):
    """Fused 2-layer GCN.

    grid = (phase, row_block):
      phase 0: h[blk] = relu((A' x)[blk] @ W1);  store hs = d ⊙ h into scratch.
      phase 1: logits[blk] = (A' h)[blk] @ W2;   log_softmax; write output.

    xs_bf_ref : (N, F_in)  bf16  resident   d ⊙ x (MXU operand, precomputed)
    xs_ref    : (TM, F_in) f32   row block  d ⊙ x (identity-term rows)
    d_ref     : (TM, 1)    f32   row block  (1 + deg)^-1/2
    adj_ref   : (N, N)     int8  resident   raw 0/1 adjacency (no self loops)
    w1_ref    : (F_in, H)  bf16  resident
    w2_ref    : (H, C_pad) bf16  resident
    out_ref   : (TM, C_pad)f32   row block  log-probabilities
    hs_bf_ref : (N, H)     bf16  scratch    d ⊙ h  (layer-2 MXU operand)
    hs_f32_ref: (N, H)     f32   scratch    d ⊙ h  (layer-2 identity term)
    """
    phase = pl.program_id(0)
    tm = out_ref.shape[0]
    r0 = pl.multiple_of(pl.program_id(1) * tm, tm)

    d_blk = d_ref[...]                                          # (TM, 1) f32
    # int8 adjacency (HBM bytes halved) -> bf16 for the MXU, right after DMA.
    adj_blk = adj_ref[pl.ds(r0, tm), :].astype(jnp.bfloat16)    # (TM, N)

    @pl.when(phase == 0)
    def _layer1():
        # A'V = d ⊙ ((d⊙V) + A (d⊙V)); propagation contracts the N-wide dim
        # against the narrow feature dim, then the [TM, F_in] result hits W1.
        p = jnp.dot(adj_blk, xs_bf_ref[...],
                    preferred_element_type=jnp.float32)         # A (d⊙x)
        p = d_blk * (p + xs_ref[...])                           # (TM, F_in) f32
        h = jnp.maximum(
            jnp.dot(p.astype(jnp.bfloat16), w1_ref[...],
                    preferred_element_type=jnp.float32), 0.0)   # (TM, H)
        # TODO(synk): F.dropout with training=True is stochastic; eval-mode identity.
        hs = d_blk * h                                          # pre-scale for layer 2
        hs_f32_ref[pl.ds(r0, tm), :] = hs                       # f32 identity-term path
        hs_bf_ref[pl.ds(r0, tm), :] = hs.astype(jnp.bfloat16)   # MXU operand
        out_ref[...] = jnp.zeros_like(out_ref)                  # defined; never reaches HBM
                                                                # (out block pinned to 0 in phase 0)

    @pl.when(phase == 1)
    def _layer2():
        p = jnp.dot(adj_blk, hs_bf_ref[...],
                    preferred_element_type=jnp.float32)         # A (d⊙h)
        p = d_blk * (p + hs_f32_ref[pl.ds(r0, tm), :])          # (TM, H) f32
        logits = jnp.dot(p.astype(jnp.bfloat16), w2_ref[...],
                         preferred_element_type=jnp.float32)    # (TM, C_pad)
        # Mask the zero-padded class lanes to -inf so they don't corrupt the lse.
        lane = lax.broadcasted_iota(jnp.int32, logits.shape, 1)
        logits = jnp.where(lane < n_classes, logits, -jnp.inf)
        m = jnp.max(logits, axis=1, keepdims=True)
        z = logits - m
        lse = jnp.log(jnp.sum(jnp.exp(z), axis=1, keepdims=True))
        out_ref[...] = z - lse


def preprocess_graph(adj, *, row_block=256):
    """Graph-constant preprocessing. Cache the result per graph (review item 7).

    Returns (adj_i8, d): zero-padded int8 0/1 adjacency [n_pad, n_pad] and
    d = (1 + deg)^-1/2 as an [n_pad, 1] f32 column (padded rows get deg = 0).
    """
    assert row_block % 128 == 0, "row_block must be a multiple of 128"
    n = adj.shape[0]
    n_pad = _round_up(n, row_block)
    adj_p = jnp.pad(adj.astype(jnp.float32), ((0, n_pad - n), (0, n_pad - n)))
    d = lax.rsqrt(1.0 + jnp.sum(adj_p, axis=1, keepdims=True))   # (n_pad, 1) f32
    adj_i8 = adj_p.astype(jnp.int8)                              # 0/1 exact in int8
    return adj_i8, d


@functools.partial(jax.jit, static_argnames=("row_block",))
def gcn_forward(x, w1, w2, adj_i8, d, *, row_block=256):
    """Eval-mode 2-layer GCN: log_softmax(A' relu(A' x W1) W2)."""
    n, f_in = x.shape
    nhid = w1.shape[1]
    nclass = w2.shape[1]
    n_pad = adj_i8.shape[0]
    tm = row_block
    assert n_pad % tm == 0 and n_pad >= n

    LANE = 128
    h_pad = _round_up(nhid, LANE)    # lane-dense hidden activations
    c_pad = _round_up(nclass, LANE)  # lane-dense logits / output stores

    f32, bf16 = jnp.float32, jnp.bfloat16
    x_p = jnp.pad(x.astype(f32), ((0, n_pad - n), (0, 0)))
    w1_p = jnp.pad(w1.astype(f32), ((0, 0), (0, h_pad - nhid))).astype(bf16)
    w2_p = jnp.pad(w2.astype(f32),
                   ((0, h_pad - nhid), (0, c_pad - nclass))).astype(bf16)

    # Hoisted, grid-invariant rescale + cast: done once per forward call instead
    # of once per grid step inside the kernel.
    xs = d * x_p                      # (n_pad, f_in) f32  identity-term rows
    xs_bf = xs.astype(bf16)           # resident MXU operand for layer 1

    n_blocks = n_pad // tm
    grid = (2, n_blocks)              # (phase = layer, row blocks)

    cost = pl.CostEstimate(
        flops=2 * n_pad * n_pad * (f_in + h_pad)
              + 2 * n_pad * (f_in * h_pad + h_pad * c_pad),
        transcendentals=n_pad * (c_pad + 1),
        bytes_accessed=(n_pad * n_pad                       # int8 adj, read once
                        + 6 * n_pad * f_in + 4 * n_pad      # xs_bf + xs + d
                        + 2 * (f_in * h_pad + h_pad * c_pad)
                        + 4 * n_pad * c_pad))

    # NOTE: for deployments with F_in >> H (e.g. Cora, F_in=1433) flip layer 1 to
    # linear-first (project (d⊙x)@W1 first, then propagate the N x H result); at
    # these shapes (F_in < H_pad) propagation-first is the cheaper association.
    out_p = pl.pallas_call(
        functools.partial(_gcn_fused_kernel, nclass),
        out_shape=jax.ShapeDtypeStruct((n_pad, c_pad), f32),
        grid=grid,
        in_specs=[
            # Resident (constant index_map -> fetched once, kept in VMEM).
            pl.BlockSpec((n_pad, f_in), lambda l, i: (0, 0)),     # xs  bf16
            # Per-row-block; collapse to block 0 in phase 1 (unused there) so no
            # redundant DMA traffic is issued.
            pl.BlockSpec((tm, f_in), lambda l, i: (i * (1 - l), 0)),  # xs f32 rows
            pl.BlockSpec((tm, 1), lambda l, i: (i, 0)),           # d rows
            pl.BlockSpec((n_pad, n_pad), lambda l, i: (0, 0)),    # adj int8 resident
            pl.BlockSpec((f_in, h_pad), lambda l, i: (0, 0)),     # W1 resident
            pl.BlockSpec((h_pad, c_pad), lambda l, i: (0, 0)),    # W2 resident
        ],
        # Pin the output block to 0 during phase 0 so the placeholder zeros are
        # never written back to HBM; phase 1 writes every block with real values.
        out_specs=pl.BlockSpec((tm, c_pad), lambda l, i: (i * l, 0)),
        scratch_shapes=[
            pltpu.VMEM((n_pad, h_pad), bf16),   # hs = d ⊙ h (layer-2 MXU operand)
            pltpu.VMEM((n_pad, h_pad), f32),    # hs in f32 (layer-2 identity term)
        ],
        compiler_params=pltpu.CompilerParams(
            # Phase 1 reads the hs scratch written by *all* phase-0 row blocks,
            # so neither axis may be sharded across TensorCores (v7x).
            dimension_semantics=("arbitrary", "arbitrary"),
            vmem_limit_bytes=48 * 1024 * 1024,
        ),
        cost_estimate=cost,
    )(xs_bf, xs, d, adj_i8, w1_p, w2_p)

    return out_p[:n, :nclass]


def gcn_reference(x, adj, w1, w2):
    """Pure-JAX f32 reference mirroring the PyTorch forward (eval mode)."""
    n = adj.shape[0]
    a_hat = jnp.eye(n, dtype=adj.dtype) + adj
    dd = jnp.sum(a_hat, axis=1) ** -0.5
    a_prime = jnp.diag(dd) @ a_hat @ jnp.diag(dd)
    h = jax.nn.relu((a_prime @ x) @ w1)
    logits = (a_prime @ h) @ w2
    return jax.nn.log_softmax(logits, axis=1)


if __name__ == "__main__":
    # Small but TPU-meaningful shapes: N=400 nodes -> padded to 512 with TM=256,
    # i.e. 2 row blocks (exercises the cross-block scratch dependence of the
    # fused layer-2 phase and row/class padding), nfeat=48, nhid=32, nclass=7.
    N, NFEAT, NHID, NCLASS = 400, 48, 32, 7

    key = jax.random.PRNGKey(0)
    kx, kadj, kw1, kw2 = jax.random.split(key, 4)

    x = jax.random.normal(kx, (N, NFEAT), dtype=jnp.float32)
    # Symmetric 0/1 adjacency without self-loops (the layer adds I itself).
    a_rand = jax.random.uniform(kadj, (N, N)) < 0.03
    adj = jnp.triu(a_rand.astype(jnp.float32), k=1)
    adj = adj + adj.T

    # Bias-free Linear weights stored as [in, out] so the kernel does V @ W.
    b1 = 1.0 / jnp.sqrt(NFEAT)
    b2 = 1.0 / jnp.sqrt(NHID)
    w1 = jax.random.uniform(kw1, (NFEAT, NHID), minval=-b1, maxval=b1,
                            dtype=jnp.float32)
    w2 = jax.random.uniform(kw2, (NHID, NCLASS), minval=-b2, maxval=b2,
                            dtype=jnp.float32)

    # Graph-constant preprocessing done once per graph, reused across forwards.
    adj_i8, d = preprocess_graph(adj, row_block=256)

    out = jax.block_until_ready(gcn_forward(x, w1, w2, adj_i8, d, row_block=256))
    ref = gcn_reference(x, adj, w1, w2)

    assert out.shape == (N, NCLASS)
    max_err = float(jnp.max(jnp.abs(out - ref)))
    # bf16 MXU operands with f32 accumulation -> relaxed tolerance vs f32 reference.
    assert jnp.allclose(out, ref, atol=3e-2, rtol=3e-2), (
        f"mismatch vs reference, max abs err={max_err}")

    print("KERNEL_OK")
</pallas_src>

<mosaic_0001>
module attributes {stable_mosaic.version = 11 : i64} {
  func.func @_gcn_fused_kernel(%arg0: i32, %arg1: i32, %arg2: memref<512x48xbf16, #tpu.memory_space<vmem>>, %arg3: memref<256x48xf32, #tpu.memory_space<vmem>>, %arg4: memref<256x1xf32, #tpu.memory_space<vmem>>, %arg5: memref<512x512xi8, #tpu.memory_space<vmem>>, %arg6: memref<48x128xbf16, #tpu.memory_space<vmem>>, %arg7: memref<128x128xbf16, #tpu.memory_space<vmem>>, %arg8: memref<256x128xf32, #tpu.memory_space<vmem>>, %arg9: memref<512x128xbf16, #tpu.memory_space<vmem>>, %arg10: memref<512x128xf32, #tpu.memory_space<vmem>>) attributes {dimension_semantics = [#tpu.dimension_semantics<arbitrary>, #tpu.dimension_semantics<arbitrary>], iteration_bounds = array<i64: 2, 2>, scalar_prefetch = 0 : i64, scratch_operands = 2 : i64, tpu.core_type = #tpu.core_type<tc>, window_params = [{pipeline_mode = #tpu.pipeline_mode<synchronous>, transform_indices = @transform_0, window_bounds = array<i64: 512, 48>}, {transform_indices = @transform_1, window_bounds = array<i64: 256, 48>}, {transform_indices = @transform_2, window_bounds = array<i64: 256, 1>}, {pipeline_mode = #tpu.pipeline_mode<synchronous>, transform_indices = @transform_3, window_bounds = array<i64: 512, 512>}, {pipeline_mode = #tpu.pipeline_mode<synchronous>, transform_indices = @transform_4, window_bounds = array<i64: 48, 128>}, {pipeline_mode = #tpu.pipeline_mode<synchronous>, transform_indices = @transform_5, window_bounds = array<i64: 128, 128>}, {transform_indices = @transform_6, window_bounds = array<i64: 256, 128>}]} {
    %c256_i32 = arith.constant 256 : i32
    %0 = arith.muli %arg1, %c256_i32 : i32
    %1 = tpu.assume_multiple %0, 256 : i32
    %c0 = arith.constant 0 : index
    %c0_0 = arith.constant 0 : index
    %2 = vector.load %arg4[%c0, %c0_0] : memref<256x1xf32, #tpu.memory_space<vmem>>, vector<256x1xf32>
    %3 = arith.index_cast %1 : i32 to index
    %c0_1 = arith.constant 0 : index
    %4 = vector.load %arg5[%3, %c0_1] : memref<512x512xi8, #tpu.memory_space<vmem>>, vector<256x512xi8>
    %5 = arith.sitofp %4 : vector<256x512xi8> to vector<256x512xbf16>
    %c0_i32 = arith.constant 0 : i32
    %6 = arith.cmpi eq, %arg0, %c0_i32 : i32
    %7 = arith.extui %6 : i1 to i32
    %c0_i32_2 = arith.constant 0 : i32
    %8 = arith.cmpi ne, %7, %c0_i32_2 : i32
    scf.if %8 {
      %c0_4 = arith.constant 0 : index
      %c0_5 = arith.constant 0 : index
      %12 = vector.load %arg2[%c0_4, %c0_5] : memref<512x48xbf16, #tpu.memory_space<vmem>>, vector<512x48xbf16>
      %cst = arith.constant dense<0.000000e+00> : vector<256x48xf32>
      %13 = tpu.matmul %5, %12, %cst {dimension_numbers = #tpu.dot_dimension_numbers<[1], [0], [0], [1], [0, 0, 1, 1], [], []>} : vector<256x512xbf16>, vector<512x48xbf16>, vector<256x48xf32> -> vector<256x48xf32>
      %c0_6 = arith.constant 0 : index
      %c0_7 = arith.constant 0 : index
      %14 = vector.load %arg3[%c0_6, %c0_7] : memref<256x48xf32, #tpu.memory_space<vmem>>, vector<256x48xf32>
      %15 = arith.addf %13, %14 : vector<256x48xf32>
      %16 = vector.broadcast %2 : vector<256x1xf32> to vector<256x48xf32>
      %17 = arith.mulf %16, %15 : vector<256x48xf32>
      %18 = arith.truncf %17 : vector<256x48xf32> to vector<256x48xbf16>
      %c0_8 = arith.constant 0 : index
      %c0_9 = arith.constant 0 : index
      %19 = vector.load %arg6[%c0_8, %c0_9] : memref<48x128xbf16, #tpu.memory_space<vmem>>, vector<48x128xbf16>
      %cst_10 = arith.constant dense<0.000000e+00> : vector<256x128xf32>
      %20 = tpu.matmul %18, %19, %cst_10 {dimension_numbers = #tpu.dot_dimension_numbers<[1], [0], [0], [1], [0, 0, 1, 1], [], []>} : vector<256x48xbf16>, vector<48x128xbf16>, vector<256x128xf32> -> vector<256x128xf32>
      %cst_11 = arith.constant 0.000000e+00 : f32
      %21 = vector.broadcast %cst_11 : f32 to vector<256x128xf32>
      %22 = arith.maximumf %20, %21 : vector<256x128xf32>
      %23 = vector.broadcast %2 : vector<256x1xf32> to vector<256x128xf32>
      %24 = arith.mulf %23, %22 : vector<256x128xf32>
      %25 = arith.index_cast %1 : i32 to index
      %c0_12 = arith.constant 0 : index
      %26 = vector.load %arg10[%25, %c0_12] : memref<512x128xf32, #tpu.memory_space<vmem>>, vector<256x128xf32>
      tpu.vector_store %arg10[%25, %c0_12], %24 {strides = array<i32>} : memref<512x128xf32, #tpu.memory_space<vmem>>, vector<256x128xf32>,
      %27 = arith.truncf %24 : vector<256x128xf32> to vector<256x128xbf16>
      %28 = arith.index_cast %1 : i32 to index
      %c0_13 = arith.constant 0 : index
      %29 = vector.load %arg9[%28, %c0_13] : memref<512x128xbf16, #tpu.memory_space<vmem>>, vector<256x128xbf16>
      tpu.vector_store %arg9[%28, %c0_13], %27 {strides = array<i32>} : memref<512x128xbf16, #tpu.memory_space<vmem>>, vector<256x128xbf16>,
      %cst_14 = arith.constant 0.000000e+00 : f32
      %30 = vector.broadcast %cst_14 : f32 to vector<256x128xf32>
      %c0_15 = arith.constant 0 : index
      %c0_16 = arith.constant 0 : index
      %31 = vector.load %arg8[%c0_15, %c0_16] : memref<256x128xf32, #tpu.memory_space<vmem>>, vector<256x128xf32>
      tpu.vector_store %arg8[%c0_15, %c0_16], %30 {strides = array<i32>} : memref<256x128xf32, #tpu.memory_space<vmem>>, vector<256x128xf32>,
    } else {
    }
    %c1_i32 = arith.constant 1 : i32
    %9 = arith.cmpi eq, %arg0, %c1_i32 : i32
    %10 = arith.extui %9 : i1 to i32
    %c0_i32_3 = arith.constant 0 : i32
    %11 = arith.cmpi ne, %10, %c0_i32_3 : i32
    scf.if %11 {
      %c0_4 = arith.constant 0 : index
      %c0_5 = arith.constant 0 : index
      %12 = vector.load %arg9[%c0_4, %c0_5] : memref<512x128xbf16, #tpu.memory_space<vmem>>, vector<512x128xbf16>
      %cst = arith.constant dense<0.000000e+00> : vector<256x128xf32>
      %13 = tpu.matmul %5, %12, %cst {dimension_numbers = #tpu.dot_dimension_numbers<[1], [0], [0], [1], [0, 0, 1, 1], [], []>} : vector<256x512xbf16>, vector<512x128xbf16>, vector<256x128xf32> -> vector<256x128xf32>
      %14 = arith.index_cast %1 : i32 to index
      %c0_6 = arith.constant 0 : index
      %15 = vector.load %arg10[%14, %c0_6] : memref<512x128xf32, #tpu.memory_space<vmem>>, vector<256x128xf32>
      %16 = arith.addf %13, %15 : vector<256x128xf32>
      %17 = vector.broadcast %2 : vector<256x1xf32> to vector<256x128xf32>
      %18 = arith.mulf %17, %16 : vector<256x128xf32>
      %19 = arith.truncf %18 : vector<256x128xf32> to vector<256x128xbf16>
      %c0_7 = arith.constant 0 : index
      %c0_8 = arith.constant 0 : index
      %20 = vector.load %arg7[%c0_7, %c0_8] : memref<128x128xbf16, #tpu.memory_space<vmem>>, vector<128x128xbf16>
      %cst_9 = arith.constant dense<0.000000e+00> : vector<256x128xf32>
      %21 = tpu.matmul %19, %20, %cst_9 {dimension_numbers = #tpu.dot_dimension_numbers<[1], [0], [0], [1], [0, 0, 1, 1], [], []>} : vector<256x128xbf16>, vector<128x128xbf16>, vector<256x128xf32> -> vector<256x128xf32>
      %22 = tpu.iota {dimensions = array<i32: 1>} : vector<256x128xi32>
      %c7_i32 = arith.constant 7 : i32
      %23 = vector.broadcast %c7_i32 : i32 to vector<256x128xi32>
      %24 = arith.cmpi slt, %22, %23 : vector<256x128xi32>
      %cst_10 = arith.constant 0xFF800000 : f32
      %25 = vector.broadcast %cst_10 : f32 to vector<256x128xf32>
      %26 = arith.select %24, %21, %25 : vector<256x128xi1>, vector<256x128xf32>
      %cst_11 = arith.constant dense<0xFF800000> : vector<256xf32>
      %27 = vector.multi_reduction <maximumf>, %26, %cst_11 [1] : vector<256x128xf32> to vector<256xf32>
      %28 = vector.shape_cast %27 : vector<256xf32> to vector<256x1xf32>
      %29 = vector.broadcast %28 : vector<256x1xf32> to vector<256x128xf32>
      %30 = arith.subf %26, %29 : vector<256x128xf32>
      %31 = math.exp %30 : vector<256x128xf32>
      %cst_12 = arith.constant dense<0.000000e+00> : vector<256xf32>
      %32 = vector.multi_reduction <add>, %31, %cst_12 [1] : vector<256x128xf32> to vector<256xf32>
      %33 = vector.shape_cast %32 : vector<256xf32> to vector<256x1xf32>
      %34 = math.log %33 : vector<256x1xf32>
      %35 = vector.broadcast %34 : vector<256x1xf32> to vector<256x128xf32>
      %36 = arith.subf %30, %35 : vector<256x128xf32>
      %c0_13 = arith.constant 0 : index
      %c0_14 = arith.constant 0 : index
      %37 = vector.load %arg8[%c0_13, %c0_14] : memref<256x128xf32, #tpu.memory_space<vmem>>, vector<256x128xf32>
      tpu.vector_store %arg8[%c0_13, %c0_14], %36 {strides = array<i32>} : memref<256x128xf32, #tpu.memory_space<vmem>>, vector<256x128xf32>,
    } else {
    }
    return
  }
  func.func @transform_0(%arg0: i32, %arg1: i32) -> (i32, i32) {
    %c0_i32 = arith.constant 0 : i32
    %c0_i32_0 = arith.constant 0 : i32
    %c0_i32_1 = arith.constant 0 : i32
    return %c0_i32, %c0_i32_0 : i32, i32
  }
  func.func @transform_1(%arg0: i32, %arg1: i32) -> (i32, i32) {
    %c1_i32 = arith.constant 1 : i32
    %0 = arith.subi %c1_i32, %arg0 : i32
    %1 = arith.muli %arg1, %0 : i32
    %c0_i32 = arith.constant 0 : i32
    %c0_i32_0 = arith.constant 0 : i32
    return %1, %c0_i32 : i32, i32
  }
  func.func @transform_2(%arg0: i32, %arg1: i32) -> (i32, i32) {
    %c0_i32 = arith.constant 0 : i32
    %c0_i32_0 = arith.constant 0 : i32
    return %arg1, %c0_i32 : i32, i32
  }
  func.func @transform_3(%arg0: i32, %arg1: i32) -> (i32, i32) {
    %c0_i32 = arith.constant 0 : i32
    %c0_i32_0 = arith.constant 0 : i32
    %c0_i32_1 = arith.constant 0 : i32
    return %c0_i32, %c0_i32_0 : i32, i32
  }
  func.func @transform_4(%arg0: i32, %arg1: i32) -> (i32, i32) {
    %c0_i32 = arith.constant 0 : i32
    %c0_i32_0 = arith.constant 0 : i32
    %c0_i32_1 = arith.constant 0 : i32
    return %c0_i32, %c0_i32_0 : i32, i32
  }
  func.func @transform_5(%arg0: i32, %arg1: i32) -> (i32, i32) {
    %c0_i32 = arith.constant 0 : i32
    %c0_i32_0 = arith.constant 0 : i32
    %c0_i32_1 = arith.constant 0 : i32
    return %c0_i32, %c0_i32_0 : i32, i32
  }
  func.func @transform_6(%arg0: i32, %arg1: i32) -> (i32, i32) {
    %0 = arith.muli %arg1, %arg0 : i32
    %c0_i32 = arith.constant 0 : i32
    %c0_i32_0 = arith.constant 0 : i32
    return %0, %c0_i32 : i32, i32
  }
}

</mosaic_0001>

<bundles_post_ra>
// kernel: gcn_forward.1
= control target key start
LH: loop header
LB: loop body
LE: loop exit
PB: predicated region body
PF: predicated region fallthrough
CT: control target
= control target key end

     0   :  { %s3950_s21 = smov 0   ;;  %s3952_s22 = smov 0   ;;  %s5561_s0 = inlined_call_operand.vmem [shape: bf16[512,48], index: 0, kind: input, shape index: {}]   ;;  %s5562_s1 = inlined_call_operand.vmem [shape: f32[512,48], index: 1, kind: input, shape index: {}]   ;;  %s5563_s2 = inlined_call_operand.vmem [shape: f32[512,1], index: 2, kind: input, shape index: {}]   ;;  %s5564_s3 = inlined_call_operand.vmem [shape: s8[512,512], index: 3, kind: input, shape index: {}]   ;;  %s5565_s4 = inlined_call_operand.vmem [shape: bf16[48,128], index: 4, kind: input, shape index: {}]   ;;  %s5566_s5 = inlined_call_operand.vmem [shape: bf16[128,128], index: 5, kind: input, shape index: {}]   ;;  %s5567_s6 = inlined_call_operand.vmem [shape: f32[512,128], index: 6, kind: output, shape index: {}]  }
   0x1   :  { %s3954_s23 = smov 0   ;;  %s3956_s24 = smov 0  }
   0x2   :  { %s3958_s25 = smov 0  }
   0x3 LB: > { %s25_s26 = sadd.s32 1, %s3902_s23  ;;  %s28_s27 = sadd.s32 1, %s3906_s24  ;;  %s3910_s25 = sphi %s3958_s25, %s16_s25   ;;  %s3906_s24 = sphi %s3956_s24, %s5898_s24   ;;  %s3902_s23 = sphi %s3954_s23, %s5897_s23   ;;  %s3898_s22 = sphi %s3952_s22, %s5896_s22   ;;  %s3894_s21 = sphi %s3950_s21, %s5895_s21  }
   0x4   : > { %p26_p0 = scmp.ge.s32.totalorder %s25_s26, 2  ;;  %p2970_p1 = scmp.ge.s32.totalorder %s3910_s25, 1 }
   0x5   : > { %p246_p2 = scmp.lt.s32.totalorder %s3910_s25, 5 }
   0x6   : > { %s5900_s26 = smov (%p26_p0, %s25_s26), 0  ;;  %s5902_s27 = smov (!%p26_p0, %s28_s27), %s3906_s24 }
   0x7   : > { %p247_p3 = pnand %p2970_p1, %p246_p2  ;;  %p30_p4 = scmp.ge.s32.totalorder %s5902_s27, 2 }
   0x9   : > { %s5904_s27 = smov (%p30_p4, %s5902_s27), 0  ;;  %250 = sbr.rel (%p247_p3) target bundleno = 1628 (0x65c), region = 44 }
  0x10   : > { %s284_s28 = ssub.s32 1, %s3898_s22  ;;  %s2973_s29 = sshll.u32 %s3894_s21, 5 }
  0x11   : > { %s285_s30 = smul.u32 %s3894_s21, %s284_s28  ;;  %p295_p5 = scmp.lt.s32.totalorder %s2973_s29, 63 }
  0x12   : > { %s300_s7 = smul.u32 %s3894_s21, %s3898_s22  ;;  %s3990_s8 = sshll.u32 %s3894_s21, 8 }
  0x13   : > { %s2971_s9 = sshll.u32 %s285_s30, 5  ;;  %s3996_s12 = scalar_lea.vmem %s5564_s3, %s3990_s8 }
  0x14   : > { %p287_p6 = scmp.lt.s32.totalorder %s2971_s9, 63  ;;  %s3998_s13 = sshll.u32 %s300_s7, 5  ;;  %v4001_v0 = vld [vmem:[%s3996_s12] sm:$0xff]  ;;  %v4004_v1 = vld [vmem:[%s3996_s12 + $0x8] sm:$0xff]  ;;  %v4007_v2 = vld [vmem:[%s3996_s12 + $0x10] sm:$0xff] }
  0x15   : > { %5657 = vst [vmem:[#allocation4_spill] sm:$0xff] %v4007_v2  ;;  %s5906_s29 = smov (!%p295_p5, %s2973_s29), 63  ;;  %v4010_v3 = vld [vmem:[%s3996_s12 + $0x18] sm:$0xff]  ;;  %v4013_v4 = vld [vmem:[%s3996_s12 + $0x20] sm:$0xff]  ;;  %v4016_v5 = vld [vmem:[%s3996_s12 + $0x28] sm:$0xff]  ;;  %p302_p7 = scmp.lt.s32.totalorder %s3998_s13, 63 }
  0x16   : > { %5658 = vst [vmem:[#allocation5_spill] sm:$0xff] %v4010_v3  ;;  %5659 = vst [vmem:[#allocation6_spill] sm:$0xff] %v4013_v4  ;;  %s5908_s9 = smov (!%p287_p6, %s2971_s9), 63  ;;  %v4023_v10 = vld [vmem:[%s3996_s12 + $0x30] sm:$0xff]  ;;  %v4026_v11 = vld [vmem:[%s3996_s12 + $0x38] sm:$0xff]  ;;  %s2974_s14 = sshll.u32 %s5906_s29, 3 }
  0x17   : > { %5660 = vst [vmem:[#allocation7_spill] sm:$0xff] %v4016_v5  ;;  %5661 = vst [vmem:[#allocation8_spill] sm:$0xff] %v4023_v10  ;;  %v4029_v12 = vld [vmem:[%s3996_s12 + $0x40] sm:$0xff]  ;;  %v4037_v17 = vld [vmem:[%s3996_s12 + $0x48] sm:$0xff]  ;;  %s2972_s15 = sshll.u32 %s5908_s9, 3  ;;  %s4052_s18 = scalar_lea.vmem %s5563_s2, %s2974_s14 }
  0x18   : > { %5662 = vst [vmem:[#allocation9_spill] sm:$0xff] %v4026_v11  ;;  %5663 = vst [vmem:[#allocation10_spill] sm:$0xff] %v4029_v12  ;;  %v4040_v18 = vld [vmem:[%s3996_s12 + $0x50] sm:$0xff]  ;;  %v4043_v19 = vld [vmem:[%s3996_s12 + $0x58] sm:$0xff]  ;;  %s4070_s21 = scalar_lea.vmem %s5562_s1, %s2972_s15  ;;  %s5910_s13 = smov (!%p302_p7, %s3998_s13), 63 }
  0x19   : > { %5664 = vst [vmem:[#allocation11_spill] sm:$0xff] %v4037_v17  ;;  %5665 = vst [vmem:[#allocation12_spill] sm:$0xff] %v4040_v18  ;;  %v4055_v24 = vld [vmem:[%s3996_s12 + $0x60] sm:$0xff]  ;;  %v4058_v25 = vld [vmem:[%s3996_s12 + $0x68] sm:$0xff]  ;;  %s2976_s28 = sshll.u32 %s5910_s13, 3  ;;  %p2980_p8 = scmp.ne.s32.totalorder %s3898_s22, 0 }
  0x1a   : > { %5666 = vst [vmem:[#allocation13_spill] sm:$0xff] %v4043_v19  ;;  %5667 = vst [vmem:[#allocation14_spill] sm:$0xff] %v4055_v24  ;;  %v4061_v26 = vld [vmem:[%s3996_s12 + $0x70] sm:$0xff]  ;;  %v4073_v31 = vld [vmem:[%s4052_s18] sm:$0xff]  ;;  %s4128_s7 = scalar_lea.vmem %s5567_s6, %s2976_s28  ;;  %vm1289_vm0 = vcmask (!%p2980_p8), 392192   ;;  %s4805_s20 = scalar_lea.vmem (!%p2980_p8), [#allocation3], %s3990_s8 }
  0x1b   : > { %5668 = vst [vmem:[#allocation15_spill] sm:$0xff] %v4058_v25  ;;  %5669 = vst [vmem:[#allocation16_spill] sm:$0xff] %v4061_v26  ;;  %v4076_v32 = vld [vmem:[%s4052_s18 + $0x8] sm:$0xff]  ;;  %v4079_v33 = vld [vmem:[%s4052_s18 + $0x10] sm:$0xff] }
  0x1c   : > { %v4089_v38 = vld [vmem:[%s4052_s18 + $0x18] sm:$0xff]  ;;  %v4092_v39 = vld [vmem:[%s4052_s18 + $0x20] sm:$0xff]  ;;  %v4095_v40 = vld [vmem:[%s4052_s18 + $0x28] sm:$0xff] }
  0x1d   : > { %v4102_v45 = vld [vmem:[%s4052_s18 + $0x30] sm:$0xff]  ;;  %v4105_v46 = vld [vmem:[%s4052_s18 + $0x38] sm:$0xff]  ;;  %v4108_v47 = vld [vmem:[%s4052_s18 + $0x40] sm:$0xff] }
  0x1e   : > { %v4115_v52 = vld [vmem:[%s4052_s18 + $0x48] sm:$0xff]  ;;  %v4118_v53 = vld [vmem:[%s4052_s18 + $0x50] sm:$0xff]  ;;  %v4121_v54 = vld [vmem:[%s4052_s18 + $0x58] sm:$0xff] }
  0x1f   : > { %5670 = vst [vmem:[#allocation17_spill] sm:$0xff] %v4115_v52  ;;  %5671 = vst [vmem:[#allocation18_spill] sm:$0xff] %v4118_v53  ;;  %v4131_v57 = vld [vmem:[%s4052_s18 + $0x60] sm:$0xff]  ;;  %v4134_v58 = vld [vmem:[%s4052_s18 + $0x68] sm:$0xff] }
  0x20   : > { %5672 = vst [vmem:[#allocation19_spill] sm:$0xff] %v4121_v54  ;;  %5673 = vst [vmem:[#allocation20_spill] sm:$0xff] %v4131_v57  ;;  %v4137_v59 = vld [vmem:[%s4052_s18 + $0x70] sm:$0xff]  ;;  %v4140_v60 = vld [vmem:[%s4052_s18 + $0x78] sm:$0xff] }
  0x21   : > { %5674 = vst [vmem:[#allocation21_spill] sm:$0xff] %v4134_v58  ;;  %5675 = vst [vmem:[#allocation22_spill] sm:$0xff] %v4137_v59  ;;  %v4143_v61 = vld [vmem:[%s4052_s18 + $0x80] sm:$0xff]  ;;  %v4146_v62 = vld [vmem:[%s4052_s18 + $0x88] sm:$0xff] }
  0x22   : > { %5676 = vst [vmem:[#allocation23_spill] sm:$0xff] %v4140_v60  ;;  %5677 = vst [vmem:[#allocation24_spill] sm:$0xff] %v4143_v61  ;;  %v4149_v63 = vld [vmem:[%s4052_s18 + $0x90] sm:$0xff]  ;;  %v4152_v56 = vld [vmem:[%s4052_s18 + $0x98] sm:$0xff] }
  0x23   : > { %5678 = vst [vmem:[#allocation25_spill] sm:$0xff] %v4146_v62  ;;  %5679 = vst [vmem:[#allocation26_spill] sm:$0xff] %v4149_v63  ;;  %v4155_v50 = vld [vmem:[%s4052_s18 + $0xa0] sm:$0xff]  ;;  %v4158_v43 = vld [vmem:[%s4052_s18 + $0xa8] sm:$0xff] }
  0x24   : > { %5680 = vst [vmem:[#allocation27_spill] sm:$0xff] %v4152_v56  ;;  %5681 = vst [vmem:[#allocation28_spill] sm:$0xff] %v4155_v50  ;;  %v4161_v44 = vld [vmem:[%s4052_s18 + $0xb0] sm:$0xff]  ;;  %v4164_v36 = vld [vmem:[%s4052_s18 + $0xb8] sm:$0xff] }
  0x25   : > { %5682 = vst [vmem:[#allocation29_spill] sm:$0xff] %v4158_v43  ;;  %5683 = vst [vmem:[#allocation30_spill] sm:$0xff] %v4161_v44  ;;  %v4167_v37 = vld [vmem:[%s4052_s18 + $0xc0] sm:$0xff]  ;;  %v4170_v51 = vld [vmem:[%s4052_s18 + $0xc8] sm:$0xff] }
  0x26   : > { %5684 = vst [vmem:[#allocation31_spill] sm:$0xff] %v4164_v36  ;;  %5685 = vst [vmem:[#allocation32_spill] sm:$0xff] %v4167_v37  ;;  %v4173_v29 = vld [vmem:[%s4052_s18 + $0xd0] sm:$0xff]  ;;  %v4176_v55 = vld [vmem:[%s4052_s18 + $0xd8] sm:$0xff] }
  0x27   : > { %5686 = vst [vmem:[#allocation33_spill] sm:$0xff] %v4170_v51  ;;  %5687 = vst [vmem:[#allocation34_spill] sm:$0xff] %v4173_v29  ;;  %v4179_v30 = vld [vmem:[%s4052_s18 + $0xe0] sm:$0xff]  ;;  %v4182_v48 = vld [vmem:[%s4052_s18 + $0xe8] sm:$0xff] }
  0x28   : > { %5688 = vst [vmem:[#allocation35_spill] sm:$0xff] %v4176_v55  ;;  %5689 = vst [vmem:[#allocation36_spill] sm:$0xff] %v4179_v30  ;;  %v4185_v22 = vld [vmem:[%s4052_s18 + $0xf0] sm:$0xff]  ;;  %v4188_v49 = vld [vmem:[%s4052_s18 + $0xf8] sm:$0xff] }
  0x29   : > { %5690 = vst [vmem:[#allocation37_spill] sm:$0xff] %v4182_v48  ;;  %5691 = vst [vmem:[#allocation38_spill] sm:$0xff] %v4185_v22  ;;  %v4191_v23 = vld [vmem:[%s3996_s12 + $0x78] sm:$0xff]  ;;  %v4194_v41 = vld [vmem:[%s3996_s12 + $0x80] sm:$0xff] }
  0x2a   : > { %5692 = vst [vmem:[#allocation39_spill] sm:$0xff] %v4188_v49  ;;  %5693 = vst [vmem:[#allocation40_spill] sm:$0xff] %v4191_v23  ;;  %v4197_v15 = vld [vmem:[%s3996_s12 + $0x88] sm:$0xff]  ;;  %v4200_v42 = vld [vmem:[%s3996_s12 + $0x90] sm:$0xff]  ;;  %v3912_v23 = vmov (!%p2980_p8), 0  }
  0x2b   : > { %5694 = vst [vmem:[#allocation41_spill] sm:$0xff] %v4194_v41  ;;  %5695 = vst [vmem:[#allocation42_spill] sm:$0xff] %v4197_v15  ;;  %v4205_v8 = vld [vmem:[%s3996_s12 + $0x98] sm:$0xff]  ;;  %v4208_v35 = vld [vmem:[%s3996_s12 + $0xa0] sm:$0xff]  ;;  %v5709_v41 = vunpack.c.l.s8.bf16 (!%p2980_p8), %v4004_v1  ;;  %3697 = vset.pattern.permute.xlu0 (!%p2980_p8), %v3912_v23  ;;  %3698 = vset.pattern.permute.xlu1 (!%p2980_p8), %v3912_v23 }
  0x2c   : > { %5696 = vst [vmem:[#allocation43_spill] sm:$0xff] %v4200_v42  ;;  %5697 = vst [vmem:[#allocation44_spill] sm:$0xff] %v4205_v8  ;;  %v4211_v13 = vld [vmem:[%s3996_s12 + $0xa8] sm:$0xff]  ;;  %v4218_v21 = vld [vmem:[%s3996_s12 + $0xb0] sm:$0xff]  ;;  %446 = sbr.rel (%p2980_p8) target bundleno = 679 (0x2a7), region = 48  ;;  %1059 = vperm.xlu0 (!%p2980_p8), %3697, %v4073_v31   ;;  %1069 = vperm.xlu1 (!%p2980_p8), %3698, %v4079_v33  }
  0x2d   : > { %5698 = vst [vmem:[#allocation45_spill] sm:$0xff] %v4208_v35  ;;  %5699 = vst [vmem:[#allocation46_spill] sm:$0xff] %v4211_v13  ;;  %v4221_v34 = vld [vmem:[%s3996_s12 + $0xb8] sm:$0xff]  ;;  %v4224_v9 = vld [vmem:[%s3996_s12 + $0xc0] sm:$0xff]  ;;  %767 = vmatprep.mubr.bf16.mxu0 (!%p2980_p8), %v5709_v41 }
  0x2e   : > { %5700 = vst [vmem:[#allocation47_spill] sm:$0xff] %v4218_v21  ;;  %5701 = vst [vmem:[#allocation48_spill] sm:$0xff] %v4221_v34  ;;  %v4231_v28 = vld [vmem:[%s3996_s12 + $0xc8] sm:$0xff]  ;;  %v4234_v16 = vld [vmem:[%s3996_s12 + $0xd0] sm:$0xff] }
  0x2f   : > { %5702 = vst [vmem:[#allocation49_spill] sm:$0xff] %v4234_v16  ;;  %v4237_v7 = vld [vmem:[%s3996_s12 + $0xd8] sm:$0xff]  ;;  %v4244_v6 = vld [vmem:[%s3996_s12 + $0xe0] sm:$0xff]  ;;  %v4247_v27 = vld [vmem:[%s3996_s12 + $0xe8] sm:$0xff]  ;;  %v5708_v18 = vunpack.c.l.s8.bf16 (!%p2980_p8), %v4231_v28  ;;  %v5712_v19 = vunpack.c.h.s8.bf16 (!%p2980_p8), %v4231_v28 }
  0x30   : > { %5703 = vst [vmem:[#allocation50_spill] sm:$0xff] %v4237_v7  ;;  %5704 = vst [vmem:[#allocation51_spill] sm:$0xff] %v4244_v6  ;;  %v4250_v42 = vld [vmem:[%s3996_s12 + $0xf0] sm:$0xff]  ;;  %v4257_v15 = vld [vmem:[%s3996_s12 + $0xf8] sm:$0xff]  ;;  %v5595_v26 = vunpack.c.l.s8.bf16 %v4244_v6  ;;  %v5596_v21 = vunpack.c.l.s8.bf16 %v4247_v27  ;;  %1064 = vperm.xlu0 (!%p2980_p8), %3697, %v4076_v32   ;;  %1074 = vperm.xlu1 (!%p2980_p8), %3698, %v4089_v38  }
  0x31   : > { %5705 = vst [vmem:[#allocation52_spill] sm:$0xff] %v4247_v27  ;;  %5706 = vst [vmem:[#allocation53_spill] sm:$0xff] %v4250_v42  ;;  %v3699_v8 = vld [vmem:[%s5561_s0 + $0x40] sm:$0xff] (!%p2980_p8)   ;;  %863 = vmatprep.mubr.bf16.mxu1 (!%p2980_p8), %v5708_v18  ;;  %v3701_v49 = vld [vmem:[%s5561_s0 + $0x48] sm:$0xff] (!%p2980_p8)  }
  0x32   : > { %5707 = vst [vmem:[#allocation54_spill] sm:$0xff] %v4257_v15  ;;  %v3700_v14 = vld [vmem:[%s5561_s0] sm:$0xff] (!%p2980_p8)   ;;  %3622 = vmatprep.subr.bf16.mxu1 (!%p2980_p8), %v3699_v8  ;;  %3045 = vmatprep.subr.bf16.mxu0 (!%p2980_p8), %v3699_v8  ;;  %v3702_v20 = vld [vmem:[%s5561_s0 + $0x8] sm:$0xff] (!%p2980_p8)   ;;  %v3703_v18 = vld [vmem:[%s5561_s0 + $0x50] sm:$0xff] (!%p2980_p8)  }
  0x33   : > { %3630 = vmatpush3.bf16.msra.mxu1 %v3700_v14  ;;  %3046 = vmatpush3.bf16.msra.mxu0 %v3700_v14  ;;  %v3704_v41 = vld [vmem:[%s5561_s0 + $0x10] sm:$0xff]   ;;  %v3705_v8 = vld [vmem:[%s5561_s0 + $0x58] sm:$0xff]  }
  0x34   : > { %3623 = vmatprep.subr.bf16.mxu1 %v3701_v49  ;;  %3047 = vmatprep.subr.bf16.mxu0 %v3701_v49  ;;  %v3706_v14 = vld [vmem:[%s5561_s0 + $0x18] sm:$0xff]   ;;  %v3707_v49 = vld [vmem:[%s5561_s0 + $0x60] sm:$0xff]  }
  0x35   : > { %v3714_v23 = vld [vmem:[%s5561_s0 + $0x38] sm:$0xff]   ;;  %1079 = vperm.xlu0 %3697, %v4092_v39   ;;  %1084 = vperm.xlu1 %3698, %v4095_v40  }
  0x37   : > { %3631 = vmatpush3.bf16.msra.mxu1 %v3702_v20  ;;  %3048 = vmatpush3.bf16.msra.mxu0 %v3702_v20  ;;  %v3708_v20 = vld [vmem:[%s5561_s0 + $0x20] sm:$0xff]  }
  0x38   : > { %3624 = vmatprep.subr.bf16.mxu1 %v3703_v18  ;;  %3049 = vmatprep.subr.bf16.mxu0 %v3703_v18  ;;  %v3709_v18 = vld [vmem:[%s5561_s0 + $0x68] sm:$0xff]  }
  0x39   : > { %1089 = vperm.xlu0 %3697, %v4102_v45   ;;  %1094 = vperm.xlu1 %3698, %v4105_v46  }
  0x3b   : > { %3632 = vmatpush3.bf16.msra.mxu1 %v3704_v41  ;;  %3050 = vmatpush3.bf16.msra.mxu0 %v3704_v41  ;;  %v3710_v41 = vld [vmem:[%s5561_s0 + $0x28] sm:$0xff]  }
  0x3c   : > { %3625 = vmatprep.subr.bf16.mxu1 %v3705_v8  ;;  %3051 = vmatprep.subr.bf16.mxu0 %v3705_v8  ;;  %v3711_v8 = vld [vmem:[%s5561_s0 + $0x70] sm:$0xff]  }
  0x3d   : > { %1099 = vperm.xlu0 %3697, %v4108_v47   ;;  %1104 = vperm.xlu1 %3698, %v4115_v52  }
  0x3f   : > { %3633 = vmatpush3.bf16.msra.mxu1 %v3706_v14  ;;  %3052 = vmatpush3.bf16.msra.mxu0 %v3706_v14  ;;  %v3712_v14 = vld [vmem:[%s5561_s0 + $0x30] sm:$0xff]  }
  0x40   : > { %3626 = vmatprep.subr.bf16.mxu1 %v3707_v49  ;;  %3053 = vmatprep.subr.bf16.mxu0 %v3707_v49  ;;  %v3713_v49 = vld [vmem:[%s5561_s0 + $0x78] sm:$0xff]  }
  0x41   : > { %1109 = vperm.xlu0 %3697, %v4118_v53   ;;  %1114 = vperm.xlu1 %3698, %v4121_v54  }
  0x43   : > { %3634 = vmatpush3.bf16.msra.mxu1 %v3708_v20  ;;  %3054 = vmatpush3.bf16.msra.mxu0 %v3708_v20  ;;  %v3715_v20 = vld [vmem:[%s5561_s0 + $0xc0] sm:$0xff]  }
  0x44   : > { %3627 = vmatprep.subr.bf16.mxu1 %v3709_v18  ;;  %3055 = vmatprep.subr.bf16.mxu0 %v3709_v18  ;;  %v3716_v18 = vld [vmem:[%s5561_s0 + $0x80] sm:$0xff]  }
  0x45   : > { %1119 = vperm.xlu0 %3697, %v4131_v57   ;;  %1124 = vperm.xlu1 %3698, %v4134_v58  }
  0x47   : > { %3635 = vmatpush3.bf16.msra.mxu1 %v3710_v41  ;;  %3056 = vmatpush3.bf16.msra.mxu0 %v3710_v41  ;;  %v3717_v41 = vld [vmem:[%s5561_s0 + $0xc8] sm:$0xff]  }
  0x48   : > { %3628 = vmatprep.subr.bf16.mxu1 %v3711_v8  ;;  %3057 = vmatprep.subr.bf16.mxu0 %v3711_v8  ;;  %v5710_v8 = vunpack.c.l.s8.bf16 %v4224_v9 }
  0x49   : > { %1129 = vperm.xlu0 %3697, %v4137_v59   ;;  %1134 = vperm.xlu1 %3698, %v4140_v60   ;;  %v516_v60 = vld [vmem:[%s4070_s21 + $0x28] sm:$0xff] }
  0x4b   : > { %3636 = vmatpush3.bf16.msra.mxu1 %v3712_v14  ;;  %3058 = vmatpush3.bf16.msra.mxu0 %v3712_v14  ;;  %v5711_v14 = vunpack.c.l.s8.bf16 %v4001_v0 }
  0x4c   : > { %3629 = vmatprep.subr.bf16.mxu1 %v3713_v49  ;;  %3059 = vmatprep.subr.bf16.mxu0 %v3713_v49  ;;  %v3718_v49 = vld [vmem:[%s5561_s0 + $0x88] sm:$0xff]  }
  0x4d   : > { %1139 = vperm.xlu0 %3697, %v4143_v61   ;;  %1144 = vperm.xlu1 %3698, %v4146_v62  }
  0x4f   : > { %3637 = vmatpush3.bf16.msra.mxu1 %v3714_v23  ;;  %3060 = vmatpush3.bf16.msra.mxu0 %v3714_v23  ;;  %v3719_v23 = vld [vmem:[%s5561_s0 + $0xd0] sm:$0xff]  }
  0x50   : > { %3157 = vmatprep.subr.bf16.mxu1 %v3715_v20  ;;  %v5713_v20 = vunpack.c.h.s8.bf16 %v4004_v1 }
  0x51   : > { %1149 = vperm.xlu0 %3697, %v4149_v63   ;;  %1154 = vperm.xlu1 %3698, %v4152_v56  }
  0x52   : > { %864 = vmatmul.mubr.bf16.vlgmr.msra.gmra.mrb[0].mxu1 %v5710_v8  ;;  %768 = vmatmul.mubr.bf16.vlgmr.msra.gmra.mrb[0].mxu0 %v5711_v14  ;;  %v5715_v8 = vunpack.c.h.s8.bf16 %v4001_v0  ;;  %v3722_v14 = vld [vmem:[%s5561_s0 + $0x98] sm:$0xff]  }
  0x53   : > { %3158 = vmatpush3.bf16.msra.mxu1 %v3716_v18  ;;  %871 = vmatprep.mubr.bf16.mxu1 %v5712_v19  ;;  %v3720_v18 = vld [vmem:[%s5561_s0 + $0x90] sm:$0xff]   ;;  %v3721_v19 = vld [vmem:[%s5561_s0 + $0xd8] sm:$0xff]  }
  0x54   : > { %3159 = vmatprep.subr.bf16.mxu1 %v3717_v41  ;;  %775 = vmatprep.mubr.bf16.mxu0 %v5713_v20  ;;  %v5714_v41 = vunpack.c.h.s8.bf16 %v4224_v9  ;;  %v3724_v20 = vld [vmem:[%s5561_s0 + $0xa0] sm:$0xff]  }
  0x55   : > { %1159 = vperm.xlu0 %3697, %v4155_v50   ;;  %1164 = vperm.xlu1 %3698, %v4158_v43  }
  0x57   : > { %3160 = vmatpush3.bf16.msra.mxu1 %v3718_v49  ;;  %v3723_v49 = vld [vmem:[%s5561_s0 + $0xe0] sm:$0xff]  }
  0x58   : > { %3161 = vmatprep.subr.bf16.mxu1 %v3719_v23  ;;  %v5716_v23 = vunpack.c.l.s8.bf16 %v4016_v5 }
  0x59   : > { %1169 = vperm.xlu0 %3697, %v4161_v44   ;;  %1174 = vperm.xlu1 %3698, %v4164_v36  }
  0x5a   : > { %872 = vmatmul.mubr.bf16.gmra.mrb[4].mxu1 %v5714_v41  ;;  %776 = vmatmul.mubr.bf16.gmra.mrb[4].mxu0 %v5715_v8  ;;  %v3726_v41 = vld [vmem:[%s5561_s0 + $0xa8] sm:$0xff]   ;;  %v5718_v8 = vunpack.c.h.s8.bf16 %v4247_v27 }
  0x5b   : > { %3162 = vmatpush3.bf16.msra.mxu1 %v3720_v18  ;;  %879 = vmatprep.mubr.bf16.mxu1 %v5596_v21  ;;  %v3725_v18 = vld [vmem:[%s5561_s0 + $0xe8] sm:$0xff]  }
  0x5c   : > { %3163 = vmatprep.subr.bf16.mxu1 %v3721_v19  ;;  %783 = vmatprep.mubr.bf16.mxu0 %v5716_v23  ;;  %v5717_v19 = vunpack.c.l.s8.bf16 %v4013_v4  ;;  %v3728_v23 = vld [vmem:[%s5561_s0 + $0xb0] sm:$0xff]  }
  0x5d   : > { %1179 = vperm.xlu0 %3697, %v4167_v37   ;;  %1184 = vperm.xlu1 %3698, %v4170_v51  }
  0x5f   : > { %3164 = vmatpush3.bf16.msra.mxu1 %v3722_v14  ;;  %v3727_v14 = vld [vmem:[%s5561_s0 + $0xf0] sm:$0xff]  }
  0x60   : > { %3165 = vmatprep.subr.bf16.mxu1 %v3723_v49  ;;  %v5719_v49 = vunpack.c.h.s8.bf16 %v4016_v5 }
  0x61   : > { %1189 = vperm.xlu0 %3697, %v4173_v29   ;;  %1194 = vperm.xlu1 %3698, %v4176_v55  }
  0x62   : > { %880 = vmatmul.mubr.bf16.gmra.mrb[8].mxu1 %v5595_v26  ;;  %784 = vmatmul.mubr.bf16.gmra.mrb[8].mxu0 %v5717_v19  ;;  %v5721_v19 = vunpack.c.h.s8.bf16 %v4013_v4 }
  0x63   : > { %3166 = vmatpush3.bf16.msra.mxu1 %v3724_v20  ;;  %887 = vmatprep.mubr.bf16.mxu1 %v5718_v8  ;;  %v3729_v20 = vld [vmem:[%s5561_s0 + $0xf8] sm:$0xff]   ;;  %v5722_v8 = vunpack.c.l.s8.bf16 %v4010_v3 }
  0x64   : > { %3167 = vmatprep.subr.bf16.mxu1 %v3725_v18  ;;  %791 = vmatprep.mubr.bf16.mxu0 %v5719_v49  ;;  %v5720_v18 = vunpack.c.h.s8.bf16 %v4244_v6  ;;  %v5724_v49 = vunpack.c.l.s8.bf16 %v4007_v2 }
  0x65   : > { %1199 = vperm.xlu0 %3697, %v4179_v30   ;;  %1204 = vperm.xlu1 %3698, %v4182_v48  }
  0x67   : > { %3168 = vmatpush3.bf16.msra.mxu1 %v3726_v41  ;;  %v3730_v41 = vld [vmem:[%s5561_s0 + $0xb8] sm:$0xff]  }
  0x68   : > { %3169 = vmatprep.subr.bf16.mxu1 %v3727_v14  ;;  %v5723_v14 = vunpack.c.l.s8.bf16 %v4037_v17 }
  0x69   : > { %1209 = vperm.xlu0 %3697, %v4185_v22   ;;  %v5751_v22 = vld [vmem:[#allocation40_spill] sm:$0xff] }
  0x6a   : > { %888 = vmatmul.mubr.bf16.gmra.mrb[12].mxu1 %v5720_v18  ;;  %792 = vmatmul.mubr.bf16.gmra.mrb[12].mxu0 %v5721_v19  ;;  %v5727_v18 = vunpack.c.h.s8.bf16 %v4037_v17  ;;  %v5728_v19 = vunpack.c.h.s8.bf16 %v4007_v2  ;;  %v514_v17 = vld [vmem:[%s4070_s21 + $0x18] sm:$0xff] }
  0x6b   : > { %3170 = vmatpush3.bf16.msra.mxu1 %v3728_v23  ;;  %928 = vmatprep.mubr.bf16.mxu1 %v5722_v8  ;;  %v5725_v23 = vunpack.c.l.s8.bf16 %v4029_v12  ;;  %v5730_v8 = vunpack.c.l.s8.bf16 %v4026_v11 }
  0x6c   : > { %3171 = vmatprep.subr.bf16.mxu1 %v3729_v20  ;;  %799 = vmatprep.mubr.bf16.mxu0 %v5723_v14  ;;  %v5726_v20 = vunpack.c.h.s8.bf16 %v4010_v3  ;;  %v5731_v14 = vunpack.c.l.s8.bf16 %v4058_v25 }
  0x6f   : > { %3172 = vmatpush3.bf16.msra.mxu1 %v3730_v41  ;;  %v5729_v41 = vunpack.c.h.s8.bf16 %v4029_v12 }
  0x72   : > { %929 = vmatmul.mubr.bf16.vlgmr.msra.gmra.mrb[16].mxu1 %v5724_v49  ;;  %800 = vmatmul.mubr.bf16.gmra.mrb[16].mxu0 %v5725_v23  ;;  %v5732_v49 = vunpack.c.l.s8.bf16 %v4023_v10  ;;  %v5733_v23 = vunpack.c.l.s8.bf16 %v4055_v24 }
  0x73   : > { %936 = vmatprep.mubr.bf16.mxu1 %v5726_v20  ;;  %807 = vmatprep.mubr.bf16.mxu0 %v5727_v18  ;;  %v5734_v20 = vunpack.c.h.s8.bf16 %v4026_v11  ;;  %v5735_v18 = vunpack.c.h.s8.bf16 %v4058_v25 }
  0x7a   : > { %937 = vmatmul.mubr.bf16.gmra.mrb[20].mxu1 %v5728_v19  ;;  %808 = vmatmul.mubr.bf16.gmra.mrb[20].mxu0 %v5729_v41  ;;  %v5736_v19 = vld [vmem:[#allocation39_spill] sm:$0xff]  ;;  %v5737_v41 = vunpack.c.h.s8.bf16 %v4023_v10 }
  0x7b   : > { %944 = vmatprep.mubr.bf16.mxu1 %v5730_v8  ;;  %815 = vmatprep.mubr.bf16.mxu0 %v5731_v14  ;;  %v5738_v8 = vunpack.c.h.s8.bf16 %v4055_v24  ;;  %v5739_v14 = vld [vmem:[#allocation13_spill] sm:$0xff]  ;;  %v5754_v24 = vld [vmem:[#allocation16_spill] sm:$0xff] }
  0x7c   : > { %1214 = vperm.xlu1 %3698, %v5736_v19   ;;  %v5747_v19 = vunpack.c.h.s8.bf16 %v5739_v14 }
  0x82   : > { %945 = vmatmul.mubr.bf16.gmra.mrb[24].mxu1 %v5732_v49  ;;  %816 = vmatmul.mubr.bf16.gmra.mrb[24].mxu0 %v5733_v23  ;;  %v5740_v49 = vunpack.c.l.s8.bf16 %v5739_v14  ;;  %v5741_v23 = vld [vmem:[#allocation42_spill] sm:$0xff]  ;;  %v5756_v14 = vunpack.c.l.s8.bf16 %v4208_v35 }
  0x83   : > { %952 = vmatprep.mubr.bf16.mxu1 %v5734_v20  ;;  %823 = vmatprep.mubr.bf16.mxu0 %v5735_v18  ;;  %v5742_v26 = vunpack.c.l.s8.bf16 %v5741_v23  ;;  %v5743_v20 = vld [vmem:[#allocation12_spill] sm:$0xff]  ;;  %v5745_v18 = vld [vmem:[#allocation41_spill] sm:$0xff] }
  0x84   : > { %v5744_v21 = vunpack.c.l.s8.bf16 %v5743_v20  ;;  %v5746_v48 = vunpack.c.l.s8.bf16 %v5745_v18 }
  0x8a   : > { %953 = vmatmul.mubr.bf16.gmra.mrb[28].mxu1 %v5737_v41  ;;  %824 = vmatmul.mubr.bf16.gmra.mrb[28].mxu0 %v5738_v8  ;;  %v5748_v41 = vunpack.c.h.s8.bf16 %v5741_v23  ;;  %v5749_v8 = vunpack.c.h.s8.bf16 %v5743_v20  ;;  %v5757_v23 = vunpack.c.h.s8.bf16 %v5751_v22  ;;  %v5758_v20 = vunpack.c.h.s8.bf16 %v4211_v13 }
  0x8b   : > { %960 = vmatprep.mubr.bf16.mxu1 %v5740_v49  ;;  %831 = vmatprep.mubr.bf16.mxu0 %v5742_v26  ;;  %v5750_v49 = vunpack.c.h.s8.bf16 %v5745_v18  ;;  %v5752_v26 = vunpack.c.l.s8.bf16 %v5751_v22  ;;  %v5759_v18 = vunpack.c.h.s8.bf16 %v5754_v24  ;;  %v3731_v22 = vld [vmem:[%s5565_s4] sm:$0xff]  }
  0x8c   : > { %3536 = vmatprep.subr.bf16.mxu0 %v3731_v22 }
  0x8d   : > { %3537 = vmatpush3.bf16.msra.mxu0 %v3731_v22  ;;  %v5776_v22 = vunpack.c.l.s8.bf16 %v4257_v15 }
  0x92   : > { %961 = vmatmul.mubr.bf16.gmra.mrb[32].mxu1 %v5744_v21  ;;  %832 = vmatmul.mubr.bf16.gmra.mrb[32].mxu0 %v5746_v48  ;;  %v5753_v21 = vunpack.c.l.s8.bf16 %v4211_v13  ;;  %v5755_v48 = vunpack.c.l.s8.bf16 %v5754_v24 }
  0x93   : > { %968 = vmatprep.mubr.bf16.mxu1 %v5747_v19  ;;  %839 = vmatprep.mubr.bf16.mxu0 %v5748_v41  ;;  %v5760_v19 = vunpack.c.h.s8.bf16 %v4208_v35  ;;  %v5761_v41 = vld [vmem:[#allocation44_spill] sm:$0xff] }
  0x9a   : > { %969 = vmatmul.mubr.bf16.gmra.mrb[36].mxu1 %v5749_v8  ;;  %840 = vmatmul.mubr.bf16.gmra.mrb[36].mxu0 %v5750_v49  ;;  %v5762_v8 = vunpack.c.l.s8.bf16 %v5761_v41  ;;  %v5763_v49 = vld [vmem:[#allocation43_spill] sm:$0xff] }
  0x9b   : > { %976 = vmatprep.mubr.bf16.mxu1 %v5752_v26  ;;  %847 = vmatprep.mubr.bf16.mxu0 %v5753_v21  ;;  %v5764_v26 = vunpack.c.l.s8.bf16 %v5763_v49  ;;  %v5765_v21 = vunpack.c.h.s8.bf16 %v5761_v41  ;;  %v5766_v24 = vunpack.c.h.s8.bf16 %v5763_v49  ;;  %v3732_v41 = vld [vmem:[%s5565_s4 + $0x8] sm:$0xff]   ;;  %v5774_v49 = vunpack.c.h.s8.bf16 %v4237_v7 }
  0x9c   : > { %3538 = vmatprep.subr.bf16.mxu0 %v3732_v41 }
  0x9d   : > { %3539 = vmatpush3.bf16.msra.mxu0 %v3732_v41 }
  0xa2   : > { %977 = vmatmul.mubr.bf16.gmra.mrb[40].mxu1 %v5755_v48  ;;  %848 = vmatmul.mubr.bf16.gmra.mrb[40].mxu0 %v5756_v14  ;;  %v5767_v48 = vunpack.c.l.s8.bf16 %v4221_v34  ;;  %v5768_v14 = vld [vmem:[#allocation47_spill] sm:$0xff] }
  0xa3   : > { %984 = vmatprep.mubr.bf16.mxu1 %v5757_v23  ;;  %855 = vmatprep.mubr.bf16.mxu0 %v5758_v20  ;;  %v5769_v23 = vunpack.c.l.s8.bf16 %v5768_v14  ;;  %v5770_v20 = vunpack.c.h.s8.bf16 %v4221_v34 }
  0xaa   : > { %985 = vmatmul.mubr.bf16.gmra.mrb[44].mxu1 %v5759_v18  ;;  %856 = vmatmul.mubr.bf16.gmra.mrb[44].mxu0 %v5760_v19  ;;  %v5771_v18 = vunpack.c.h.s8.bf16 %v5768_v14  ;;  %v5772_v19 = vunpack.c.l.s8.bf16 %v4237_v7  ;;  %v5779_v14 = vunpack.c.h.s8.bf16 %v4250_v42 }
  0xab   : > { %992 = vmatprep.mubr.bf16.mxu1 %v5762_v8  ;;  %v5773_v8 = vunpack.c.l.s8.bf16 %v4234_v16  ;;  %v4576_v63 = vpop.permute.xlu1 %1069 }
  0xaf   : > { %v4587_v61 = vpop.permute.xlu1 %1074 }
  0xb2   : > { %993 = vmatmul.mubr.bf16.gmra.mrb[48].mxu1 %v5764_v26  ;;  %v3733_v26 = vld [vmem:[%s5565_s4 + $0x10] sm:$0xff]  }
  0xb3   : > { %1000 = vmatprep.mubr.bf16.mxu1 %v5765_v21  ;;  %3540 = vmatprep.subr.bf16.mxu0 %v3733_v26  ;;  %v5775_v21 = vunpack.c.h.s8.bf16 %v4234_v16 }
  0xb4   : > { %3541 = vmatpush3.bf16.msra.mxu0 %v3733_v26 }
  0xba   : > { %1001 = vmatmul.mubr.bf16.gmra.mrb[52].mxu1 %v5766_v24  ;;  %v5777_v24 = vunpack.c.l.s8.bf16 %v4250_v42 }
  0xbb   : > { %1008 = vmatprep.mubr.bf16.mxu1 %v5767_v48  ;;  %v5778_v48 = vunpack.c.h.s8.bf16 %v4257_v15 }
  0xc2   : > { %1009 = vmatmul.mubr.bf16.gmra.mrb[56].mxu1 %v5769_v23 }
  0xc3   : > { %1016 = vmatprep.mubr.bf16.mxu1 %v5770_v20 }
  0xca   : > { %1017 = vmatmul.mubr.bf16.gmra.mrb[60].mxu1 %v5771_v18 }
  0xcb   : > { %1024 = vmatprep.mubr.bf16.mxu1 %v5772_v19 }
  0xd2   : > { %1025 = vmatmul.mubr.bf16.gmra.mrb[64].mxu1 %v5773_v8 }
  0xd3   : > { %1032 = vmatprep.mubr.bf16.mxu1 %v5774_v49 }
  0xda   : > { %1033 = vmatmul.mubr.bf16.gmra.mrb[68].mxu1 %v5775_v21 }
  0xdb   : > { %1040 = vmatprep.mubr.bf16.mxu1 %v5776_v22 }
  0xe2   : > { %1041 = vmatmul.mubr.bf16.gmra.mrb[72].mxu1 %v5777_v24 }
  0xe3   : > { %1048 = vmatprep.mubr.bf16.mxu1 %v5778_v48 }
  0xea   : > { %1049 = vmatmul.mubr.bf16.gmra.mrb[76].mxu1 %v5779_v14 }
 0x125   : > { %v3133_v23 = vpop.f32.mrb[0].mxu1  ;;  %v3061_v20 = vpop.f32.mrb[0].mxu0 }
 0x126   : > { %v3134_v18 = vpop.f32.mrb[1].mxu1  ;;  %v3062_v19 = vpop.f32.mrb[1].mxu0 }
 0x127   : > { %v4541_v41 = vadd.f32 %v3134_v18, %v3133_v23  ;;  %v3136_v8 = vpop.f32.mrb[2].mxu1  ;;  %v3063_v49 = vadd.f32 %v3062_v19, %v3061_v20  ;;  %v3064_v26 = vpop.f32.mrb[2].mxu0 }
 0x128   : > { %v3137_v21 = vpop.f32.mrb[3].mxu1  ;;  %v3065_v22 = vpop.f32.mrb[3].mxu0 }
 0x129   : > { %v4543_v16 = vadd.f32 %v3137_v21, %v3136_v8  ;;  %v3066_v24 = vadd.f32 %v3065_v22, %v3064_v26 }
 0x12d   : > { %v3139_v7 = vpop.f32.mrb[4].mxu1  ;;  %v3067_v15 = vpop.f32.mrb[4].mxu0 }
 0x12e   : > { %v3140_v48 = vpop.f32.mrb[5].mxu1  ;;  %v3068_v34 = vpop.f32.mrb[5].mxu0 }
 0x12f   : > { %v4545_v42 = vadd.f32 %v3140_v48, %v3139_v7  ;;  %v3142_v14 = vpop.f32.mrb[6].mxu1  ;;  %v3069_v35 = vadd.f32 %v3068_v34, %v3067_v15  ;;  %v3070_v13 = vpop.f32.mrb[6].mxu0 }
 0x130   : > { %v3143_v10 = vpop.f32.mrb[7].mxu1  ;;  %v3071_v23 = vpop.f32.mrb[7].mxu0 }
 0x131   : > { %v4547_v18 = vadd.f32 %v3143_v10, %v3142_v14  ;;  %v3072_v20 = vadd.f32 %v3071_v23, %v3070_v13 }
 0x135   : > { %v3145_v19 = vpop.f32.mrb[8].mxu1  ;;  %v3073_v30 = vpop.f32.mrb[8].mxu0 }
 0x136   : > { %v3146_v55 = vpop.f32.mrb[9].mxu1  ;;  %v3074_v8 = vpop.f32.mrb[9].mxu0 }
 0x137   : > { %v4549_v21 = vadd.f32 %v3146_v55, %v3145_v19  ;;  %v3148_v26 = vpop.f32.mrb[10].mxu1  ;;  %v4551_v22 = vadd.f32 %v3074_v8, %v3073_v30  ;;  %v3076_v29 = vpop.f32.mrb[10].mxu0 }
 0x138   : > { %v3149_v7 = vpop.f32.mrb[11].mxu1  ;;  %v3077_v48 = vpop.f32.mrb[11].mxu0 }
 0x139   : > { %v4553_v15 = vadd.f32 %v3149_v7, %v3148_v26  ;;  %v4555_v34 = vadd.f32 %v3077_v48, %v3076_v29  ;;  %v511_v26 = vld [vmem:[%s4070_s21] sm:$0xff]  ;;  %v512_v7 = vld [vmem:[%s4070_s21 + $0x8] sm:$0xff]  ;;  %v4567_v29 = vpop.permute.xlu0 %1059 }
 0x13a   : > { %v770_v48 = vadd.f32 %v3063_v49, %v511_v26  ;;  %v513_v49 = vld [vmem:[%s4070_s21 + $0x10] sm:$0xff] }
 0x13d   : > { %v3151_v10 = vpop.f32.mrb[12].mxu1  ;;  %v3079_v13 = vpop.f32.mrb[12].mxu0 }
 0x13e   : > { %v3152_v14 = vpop.f32.mrb[13].mxu1  ;;  %v3080_v23 = vpop.f32.mrb[13].mxu0 }
 0x13f   : > { %v4557_v25 = vadd.f32 %v3152_v14, %v3151_v10  ;;  %v3154_v55 = vpop.f32.mrb[14].mxu1  ;;  %v4559_v19 = vadd.f32 %v3080_v23, %v3079_v13  ;;  %v3082_v30 = vpop.f32.mrb[14].mxu0  ;;  %v773_v13 = vadd.f32 %v3066_v24, %v512_v7 }
 0x140   : > { %v3155_v8 = vpop.f32.mrb[15].mxu1  ;;  %v3083_v11 = vpop.f32.mrb[15].mxu0 }
 0x141   : > { %v4561_v51 = vadd.f32 %v3155_v8, %v3154_v55  ;;  %v4563_v37 = vadd.f32 %v3083_v11, %v3082_v30  ;;  %v4573_v56 = vpop.permute.xlu0 %1064 }
 0x145   : > { %v3173_v36 = vpop.f32.mrb[16].mxu1  ;;  %v3085_v44 = vpop.f32.mrb[16].mxu0 }
 0x146   : > { %v3174_v10 = vpop.f32.mrb[17].mxu1  ;;  %v3086_v14 = vpop.f32.mrb[17].mxu0 }
 0x147   : > { %v3175_v23 = vadd.f32 %v3174_v10, %v3173_v36  ;;  %v3176_v12 = vpop.f32.mrb[18].mxu1  ;;  %v4569_v2 = vadd.f32 %v3086_v14, %v3085_v44  ;;  %v3088_v55 = vpop.f32.mrb[18].mxu0  ;;  %v778_v44 = vadd.f32 %v3069_v35, %v513_v49  ;;  %v515_v49 = vld [vmem:[%s4070_s21 + $0x20] sm:$0xff] }
 0x148   : > { %v3177_v8 = vpop.f32.mrb[19].mxu1  ;;  %v3089_v11 = vpop.f32.mrb[19].mxu0 }
 0x149   : > { %v931_v30 = vadd.f32 %v3175_v23, %v770_v48  ;;  %v3178_v43 = vadd.f32 %v3177_v8, %v3176_v12  ;;  %v4571_v50 = vadd.f32 %v3089_v11, %v3088_v55  ;;  %v781_v23 = vadd.f32 %v3072_v20, %v514_v17 }
 0x14b   : > { %v934_v26 = vadd.f32 %v3178_v43, %v773_v13  ;;  %v1217_v24 = vmul.f32 %v4567_v29, %v931_v30 }
 0x14d   : > { %v1218_v36 = vmul.f32 %v4573_v56, %v934_v26  ;;  %v3179_v7 = vpop.f32.mrb[20].mxu1  ;;  %v3091_v10 = vpop.f32.mrb[20].mxu0 }
 0x14e   : > { %v3180_v14 = vpop.f32.mrb[21].mxu1  ;;  %v3092_v12 = vpop.f32.mrb[21].mxu0 }
 0x14f   : > { %v1249_v48 = vpack.c.bf16 %v1218_v36, %v1217_v24  ;;  %v3181_v55 = vadd.f32 %v3180_v14, %v3179_v7  ;;  %v3182_v8 = vpop.f32.mrb[22].mxu1  ;;  %v4581_v43 = vadd.f32 %v3092_v12, %v3091_v10  ;;  %v3094_v13 = vpop.f32.mrb[22].mxu0  ;;  %v786_v24 = vadd.f32 %v4551_v22, %v515_v49 }
 0x150   : > { %v3183_v11 = vpop.f32.mrb[23].mxu1  ;;  %v3095_v3 = vpop.f32.mrb[23].mxu0 }
 0x151   : > { %v939_v30 = vadd.f32 %v3181_v55, %v778_v44  ;;  %v3184_v62 = vadd.f32 %v3183_v11, %v3182_v8  ;;  %3542 = vmatprep.mubr.msk.bf16.mxu0 %vm1289_vm0, %v1249_v48  ;;  %v4584_v35 = vadd.f32 %v3095_v3, %v3094_v13  ;;  %v789_v3 = vadd.f32 %v4555_v34, %v516_v60  ;;  %v518_v60 = vld [vmem:[%s4070_s21 + $0x38] sm:$0xff] }
 0x153   : > { %v942_v26 = vadd.f32 %v3184_v62, %v781_v23  ;;  %v1219_v17 = vmul.f32 %v4576_v63, %v939_v30  ;;  %v517_v30 = vld [vmem:[%s4070_s21 + $0x30] sm:$0xff] }
 0x155   : > { %v1220_v20 = vmul.f32 %v4587_v61, %v942_v26  ;;  %v3185_v36 = vpop.f32.mrb[24].mxu1  ;;  %v3097_v7 = vpop.f32.mrb[24].mxu0 }
 0x156   : > { %v3186_v44 = vpop.f32.mrb[25].mxu1  ;;  %v3098_v10 = vpop.f32.mrb[25].mxu0 }
 0x157   : > { %v1250_v14 = vpack.c.bf16 %v1220_v20, %v1219_v17  ;;  %v3187_v12 = vadd.f32 %v3186_v44, %v3185_v36  ;;  %v3188_v62 = vpop.f32.mrb[26].mxu1  ;;  %v4594_v48 = vadd.f32 %v3098_v10, %v3097_v7  ;;  %v3100_v23 = vpop.f32.mrb[26].mxu0  ;;  %v794_v36 = vadd.f32 %v4559_v19, %v517_v30  ;;  %v519_v30 = vld [vmem:[%s4070_s21 + $0x40] sm:$0xff] }
 0x158   : > { %v3189_v55 = vpop.f32.mrb[27].mxu1  ;;  %v3101_v8 = vpop.f32.mrb[27].mxu0 }
 0x159   : > { %v947_v13 = vadd.f32 %v3187_v12, %v786_v24  ;;  %v3190_v11 = vadd.f32 %v3189_v55, %v3188_v62  ;;  %3543 = vmatmul.mubr.msk.bf16.vlgmr.msra.gmra.mrb[48].mxu0 %vm1289_vm0, %v1250_v14  ;;  %v4597_v22 = vadd.f32 %v3101_v8, %v3100_v23  ;;  %v4600_v26 = vpop.permute.xlu0 %1079  ;;  %v4602_v17 = vpop.permute.xlu1 %1084 }
 0x15b   : > { %v950_v49 = vadd.f32 %v3190_v11, %v789_v3  ;;  %v1221_v34 = vmul.f32 %v4600_v26, %v947_v13  ;;  %v797_v3 = vadd.f32 %v4563_v37, %v518_v60  ;;  %v520_v37 = vld [vmem:[%s4070_s21 + $0x48] sm:$0xff] }
 0x15d   : > { %v1222_v20 = vmul.f32 %v4602_v17, %v950_v49  ;;  %v3191_v7 = vpop.f32.mrb[28].mxu1  ;;  %v3103_v24 = vpop.f32.mrb[28].mxu0 }
 0x15e   : > { %v3192_v44 = vpop.f32.mrb[29].mxu1  ;;  %v3104_v10 = vpop.f32.mrb[29].mxu0 }
 0x15f   : > { %v1251_v14 = vpack.c.bf16 %v1222_v20, %v1221_v34  ;;  %v3193_v12 = vadd.f32 %v3192_v44, %v3191_v7  ;;  %v3194_v62 = vpop.f32.mrb[30].mxu1  ;;  %v4609_v23 = vadd.f32 %v3104_v10, %v3103_v24  ;;  %v3106_v55 = vpop.f32.mrb[30].mxu0  ;;  %v802_v7 = vadd.f32 %v4569_v2, %v519_v30  ;;  %v521_v30 = vld [vmem:[%s4070_s21 + $0x50] sm:$0xff] }
 0x160   : > { %v3195_v8 = vpop.f32.mrb[31].mxu1  ;;  %v3107_v13 = vpop.f32.mrb[31].mxu0 }
 0x161   : > { %v955_v11 = vadd.f32 %v3193_v12, %v794_v36  ;;  %v3196_v49 = vadd.f32 %v3195_v8, %v3194_v62  ;;  %3546 = vmatprep.mubr.msk.bf16.mxu0 %vm1289_vm0, %v1251_v14  ;;  %v4612_v19 = vadd.f32 %v3107_v13, %v3106_v55  ;;  %v4615_v4 = vpop.permute.xlu0 %1089  ;;  %v4617_v34 = vpop.permute.xlu1 %1094 }
 0x163   : > { %v958_v59 = vadd.f32 %v3196_v49, %v797_v3  ;;  %v1223_v60 = vmul.f32 %v4615_v4, %v955_v11  ;;  %v805_v3 = vadd.f32 %v4571_v50, %v520_v37  ;;  %v522_v50 = vld [vmem:[%s4070_s21 + $0x58] sm:$0xff] }
 0x165   : > { %v1224_v20 = vmul.f32 %v4617_v34, %v958_v59  ;;  %v3197_v24 = vpop.f32.mrb[32].mxu1  ;;  %v3109_v36 = vpop.f32.mrb[32].mxu0 }
 0x166   : > { %v3198_v44 = vpop.f32.mrb[33].mxu1  ;;  %v3110_v10 = vpop.f32.mrb[33].mxu0 }
 0x167   : > { %v1252_v14 = vpack.c.bf16 %v1224_v20, %v1223_v60  ;;  %v3199_v12 = vadd.f32 %v3198_v44, %v3197_v24  ;;  %v3200_v62 = vpop.f32.mrb[34].mxu1  ;;  %v4624_v55 = vadd.f32 %v3110_v10, %v3109_v36  ;;  %v3112_v8 = vpop.f32.mrb[34].mxu0  ;;  %v810_v24 = vadd.f32 %v4581_v43, %v521_v30  ;;  %v523_v30 = vld [vmem:[%s4070_s21 + $0x60] sm:$0xff] }
 0x168   : > { %v3201_v13 = vpop.f32.mrb[35].mxu1  ;;  %v3113_v11 = vpop.f32.mrb[35].mxu0 }
 0x169   : > { %v963_v49 = vadd.f32 %v3199_v12, %v802_v7  ;;  %v3202_v59 = vadd.f32 %v3201_v13, %v3200_v62  ;;  %3547 = vmatmul.mubr.msk.bf16.gmra.mrb[52].mxu0 %vm1289_vm0, %v1252_v14  ;;  %v4627_v2 = vadd.f32 %v3113_v11, %v3112_v8  ;;  %v4630_v58 = vpop.permute.xlu0 %1099  ;;  %v4632_v60 = vpop.permute.xlu1 %1104 }
 0x16b   : > { %v966_v6 = vadd.f32 %v3202_v59, %v805_v3  ;;  %v1225_v37 = vmul.f32 %v4630_v58, %v963_v49  ;;  %v813_v3 = vadd.f32 %v4584_v35, %v522_v50  ;;  %v524_v35 = vld [vmem:[%s4070_s21 + $0x68] sm:$0xff] }
 0x16d   : > { %v1226_v20 = vmul.f32 %v4632_v60, %v966_v6  ;;  %v3203_v36 = vpop.f32.mrb[36].mxu1  ;;  %v3115_v7 = vpop.f32.mrb[36].mxu0 }
 0x16e   : > { %v3204_v44 = vpop.f32.mrb[37].mxu1  ;;  %v3116_v10 = vpop.f32.mrb[37].mxu0 }
 0x16f   : > { %v1253_v14 = vpack.c.bf16 %v1226_v20, %v1225_v37  ;;  %v3205_v12 = vadd.f32 %v3204_v44, %v3203_v36  ;;  %v3206_v62 = vpop.f32.mrb[38].mxu1  ;;  %v4639_v8 = vadd.f32 %v3116_v10, %v3115_v7  ;;  %v3118_v13 = vpop.f32.mrb[38].mxu0  ;;  %v818_v36 = vadd.f32 %v4594_v48, %v523_v30  ;;  %v525_v30 = vld [vmem:[%s4070_s21 + $0x70] sm:$0xff] }
 0x170   : > { %v3207_v11 = vpop.f32.mrb[39].mxu1  ;;  %v3119_v49 = vpop.f32.mrb[39].mxu0 }
 0x171   : > { %v971_v59 = vadd.f32 %v3205_v12, %v810_v24  ;;  %v3208_v6 = vadd.f32 %v3207_v11, %v3206_v62  ;;  %3550 = vmatprep.mubr.msk.bf16.mxu0 %vm1289_vm0, %v1253_v14  ;;  %v4642_v43 = vadd.f32 %v3119_v49, %v3118_v13  ;;  %v4645_v54 = vpop.permute.xlu0 %1109  ;;  %v4647_v37 = vpop.permute.xlu1 %1114 }
 0x173   : > { %v974_v57 = vadd.f32 %v3208_v6, %v813_v3  ;;  %v1227_v50 = vmul.f32 %v4645_v54, %v971_v59  ;;  %v821_v3 = vadd.f32 %v4597_v22, %v524_v35  ;;  %v526_v22 = vld [vmem:[%s4070_s21 + $0x78] sm:$0xff] }
 0x175   : > { %v1228_v20 = vmul.f32 %v4647_v37, %v974_v57  ;;  %v3209_v7 = vpop.f32.mrb[40].mxu1  ;;  %v3121_v24 = vpop.f32.mrb[40].mxu0 }
 0x176   : > { %v3210_v44 = vpop.f32.mrb[41].mxu1  ;;  %v3122_v10 = vpop.f32.mrb[41].mxu0 }
 0x177   : > { %v1254_v14 = vpack.c.bf16 %v1228_v20, %v1227_v50  ;;  %v3211_v12 = vadd.f32 %v3210_v44, %v3209_v7  ;;  %v3212_v62 = vpop.f32.mrb[42].mxu1  ;;  %v4654_v13 = vadd.f32 %v3122_v10, %v3121_v24  ;;  %v3124_v11 = vpop.f32.mrb[42].mxu0  ;;  %v826_v7 = vadd.f32 %v4609_v23, %v525_v30  ;;  %v527_v30 = vld [vmem:[%s4070_s21 + $0x80] sm:$0xff] }
 0x178   : > { %v3213_v49 = vpop.f32.mrb[43].mxu1  ;;  %v3125_v59 = vpop.f32.mrb[43].mxu0 }
 0x179   : > { %v979_v6 = vadd.f32 %v3211_v12, %v818_v36  ;;  %v3214_v57 = vadd.f32 %v3213_v49, %v3212_v62  ;;  %3551 = vmatmul.mubr.msk.bf16.gmra.mrb[56].mxu0 %vm1289_vm0, %v1254_v14  ;;  %v4657_v48 = vadd.f32 %v3125_v59, %v3124_v11  ;;  %v4660_v5 = vpop.permute.xlu0 %1119  ;;  %v4662_v50 = vpop.permute.xlu1 %1124 }
 0x17b   : > { %v982_v53 = vadd.f32 %v3214_v57, %v821_v3  ;;  %v1229_v35 = vmul.f32 %v4660_v5, %v979_v6  ;;  %v829_v3 = vadd.f32 %v4612_v19, %v526_v22  ;;  %v528_v19 = vld [vmem:[%s4070_s21 + $0x88] sm:$0xff] }
 0x17d   : > { %v1230_v20 = vmul.f32 %v4662_v50, %v982_v53  ;;  %v3215_v24 = vpop.f32.mrb[44].mxu1  ;;  %v3127_v36 = vpop.f32.mrb[44].mxu0 }
 0x17e   : > { %v3216_v44 = vpop.f32.mrb[45].mxu1  ;;  %v3128_v10 = vpop.f32.mrb[45].mxu0 }
 0x17f   : > { %v1255_v14 = vpack.c.bf16 %v1230_v20, %v1229_v35  ;;  %v3217_v12 = vadd.f32 %v3216_v44, %v3215_v24  ;;  %v3218_v62 = vpop.f32.mrb[46].mxu1  ;;  %v4669_v11 = vadd.f32 %v3128_v10, %v3127_v36  ;;  %v3130_v49 = vpop.f32.mrb[46].mxu0  ;;  %v837_v10 = vadd.f32 %v4627_v2, %v528_v19 }
 0x180   : > { %v3219_v59 = vpop.f32.mrb[47].mxu1  ;;  %v3131_v6 = vpop.f32.mrb[47].mxu0 }
 0x181   : > { %v987_v57 = vadd.f32 %v3217_v12, %v826_v7  ;;  %v3220_v53 = vadd.f32 %v3219_v59, %v3218_v62  ;;  %3554 = vmatprep.mubr.msk.bf16.mxu0 %vm1289_vm0, %v1255_v14  ;;  %v4672_v23 = vadd.f32 %v3131_v6, %v3130_v49  ;;  %v4675_v52 = vpop.permute.xlu0 %1129  ;;  %v4677_v35 = vpop.permute.xlu1 %1134  ;;  %v834_v7 = vadd.f32 %v4624_v55, %v527_v30  ;;  %v529_v59 = vld [vmem:[%s4070_s21 + $0x90] sm:$0xff]  ;;  %v530_v55 = vld [vmem:[%s4070_s21 + $0x98] sm:$0xff] }
 0x182   : > { %v842_v2 = vadd.f32 %v4639_v8, %v529_v59  ;;  %v532_v8 = vld [vmem:[%s4070_s21 + $0xa8] sm:$0xff] }
 0x183   : > { %v990_v27 = vadd.f32 %v3220_v53, %v829_v3  ;;  %v1231_v22 = vmul.f32 %v4675_v52, %v987_v57 }
 0x185   : > { %v1232_v20 = vmul.f32 %v4677_v35, %v990_v27  ;;  %v3221_v24 = vpop.f32.mrb[48].mxu1  ;;  %v4686_v57 = vpop.permute.xlu0 %1139 }
 0x186   : > { %v3222_v36 = vpop.f32.mrb[49].mxu1  ;;  %v4688_v27 = vpop.permute.xlu1 %1144 }
 0x187   : > { %v1256_v44 = vpack.c.bf16 %v1232_v20, %v1231_v22  ;;  %v3223_v14 = vadd.f32 %v3222_v36, %v3221_v24  ;;  %v3224_v3 = vpop.f32.mrb[50].mxu1 }
 0x188   : > { %v3225_v12 = vpop.f32.mrb[51].mxu1 }
 0x189   : > { %v995_v62 = vadd.f32 %v3223_v14, %v834_v7  ;;  %v3226_v49 = vadd.f32 %v3225_v12, %v3224_v3  ;;  %3555 = vmatmul.mubr.msk.bf16.gmra.mrb[60].mxu0 %vm1289_vm0, %v1256_v44  ;;  %v845_v7 = vadd.f32 %v4642_v43, %v530_v55  ;;  %v531_v3 = vld [vmem:[%s4070_s21 + $0xa0] sm:$0xff] }
 0x18a   : > { %v850_v43 = vadd.f32 %v4654_v13, %v531_v3  ;;  %v534_v13 = vld [vmem:[%s4070_s21 + $0xb8] sm:$0xff] }
 0x18b   : > { %v998_v6 = vadd.f32 %v3226_v49, %v837_v10  ;;  %v1233_v53 = vmul.f32 %v4686_v57, %v995_v62  ;;  %v4697_v62 = vpop.permute.xlu0 %1149  ;;  %v4699_v49 = vpop.permute.xlu1 %1154 }
 0x18d   : > { %v1234_v30 = vmul.f32 %v4688_v27, %v998_v6  ;;  %v3227_v19 = vpop.f32.mrb[52].mxu1 }
 0x18e   : > { %v3228_v22 = vpop.f32.mrb[53].mxu1 }
 0x18f   : > { %v1257_v20 = vpack.c.bf16 %v1234_v30, %v1233_v53  ;;  %v3229_v24 = vadd.f32 %v3228_v22, %v3227_v19  ;;  %v3230_v36 = vpop.f32.mrb[54].mxu1 }
 0x190   : > { %v3231_v44 = vpop.f32.mrb[55].mxu1 }
 0x191   : > { %v1003_v10 = vadd.f32 %v3229_v24, %v842_v2  ;;  %v3232_v14 = vadd.f32 %v3231_v44, %v3230_v36  ;;  %3558 = vmatprep.mubr.msk.bf16.mxu0 %vm1289_vm0, %v1257_v20  ;;  %v853_v2 = vadd.f32 %v4657_v48, %v532_v8  ;;  %v533_v36 = vld [vmem:[%s4070_s21 + $0xb0] sm:$0xff] }
 0x192   : > { %v858_v48 = vadd.f32 %v4669_v11, %v533_v36 }
 0x193   : > { %v1006_v12 = vadd.f32 %v3232_v14, %v845_v7  ;;  %v1235_v59 = vmul.f32 %v4697_v62, %v1003_v10  ;;  %v4708_v10 = vpop.permute.xlu0 %1159  ;;  %v4710_v14 = vpop.permute.xlu1 %1164 }
 0x195   : > { %v1236_v6 = vmul.f32 %v4699_v49, %v1006_v12  ;;  %v3233_v55 = vpop.f32.mrb[56].mxu1 }
 0x196   : > { %v3234_v53 = vpop.f32.mrb[57].mxu1 }
 0x197   : > { %v1258_v30 = vpack.c.bf16 %v1236_v6, %v1235_v59  ;;  %v3235_v19 = vadd.f32 %v3234_v53, %v3233_v55  ;;  %v3236_v22 = vpop.f32.mrb[58].mxu1 }
 0x198   : > { %v3237_v20 = vpop.f32.mrb[59].mxu1 }
 0x199   : > { %v1011_v7 = vadd.f32 %v3235_v19, %v850_v43  ;;  %v3238_v24 = vadd.f32 %v3237_v20, %v3236_v22  ;;  %3559 = vmatmul.mubr.msk.bf16.gmra.mrb[64].mxu0 %vm1289_vm0, %v1258_v30  ;;  %v861_v43 = vadd.f32 %v4672_v23, %v534_v13  ;;  %v535_v20 = vld [vmem:[%s4070_s21 + $0xc0] sm:$0xff]  ;;  %v536_v23 = vld [vmem:[%s4070_s21 + $0xc8] sm:$0xff] }
 0x19b   : > { %v1014_v44 = vadd.f32 %v3238_v24, %v853_v2  ;;  %v1237_v3 = vmul.f32 %v4708_v10, %v1011_v7  ;;  %v4719_v7 = vpop.permute.xlu0 %1169  ;;  %v4721_v24 = vpop.permute.xlu1 %1174 }
 0x19d   : > { %v1238_v12 = vmul.f32 %v4710_v14, %v1014_v44  ;;  %v3239_v8 = vpop.f32.mrb[60].mxu1 }
 0x19e   : > { %v3240_v59 = vpop.f32.mrb[61].mxu1 }
 0x19f   : > { %v1259_v6 = vpack.c.bf16 %v1238_v12, %v1237_v3  ;;  %v3241_v55 = vadd.f32 %v3240_v59, %v3239_v8  ;;  %v3242_v53 = vpop.f32.mrb[62].mxu1  ;;  %v866_v3 = vadd.f32 %v4541_v41, %v535_v20 }
 0x1a0   : > { %v3243_v30 = vpop.f32.mrb[63].mxu1 }
 0x1a1   : > { %v1019_v2 = vadd.f32 %v3241_v55, %v858_v48  ;;  %v3244_v19 = vadd.f32 %v3243_v30, %v3242_v53  ;;  %3562 = vmatprep.mubr.msk.bf16.mxu0 %vm1289_vm0, %v1259_v6  ;;  %v869_v6 = vadd.f32 %v4543_v16, %v536_v23  ;;  %v537_v30 = vld [vmem:[%s4070_s21 + $0xd0] sm:$0xff] }
 0x1a2   : > { %v874_v16 = vadd.f32 %v4545_v42, %v537_v30 }
 0x1a3   : > { %v1022_v22 = vadd.f32 %v3244_v19, %v861_v43  ;;  %v1239_v11 = vmul.f32 %v4719_v7, %v1019_v2  ;;  %v4730_v2 = vpop.permute.xlu0 %1179  ;;  %v4732_v19 = vpop.permute.xlu1 %1184 }
 0x1a5   : > { %v1240_v36 = vmul.f32 %v4721_v24, %v1022_v22  ;;  %v3245_v44 = vpop.f32.mrb[64].mxu1 }
 0x1a6   : > { %v3246_v13 = vpop.f32.mrb[65].mxu1 }
 0x1a7   : > { %v1260_v12 = vpack.c.bf16 %v1240_v36, %v1239_v11  ;;  %v3247_v48 = vadd.f32 %v3246_v13, %v3245_v44  ;;  %v3248_v8 = vpop.f32.mrb[66].mxu1  ;;  %v538_v11 = vld [vmem:[%s4070_s21 + $0xd8] sm:$0xff] }
 0x1a8   : > { %v3249_v59 = vpop.f32.mrb[67].mxu1 }
 0x1a9   : > { %v1027_v43 = vadd.f32 %v3247_v48, %v866_v3  ;;  %v3250_v55 = vadd.f32 %v3249_v59, %v3248_v8  ;;  %3563 = vmatmul.mubr.msk.bf16.gmra.mrb[68].mxu0 %vm1289_vm0, %v1260_v12  ;;  %v877_v12 = vadd.f32 %v4547_v18, %v538_v11 }
 0x1ab   : > { %v1030_v53 = vadd.f32 %v3250_v55, %v869_v6  ;;  %v1241_v41 = vmul.f32 %v4730_v2, %v1027_v43  ;;  %v539_v6 = vld [vmem:[%s4070_s21 + $0xe0] sm:$0xff]  ;;  %v4741_v43 = vpop.permute.xlu0 %1189  ;;  %v4743_v55 = vpop.permute.xlu1 %1194 }
 0x1ac   : > { %v882_v18 = vadd.f32 %v4549_v21, %v539_v6 }
 0x1ad   : > { %v1242_v22 = vmul.f32 %v4732_v19, %v1030_v53  ;;  %v3251_v20 = vpop.f32.mrb[68].mxu1 }
 0x1ae   : > { %v3252_v36 = vpop.f32.mrb[69].mxu1 }
 0x1af   : > { %v1261_v44 = vpack.c.bf16 %v1242_v22, %v1241_v41  ;;  %v3253_v23 = vadd.f32 %v3252_v36, %v3251_v20  ;;  %v3254_v13 = vpop.f32.mrb[70].mxu1  ;;  %v540_v41 = vld [vmem:[%s4070_s21 + $0xe8] sm:$0xff] }
 0x1b0   : > { %v3255_v3 = vpop.f32.mrb[71].mxu1 }
 0x1b1   : > { %v1035_v48 = vadd.f32 %v3253_v23, %v874_v16  ;;  %v3256_v8 = vadd.f32 %v3255_v3, %v3254_v13  ;;  %3566 = vmatprep.mubr.msk.bf16.mxu0 %vm1289_vm0, %v1261_v44  ;;  %v885_v44 = vadd.f32 %v4553_v15, %v540_v41 }
 0x1b3   : > { %v1038_v59 = vadd.f32 %v3256_v8, %v877_v12  ;;  %v1243_v42 = vmul.f32 %v4741_v43, %v1035_v48  ;;  %v541_v12 = vld [vmem:[%s4070_s21 + $0xf0] sm:$0xff]  ;;  %v4752_v48 = vpop.permute.xlu0 %1199  ;;  %v4754_v8 = vpop.permute.xlu1 %1204 }
 0x1b5   : > { %v1244_v53 = vmul.f32 %v4743_v55, %v1038_v59  ;;  %v3257_v30 = vpop.f32.mrb[72].mxu1 }
 0x1b6   : > { %v3258_v22 = vpop.f32.mrb[73].mxu1 }
 0x1b7   : > { %v1262_v20 = vpack.c.bf16 %v1244_v53, %v1243_v42  ;;  %v3259_v11 = vadd.f32 %v3258_v22, %v3257_v30  ;;  %v3260_v36 = vpop.f32.mrb[74].mxu1  ;;  %v542_v42 = vld [vmem:[%s4070_s21 + $0xf8] sm:$0xff]  ;;  %v890_v30 = vadd.f32 %v4557_v25, %v541_v12  ;;  %v4762_v25 = vpop.permute.xlu0 %1209  ;;  %s1612_s21 = sshra.s32 %s3990_s8, 4 }
 0x1b8   : > { %v3261_v16 = vpop.f32.mrb[75].mxu1  ;;  %s3032_s19 = sshll.u32 %s1612_s21, 3 }
 0x1b9   : > { %v1043_v23 = vadd.f32 %v3259_v11, %v882_v18  ;;  %v3262_v13 = vadd.f32 %v3261_v16, %v3260_v36  ;;  %3567 = vmatmul.mubr.msk.bf16.gmra.mrb[72].mxu0 %vm1289_vm0, %v1262_v20  ;;  %v893_v20 = vadd.f32 %v4561_v51, %v542_v42  ;;  %s4813_s28 = scalar_lea.vmem [#allocation2], %s3032_s19 }
 0x1bb   : > { %v1046_v3 = vadd.f32 %v3262_v13, %v885_v44  ;;  %v1245_v59 = vmul.f32 %v4752_v48, %v1043_v23  ;;  %v4764_v44 = vpop.permute.xlu1 %1214 }
 0x1bd   : > { %v1246_v21 = vmul.f32 %v4754_v8, %v1046_v3  ;;  %v3263_v6 = vpop.f32.mrb[76].mxu1  ;;  %v3913_v3 = vmov 0.0  }
 0x1be   : > { %v3264_v53 = vpop.f32.mrb[77].mxu1  ;;  %1632 = vst [vmem:[%s4128_s7] sm:$0xff] %v3913_v3  ;;  %1633 = vst [vmem:[%s4128_s7 + $0x8] sm:$0xff] %v3913_v3 }
 0x1bf   : > { %v1263_v15 = vpack.c.bf16 %v1246_v21, %v1245_v59  ;;  %v3265_v41 = vadd.f32 %v3264_v53, %v3263_v6  ;;  %v3266_v22 = vpop.f32.mrb[78].mxu1  ;;  %1634 = vst [vmem:[%s4128_s7 + $0x10] sm:$0xff] %v3913_v3  ;;  %1635 = vst [vmem:[%s4128_s7 + $0x18] sm:$0xff] %v3913_v3 }
 0x1c0   : > { %v3267_v18 = vpop.f32.mrb[79].mxu1  ;;  %1636 = vst [vmem:[%s4128_s7 + $0x20] sm:$0xff] %v3913_v3  ;;  %1637 = vst [vmem:[%s4128_s7 + $0x28] sm:$0xff] %v3913_v3 }
 0x1c1   : > { %v1051_v11 = vadd.f32 %v3265_v41, %v890_v30  ;;  %v3268_v36 = vadd.f32 %v3267_v18, %v3266_v22  ;;  %3570 = vmatprep.mubr.msk.bf16.mxu0 %vm1289_vm0, %v1263_v15  ;;  %1638 = vst [vmem:[%s4128_s7 + $0x30] sm:$0xff] %v3913_v3  ;;  %1639 = vst [vmem:[%s4128_s7 + $0x38] sm:$0xff] %v3913_v3 }
 0x1c2   : > { %1640 = vst [vmem:[%s4128_s7 + $0x40] sm:$0xff] %v3913_v3  ;;  %1641 = vst [vmem:[%s4128_s7 + $0x48] sm:$0xff] %v3913_v3 }
 0x1c3   : > { %v1054_v16 = vadd.f32 %v3268_v36, %v893_v20  ;;  %v1247_v23 = vmul.f32 %v4762_v25, %v1051_v11  ;;  %1642 = vst [vmem:[%s4128_s7 + $0x50] sm:$0xff] %v3913_v3  ;;  %1643 = vst [vmem:[%s4128_s7 + $0x58] sm:$0xff] %v3913_v3 }
 0x1c4   : > { %1644 = vst [vmem:[%s4128_s7 + $0x60] sm:$0xff] %v3913_v3  ;;  %1645 = vst [vmem:[%s4128_s7 + $0x68] sm:$0xff] %v3913_v3 }
 0x1c5   : > { %v1248_v51 = vmul.f32 %v4764_v44, %v1054_v16  ;;  %1646 = vst [vmem:[%s4128_s7 + $0x70] sm:$0xff] %v3913_v3  ;;  %1647 = vst [vmem:[%s4128_s7 + $0x78] sm:$0xff] %v3913_v3 }
 0x1c6   : > { %1648 = vst [vmem:[%s4128_s7 + $0x80] sm:$0xff] %v3913_v3  ;;  %1649 = vst [vmem:[%s4128_s7 + $0x88] sm:$0xff] %v3913_v3 }
 0x1c7   : > { %v1264_v13 = vpack.c.bf16 %v1248_v51, %v1247_v23  ;;  %1650 = vst [vmem:[%s4128_s7 + $0x90] sm:$0xff] %v3913_v3  ;;  %1651 = vst [vmem:[%s4128_s7 + $0x98] sm:$0xff] %v3913_v3 }
 0x1c8   : > { %1652 = vst [vmem:[%s4128_s7 + $0xa0] sm:$0xff] %v3913_v3  ;;  %1653 = vst [vmem:[%s4128_s7 + $0xa8] sm:$0xff] %v3913_v3 }
 0x1c9   : > { %3571 = vmatmul.mubr.msk.bf16.gmra.mrb[76].mxu0 %vm1289_vm0, %v1264_v13  ;;  %1654 = vst [vmem:[%s4128_s7 + $0xb0] sm:$0xff] %v3913_v3  ;;  %1655 = vst [vmem:[%s4128_s7 + $0xb8] sm:$0xff] %v3913_v3 }
 0x1ca   : > { %1656 = vst [vmem:[%s4128_s7 + $0xc0] sm:$0xff] %v3913_v3  ;;  %1657 = vst [vmem:[%s4128_s7 + $0xc8] sm:$0xff] %v3913_v3 }
 0x1cb   : > { %1658 = vst [vmem:[%s4128_s7 + $0xd0] sm:$0xff] %v3913_v3  ;;  %1659 = vst [vmem:[%s4128_s7 + $0xd8] sm:$0xff] %v3913_v3 }
 0x1cc   : > { %1660 = vst [vmem:[%s4128_s7 + $0xe0] sm:$0xff] %v3913_v3  ;;  %1661 = vst [vmem:[%s4128_s7 + $0xe8] sm:$0xff] %v3913_v3 }
 0x1cd   : > { %1662 = vst [vmem:[%s4128_s7 + $0xf0] sm:$0xff] %v3913_v3  ;;  %1663 = vst [vmem:[%s4128_s7 + $0xf8] sm:$0xff] %v3913_v3 }
 0x22c   : > { %v3544_v12 = vpop.f32.mrb[48].mxu0 }
 0x22d   : > { %v1501_v59 = vmax.f32 %v3544_v12, 0.0  ;;  %v1372_v21 = vpop.f32.mrb[49].mxu0 }
 0x22e   : > { %v1499_v6 = vmax.f32 %v1372_v21, 0.0  ;;  %v3545_v42 = vpop.f32.mrb[50].mxu0 }
 0x22f   : > { %v1533_v53 = vmul.f32 %v1501_v59, %v4576_v63  ;;  %v1502_v30 = vmax.f32 %v3545_v42, 0.0  ;;  %v1375_v15 = vpop.f32.mrb[51].mxu0 }
 0x230   : > { %v1531_v41 = vmul.f32 %v1499_v6, %v4567_v29  ;;  %v1500_v22 = vmax.f32 %v1375_v15, 0.0 }
 0x231   : > { %1566 = vst [vmem:[%s4805_s20 + $0x10] sm:$0xff] %v1533_v53  ;;  %v1534_v18 = vmul.f32 %v1502_v30, %v4587_v61 }
 0x232   : > { %1564 = vst [vmem:[%s4805_s20] sm:$0xff] %v1531_v41  ;;  %v1532_v20 = vmul.f32 %v1500_v22, %v4573_v56 }
 0x233   : > { %1567 = vst [vmem:[%s4805_s20 + $0x18] sm:$0xff] %v1534_v18  ;;  %v1597_v63 = vpack.c.bf16 %v1534_v18, %v1533_v53 }
 0x234   : > { %1565 = vst [vmem:[%s4805_s20 + $0x8] sm:$0xff] %v1532_v20  ;;  %v1596_v11 = vpack.c.bf16 %v1532_v20, %v1531_v41 }
 0x235   : > { %1617 = vst [vmem:[%s4813_s28 + $0x8] sm:$0xff] %v1597_v63 }
 0x236   : > { %1616 = vst [vmem:[%s4813_s28] sm:$0xff] %v1596_v11 }
 0x23c   : > { %v3548_v29 = vpop.f32.mrb[52].mxu0 }
 0x23d   : > { %v1505_v36 = vmax.f32 %v3548_v29, 0.0  ;;  %v1388_v61 = vpop.f32.mrb[53].mxu0 }
 0x23e   : > { %v1503_v16 = vmax.f32 %v1388_v61, 0.0  ;;  %v3549_v56 = vpop.f32.mrb[54].mxu0 }
 0x23f   : > { %v1537_v23 = vmul.f32 %v1505_v36, %v4615_v4  ;;  %v1506_v51 = vmax.f32 %v3549_v56, 0.0  ;;  %v1391_v13 = vpop.f32.mrb[55].mxu0 }
 0x240   : > { %v1535_v3 = vmul.f32 %v1503_v16, %v4600_v26  ;;  %v1504_v12 = vmax.f32 %v1391_v13, 0.0 }
 0x241   : > { %1570 = vst [vmem:[%s4805_s20 + $0x30] sm:$0xff] %v1537_v23  ;;  %v1538_v59 = vmul.f32 %v1506_v51, %v4617_v34 }
 0x242   : > { %1568 = vst [vmem:[%s4805_s20 + $0x20] sm:$0xff] %v1535_v3  ;;  %v1536_v21 = vmul.f32 %v1504_v12, %v4602_v17 }
 0x243   : > { %1571 = vst [vmem:[%s4805_s20 + $0x38] sm:$0xff] %v1538_v59  ;;  %v1599_v6 = vpack.c.bf16 %v1538_v59, %v1537_v23 }
 0x244   : > { %1569 = vst [vmem:[%s4805_s20 + $0x28] sm:$0xff] %v1536_v21  ;;  %v1598_v42 = vpack.c.bf16 %v1536_v21, %v1535_v3 }
 0x245   : > { %1619 = vst [vmem:[%s4813_s28 + $0x18] sm:$0xff] %v1599_v6 }
 0x246   : > { %1618 = vst [vmem:[%s4813_s28 + $0x10] sm:$0xff] %v1598_v42 }
 0x24c   : > { %v3552_v4 = vpop.f32.mrb[56].mxu0 }
 0x24d   : > { %v1509_v53 = vmax.f32 %v3552_v4, 0.0  ;;  %v1404_v26 = vpop.f32.mrb[57].mxu0 }
 0x24e   : > { %v1507_v30 = vmax.f32 %v1404_v26, 0.0  ;;  %v3553_v34 = vpop.f32.mrb[58].mxu0 }
 0x24f   : > { %v1541_v15 = vmul.f32 %v1509_v53, %v4645_v54  ;;  %v1510_v17 = vmax.f32 %v3553_v34, 0.0  ;;  %v1407_v41 = vpop.f32.mrb[59].mxu0 }
 0x250   : > { %v1539_v22 = vmul.f32 %v1507_v30, %v4630_v58  ;;  %v1508_v18 = vmax.f32 %v1407_v41, 0.0 }
 0x251   : > { %1574 = vst [vmem:[%s4805_s20 + $0x50] sm:$0xff] %v1541_v15  ;;  %v1542_v20 = vmul.f32 %v1510_v17, %v4647_v37 }
 0x252   : > { %1572 = vst [vmem:[%s4805_s20 + $0x40] sm:$0xff] %v1539_v22  ;;  %v1540_v63 = vmul.f32 %v1508_v18, %v4632_v60 }
 0x253   : > { %1575 = vst [vmem:[%s4805_s20 + $0x58] sm:$0xff] %v1542_v20  ;;  %v1601_v11 = vpack.c.bf16 %v1542_v20, %v1541_v15 }
 0x254   : > { %1573 = vst [vmem:[%s4805_s20 + $0x48] sm:$0xff] %v1540_v63  ;;  %v1600_v29 = vpack.c.bf16 %v1540_v63, %v1539_v22 }
 0x255   : > { %1621 = vst [vmem:[%s4813_s28 + $0x28] sm:$0xff] %v1601_v11 }
 0x256   : > { %1620 = vst [vmem:[%s4813_s28 + $0x20] sm:$0xff] %v1600_v29 }
 0x25c   : > { %v3556_v54 = vpop.f32.mrb[60].mxu0 }
 0x25d   : > { %v1513_v36 = vmax.f32 %v3556_v54, 0.0  ;;  %v1420_v58 = vpop.f32.mrb[61].mxu0 }
 0x25e   : > { %v1511_v61 = vmax.f32 %v1420_v58, 0.0  ;;  %v3557_v37 = vpop.f32.mrb[62].mxu0 }
 0x25f   : > { %v1545_v16 = vmul.f32 %v1513_v36, %v4675_v52  ;;  %v1514_v60 = vmax.f32 %v3557_v37, 0.0  ;;  %v1423_v56 = vpop.f32.mrb[63].mxu0 }
 0x260   : > { %v1543_v23 = vmul.f32 %v1511_v61, %v4660_v5  ;;  %v1512_v51 = vmax.f32 %v1423_v56, 0.0 }
 0x261   : > { %1578 = vst [vmem:[%s4805_s20 + $0x70] sm:$0xff] %v1545_v16  ;;  %v1546_v13 = vmul.f32 %v1514_v60, %v4677_v35 }
 0x262   : > { %1576 = vst [vmem:[%s4805_s20 + $0x60] sm:$0xff] %v1543_v23  ;;  %v1544_v3 = vmul.f32 %v1512_v51, %v4662_v50 }
 0x263   : > { %1579 = vst [vmem:[%s4805_s20 + $0x78] sm:$0xff] %v1546_v13  ;;  %v1603_v12 = vpack.c.bf16 %v1546_v13, %v1545_v16 }
 0x264   : > { %1577 = vst [vmem:[%s4805_s20 + $0x68] sm:$0xff] %v1544_v3  ;;  %v1602_v59 = vpack.c.bf16 %v1544_v3, %v1543_v23 }
 0x265   : > { %1623 = vst [vmem:[%s4813_s28 + $0x38] sm:$0xff] %v1603_v12 }
 0x266   : > { %1622 = vst [vmem:[%s4813_s28 + $0x30] sm:$0xff] %v1602_v59 }
 0x26c   : > { %v3560_v52 = vpop.f32.mrb[64].mxu0 }
 0x26d   : > { %v1517_v21 = vmax.f32 %v3560_v52, 0.0  ;;  %v1436_v5 = vpop.f32.mrb[65].mxu0 }
 0x26e   : > { %v1515_v6 = vmax.f32 %v1436_v5, 0.0  ;;  %v3561_v35 = vpop.f32.mrb[66].mxu0 }
 0x26f   : > { %v1549_v42 = vmul.f32 %v1517_v21, %v4697_v62  ;;  %v1518_v50 = vmax.f32 %v3561_v35, 0.0  ;;  %v1439_v4 = vpop.f32.mrb[67].mxu0 }
 0x270   : > { %v1547_v53 = vmul.f32 %v1515_v6, %v4686_v57  ;;  %v1516_v26 = vmax.f32 %v1439_v4, 0.0 }
 0x271   : > { %1582 = vst [vmem:[%s4805_s20 + $0x90] sm:$0xff] %v1549_v42  ;;  %v1550_v30 = vmul.f32 %v1518_v50, %v4699_v49 }
 0x272   : > { %1580 = vst [vmem:[%s4805_s20 + $0x80] sm:$0xff] %v1547_v53  ;;  %v1548_v34 = vmul.f32 %v1516_v26, %v4688_v27 }
 0x273   : > { %1583 = vst [vmem:[%s4805_s20 + $0x98] sm:$0xff] %v1550_v30  ;;  %v1605_v15 = vpack.c.bf16 %v1550_v30, %v1549_v42 }
 0x274   : > { %1581 = vst [vmem:[%s4805_s20 + $0x88] sm:$0xff] %v1548_v34  ;;  %v1604_v17 = vpack.c.bf16 %v1548_v34, %v1547_v53 }
 0x275   : > { %1625 = vst [vmem:[%s4813_s28 + $0x48] sm:$0xff] %v1605_v15 }
 0x276   : > { %1624 = vst [vmem:[%s4813_s28 + $0x40] sm:$0xff] %v1604_v17 }
 0x27c   : > { %v3564_v62 = vpop.f32.mrb[68].mxu0 }
 0x27d   : > { %v1521_v41 = vmax.f32 %v3564_v62, 0.0  ;;  %v1452_v57 = vpop.f32.mrb[69].mxu0 }
 0x27e   : > { %v1519_v22 = vmax.f32 %v1452_v57, 0.0  ;;  %v3565_v49 = vpop.f32.mrb[70].mxu0 }
 0x27f   : > { %v1553_v18 = vmul.f32 %v1521_v41, %v4719_v7  ;;  %v1522_v27 = vmax.f32 %v3565_v49, 0.0  ;;  %v1455_v20 = vpop.f32.mrb[71].mxu0 }
 0x280   : > { %v1551_v63 = vmul.f32 %v1519_v22, %v4708_v10  ;;  %v1520_v11 = vmax.f32 %v1455_v20, 0.0 }
 0x281   : > { %1586 = vst [vmem:[%s4805_s20 + $0xb0] sm:$0xff] %v1553_v18  ;;  %v1554_v29 = vmul.f32 %v1522_v27, %v4721_v24 }
 0x282   : > { %1584 = vst [vmem:[%s4805_s20 + $0xa0] sm:$0xff] %v1551_v63  ;;  %v1552_v54 = vmul.f32 %v1520_v11, %v4710_v14 }
 0x283   : > { %1587 = vst [vmem:[%s4805_s20 + $0xb8] sm:$0xff] %v1554_v29  ;;  %v1607_v36 = vpack.c.bf16 %v1554_v29, %v1553_v18 }
 0x284   : > { %1585 = vst [vmem:[%s4805_s20 + $0xa8] sm:$0xff] %v1552_v54  ;;  %v1606_v58 = vpack.c.bf16 %v1552_v54, %v1551_v63 }
 0x285   : > { %1627 = vst [vmem:[%s4813_s28 + $0x58] sm:$0xff] %v1607_v36 }
 0x286   : > { %1626 = vst [vmem:[%s4813_s28 + $0x50] sm:$0xff] %v1606_v58 }
 0x28c   : > { %v3568_v7 = vpop.f32.mrb[72].mxu0 }
 0x28d   : > { %v1525_v61 = vmax.f32 %v3568_v7, 0.0  ;;  %v1468_v10 = vpop.f32.mrb[73].mxu0 }
 0x28e   : > { %v1523_v37 = vmax.f32 %v1468_v10, 0.0  ;;  %v3569_v24 = vpop.f32.mrb[74].mxu0 }
 0x28f   : > { %v1557_v16 = vmul.f32 %v1525_v61, %v4741_v43  ;;  %v1526_v14 = vmax.f32 %v3569_v24, 0.0  ;;  %v1471_v60 = vpop.f32.mrb[75].mxu0 }
 0x290   : > { %v1555_v56 = vmul.f32 %v1523_v37, %v4730_v2  ;;  %v1524_v23 = vmax.f32 %v1471_v60, 0.0 }
 0x291   : > { %1590 = vst [vmem:[%s4805_s20 + $0xd0] sm:$0xff] %v1557_v16  ;;  %v1558_v51 = vmul.f32 %v1526_v14, %v4743_v55 }
 0x292   : > { %1588 = vst [vmem:[%s4805_s20 + $0xc0] sm:$0xff] %v1555_v56  ;;  %v1556_v13 = vmul.f32 %v1524_v23, %v4732_v19 }
 0x293   : > { %1591 = vst [vmem:[%s4805_s20 + $0xd8] sm:$0xff] %v1558_v51  ;;  %v1609_v3 = vpack.c.bf16 %v1558_v51, %v1557_v16 }
 0x294   : > { %1589 = vst [vmem:[%s4805_s20 + $0xc8] sm:$0xff] %v1556_v13  ;;  %v1608_v12 = vpack.c.bf16 %v1556_v13, %v1555_v56 }
 0x295   : > { %1629 = vst [vmem:[%s4813_s28 + $0x68] sm:$0xff] %v1609_v3 }
 0x296   : > { %1628 = vst [vmem:[%s4813_s28 + $0x60] sm:$0xff] %v1608_v12 }
 0x29c   : > { %v3572_v43 = vpop.f32.mrb[76].mxu0 }
 0x29d   : > { %v1529_v59 = vmax.f32 %v3572_v43, 0.0  ;;  %v1484_v2 = vpop.f32.mrb[77].mxu0 }
 0x29e   : > { %v1527_v52 = vmax.f32 %v1484_v2, 0.0  ;;  %v3573_v55 = vpop.f32.mrb[78].mxu0 }
 0x29f   : > { %v1561_v21 = vmul.f32 %v1529_v59, %v4762_v25  ;;  %v1530_v19 = vmax.f32 %v3573_v55, 0.0  ;;  %v1487_v5 = vpop.f32.mrb[79].mxu0 }
 0x2a0   : > { %v1559_v6 = vmul.f32 %v1527_v52, %v4752_v48  ;;  %v1528_v35 = vmax.f32 %v1487_v5, 0.0 }
 0x2a1   : > { %1594 = vst [vmem:[%s4805_s20 + $0xf0] sm:$0xff] %v1561_v21  ;;  %v1562_v42 = vmul.f32 %v1530_v19, %v4764_v44 }
 0x2a2   : > { %1592 = vst [vmem:[%s4805_s20 + $0xe0] sm:$0xff] %v1559_v6  ;;  %v1560_v50 = vmul.f32 %v1528_v35, %v4754_v8 }
 0x2a3   : > { %1595 = vst [vmem:[%s4805_s20 + $0xf8] sm:$0xff] %v1562_v42  ;;  %v1611_v4 = vpack.c.bf16 %v1562_v42, %v1561_v21 }
 0x2a4   : > { %1593 = vst [vmem:[%s4805_s20 + $0xe8] sm:$0xff] %v1560_v50  ;;  %v1610_v53 = vpack.c.bf16 %v1560_v50, %v1559_v6 }
 0x2a5   : > { %1631 = vst [vmem:[%s4813_s28 + $0x78] sm:$0xff] %v1611_v4 }
 0x2a6   : > { %1630 = vst [vmem:[%s4813_s28 + $0x70] sm:$0xff] %v1610_v53 }
 0x2a7 PF: > { %p3033_p9 = scmp.ne.s32.totalorder %s3898_s22, 1 }
 0x2a8   : > { %v5780_v30 = vunpack.c.l.s8.bf16 (!%p3033_p9), %v4231_v28  ;;  %v5781_v44 = vunpack.c.l.s8.bf16 (!%p3033_p9), %v4004_v1  ;;  %v3914_v27 = vmov (!%p3033_p9), 0   ;;  %v5782_v54 = vunpack.c.l.s8.bf16 (!%p3033_p9), %v4224_v9  ;;  %v5786_v61 = vld [vmem:[#allocation17_spill] sm:$0xff] (!%p3033_p9)  ;;  %v5793_v14 = vld [vmem:[#allocation18_spill] sm:$0xff] (!%p3033_p9)  ;;  %v5804_v55 = vld [vmem:[#allocation23_spill] sm:$0xff] (!%p3033_p9)  ;;  %s5097_s28 = scalar_lea.vmem (!%p3033_p9), [#allocation3], %s3990_s8 }
 0x2a9   : > { %1667 = sbr.rel (%p3033_p9) target bundleno = 1628 (0x65c), region = 52  ;;  %3734 = vset.pattern.permute.xlu0 (!%p3033_p9), %v3914_v27  ;;  %3735 = vset.pattern.permute.xlu1 (!%p3033_p9), %v3914_v27  ;;  %v5788_v10 = vunpack.c.h.s8.bf16 (!%p3033_p9), %v4001_v0  ;;  %v5796_v56 = vld [vmem:[#allocation21_spill] sm:$0xff] (!%p3033_p9)  ;;  %v5799_v13 = vld [vmem:[#allocation6_spill] sm:$0xff] (!%p3033_p9)  ;;  %v5805_v5 = vld [vmem:[#allocation24_spill] sm:$0xff] (!%p3033_p9) }
 0x2aa   : > { %1861 = vmatprep.mubr.bf16.mxu1 (!%p3033_p9), %v5780_v30  ;;  %1765 = vmatprep.mubr.bf16.mxu0 (!%p3033_p9), %v5781_v44  ;;  %v5800_v3 = vunpack.c.l.s8.bf16 (!%p3033_p9), %v5799_v13  ;;  %v5803_v52 = vld [vmem:[#allocation22_spill] sm:$0xff] (!%p3033_p9)  ;;  %v5806_v6 = vld [vmem:[#allocation25_spill] sm:$0xff] (!%p3033_p9)  ;;  %v5808_v42 = vunpack.c.h.s8.bf16 (!%p3033_p9), %v5799_v13  ;;  %v5814_v30 = vld [vmem:[#allocation27_spill] sm:$0xff] (!%p3033_p9) }
 0x2ab   : > { %2057 = vperm.xlu0 (!%p3033_p9), %3734, %v4073_v31   ;;  %2067 = vperm.xlu1 (!%p3033_p9), %3735, %v4079_v33   ;;  %v5797_v23 = vld [vmem:[#allocation51_spill] sm:$0xff] (!%p3033_p9)  ;;  %v5809_v50 = vld [vmem:[#allocation5_spill] sm:$0xff] (!%p3033_p9)  ;;  %v5815_v44 = vld [vmem:[#allocation28_spill] sm:$0xff] (!%p3033_p9) }
 0x2ac   : > { %v5798_v51 = vunpack.c.l.s8.bf16 (!%p3033_p9), %v5797_v23  ;;  %v5807_v35 = vunpack.c.h.s8.bf16 (!%p3033_p9), %v5797_v23  ;;  %v5810_v4 = vunpack.c.l.s8.bf16 (!%p3033_p9), %v5809_v50  ;;  %v5826_v27 = vld [vmem:[#allocation33_spill] sm:$0xff] (!%p3033_p9) }
 0x2ad   : > { %v1676_v25 = vld [vmem:[#allocation2 + $0x40] sm:$0xff] (!%p3033_p9)  ;;  %v1677_v48 = vld [vmem:[#allocation2 + $0x48] sm:$0xff] (!%p3033_p9)  ;;  %v1678_v34 = vld [vmem:[#allocation2 + $0x50] sm:$0xff] (!%p3033_p9) }
 0x2ae   : > { %v1668_v26 = vld [vmem:[#allocation2] sm:$0xff] (!%p3033_p9)  ;;  %3638 = vmatprep.subr.bf16.mxu1 (!%p3033_p9), %v1676_v25  ;;  %3288 = vmatprep.subr.bf16.mxu0 (!%p3033_p9), %v1676_v25  ;;  %v1669_v8 = vld [vmem:[#allocation2 + $0x8] sm:$0xff] (!%p3033_p9)  ;;  %v1670_v15 = vld [vmem:[#allocation2 + $0x10] sm:$0xff] (!%p3033_p9) }
 0x2af   : > { %3646 = vmatpush3.bf16.msra.mxu1 (!%p3033_p9), %v1668_v26  ;;  %3289 = vmatpush3.bf16.msra.mxu0 (!%p3033_p9), %v1668_v26  ;;  %v1679_v17 = vld [vmem:[#allocation2 + $0x58] sm:$0xff] (!%p3033_p9)  ;;  %v1680_v41 = vld [vmem:[#allocation2 + $0x60] sm:$0xff] (!%p3033_p9)  ;;  %v1681_v22 = vld [vmem:[#allocation2 + $0x68] sm:$0xff] (!%p3033_p9) }
 0x2b0   : > { %3639 = vmatprep.subr.bf16.mxu1 %v1677_v48  ;;  %3290 = vmatprep.subr.bf16.mxu0 %v1677_v48  ;;  %v1671_v62 = vld [vmem:[#allocation2 + $0x18] sm:$0xff]  ;;  %v1672_v57 = vld [vmem:[#allocation2 + $0x20] sm:$0xff]  ;;  %v1673_v49 = vld [vmem:[#allocation2 + $0x28] sm:$0xff] }
 0x2b1   : > { %v1682_v18 = vld [vmem:[#allocation2 + $0x70] sm:$0xff]  ;;  %v1683_v63 = vld [vmem:[#allocation2 + $0x78] sm:$0xff]  ;;  %2062 = vperm.xlu0 %3734, %v4076_v32   ;;  %2072 = vperm.xlu1 %3735, %v4089_v38   ;;  %v1692_v29 = vld [vmem:[#allocation2 + $0xc0] sm:$0xff]  ;;  %v5783_v32 = vunpack.c.l.s8.bf16 %v4001_v0  ;;  %v5784_v38 = vunpack.c.h.s8.bf16 %v4231_v28  ;;  %v5787_v28 = vunpack.c.h.s8.bf16 %v4224_v9 }
 0x2b2   : > { %v1674_v20 = vld [vmem:[#allocation2 + $0x30] sm:$0xff]  ;;  %v1675_v11 = vld [vmem:[#allocation2 + $0x38] sm:$0xff]  ;;  %v1684_v31 = vld [vmem:[#allocation2 + $0x80] sm:$0xff] }
 0x2b3   : > { %3647 = vmatpush3.bf16.msra.mxu1 %v1669_v8  ;;  %3291 = vmatpush3.bf16.msra.mxu0 %v1669_v8  ;;  %v1693_v33 = vld [vmem:[#allocation2 + $0xc8] sm:$0xff]  ;;  %v1686_v58 = vld [vmem:[#allocation2 + $0x90] sm:$0xff]  ;;  %v1695_v7 = vld [vmem:[#allocation2 + $0xd8] sm:$0xff] }
 0x2b4   : > { %3640 = vmatprep.subr.bf16.mxu1 %v1678_v34  ;;  %3292 = vmatprep.subr.bf16.mxu0 %v1678_v34  ;;  %v1685_v36 = vld [vmem:[#allocation2 + $0x88] sm:$0xff]  ;;  %v1696_v16 = vld [vmem:[#allocation2 + $0xe0] sm:$0xff]  ;;  %v1698_v2 = vld [vmem:[#allocation2 + $0xf0] sm:$0xff] }
 0x2b5   : > { %2077 = vperm.xlu0 %3734, %v4092_v39   ;;  %2082 = vperm.xlu1 %3735, %v4095_v40   ;;  %v5785_v39 = vunpack.c.h.s8.bf16 %v4004_v1  ;;  %v1694_v40 = vld [vmem:[#allocation2 + $0xd0] sm:$0xff]  ;;  %v5789_v1 = vld [vmem:[#allocation52_spill] sm:$0xff]  ;;  %v1697_v60 = vld [vmem:[#allocation2 + $0xe8] sm:$0xff] }
 0x2b6   : > { %v5790_v37 = vunpack.c.l.s8.bf16 %v5789_v1  ;;  %v1688_v9 = vld [vmem:[#allocation2 + $0xa0] sm:$0xff]  ;;  %v5801_v12 = vunpack.c.h.s8.bf16 %v5789_v1  ;;  %v1689_v43 = vld [vmem:[#allocation2 + $0xa8] sm:$0xff]  ;;  %v1690_v21 = vld [vmem:[#allocation2 + $0xb0] sm:$0xff] }
 0x2b7   : > { %3648 = vmatpush3.bf16.msra.mxu1 %v1670_v15  ;;  %3293 = vmatpush3.bf16.msra.mxu0 %v1670_v15  ;;  %v5795_v0 = vld [vmem:[#allocation20_spill] sm:$0xff]  ;;  %v1699_v19 = vld [vmem:[#allocation2 + $0xf8] sm:$0xff]  ;;  %v5813_v48 = vld [vmem:[#allocation26_spill] sm:$0xff] }
 0x2b8   : > { %3641 = vmatprep.subr.bf16.mxu1 %v1679_v17  ;;  %3294 = vmatprep.subr.bf16.mxu0 %v1679_v17  ;;  %v1691_v53 = vld [vmem:[#allocation2 + $0xb8] sm:$0xff]  ;;  %v5816_v8 = vld [vmem:[#allocation29_spill] sm:$0xff]  ;;  %v5817_v34 = vld [vmem:[#allocation4_spill] sm:$0xff] }
 0x2b9   : > { %2087 = vperm.xlu0 %3734, %v4102_v45   ;;  %2092 = vperm.xlu1 %3735, %v4105_v46   ;;  %v1687_v45 = vld [vmem:[#allocation2 + $0x98] sm:$0xff]  ;;  %v5818_v15 = vunpack.c.l.s8.bf16 %v5817_v34  ;;  %v5819_v17 = vld [vmem:[#allocation10_spill] sm:$0xff] }
 0x2ba   : > { %v5791_v46 = vld [vmem:[#allocation7_spill] sm:$0xff] }
 0x2bb   : > { %3649 = vmatpush3.bf16.msra.mxu1 %v1671_v62  ;;  %3295 = vmatpush3.bf16.msra.mxu0 %v1671_v62  ;;  %v5792_v24 = vunpack.c.l.s8.bf16 %v5791_v46  ;;  %v5802_v59 = vunpack.c.h.s8.bf16 %v5791_v46  ;;  %v5811_v25 = vld [vmem:[#allocation11_spill] sm:$0xff]  ;;  %v5820_v62 = vunpack.c.l.s8.bf16 %v5819_v17  ;;  %v5847_v46 = vld [vmem:[#allocation13_spill] sm:$0xff] }
 0x2bc   : > { %3642 = vmatprep.subr.bf16.mxu1 %v1680_v41  ;;  %3296 = vmatprep.subr.bf16.mxu0 %v1680_v41  ;;  %v5812_v26 = vunpack.c.l.s8.bf16 %v5811_v25  ;;  %v5821_v41 = vunpack.c.h.s8.bf16 %v5809_v50  ;;  %v5844_v1 = vld [vmem:[#allocation39_spill] sm:$0xff] }
 0x2bd   : > { %2097 = vperm.xlu0 %3734, %v4108_v47   ;;  %2102 = vperm.xlu1 %3735, %v5786_v61   ;;  %v5794_v47 = vld [vmem:[#allocation19_spill] sm:$0xff] }
 0x2bf   : > { %3650 = vmatpush3.bf16.msra.mxu1 %v1672_v57  ;;  %3297 = vmatpush3.bf16.msra.mxu0 %v1672_v57  ;;  %v5822_v57 = vunpack.c.h.s8.bf16 %v5811_v25 }
 0x2c0   : > { %3643 = vmatprep.subr.bf16.mxu1 %v1681_v22  ;;  %3298 = vmatprep.subr.bf16.mxu0 %v1681_v22  ;;  %v5823_v22 = vld [vmem:[#allocation30_spill] sm:$0xff] }
 0x2c1   : > { %2107 = vperm.xlu0 %3734, %v5793_v14   ;;  %2112 = vperm.xlu1 %3735, %v5794_v47   ;;  %v5851_v47 = vld [vmem:[#allocation12_spill] sm:$0xff] }
 0x2c3   : > { %3651 = vmatpush3.bf16.msra.mxu1 %v1673_v49  ;;  %3299 = vmatpush3.bf16.msra.mxu0 %v1673_v49  ;;  %v5824_v49 = vld [vmem:[#allocation31_spill] sm:$0xff] }
 0x2c4   : > { %3644 = vmatprep.subr.bf16.mxu1 %v1682_v18  ;;  %3300 = vmatprep.subr.bf16.mxu0 %v1682_v18  ;;  %v5825_v18 = vld [vmem:[#allocation32_spill] sm:$0xff] }
 0x2c5   : > { %2117 = vperm.xlu0 %3734, %v5795_v0   ;;  %2122 = vperm.xlu1 %3735, %v5796_v56   ;;  %v5855_v56 = vunpack.c.h.s8.bf16 %v5847_v46 }
 0x2c7   : > { %3652 = vmatpush3.bf16.msra.mxu1 %v1674_v20  ;;  %3301 = vmatpush3.bf16.msra.mxu0 %v1674_v20  ;;  %v5827_v20 = vunpack.c.h.s8.bf16 %v5817_v34  ;;  %v3738_v34 = vld [vmem:[%s5566_s5 + $0x10] sm:$0xff]  }
 0x2c8   : > { %3645 = vmatprep.subr.bf16.mxu1 %v1683_v63  ;;  %3302 = vmatprep.subr.bf16.mxu0 %v1683_v63  ;;  %v5828_v63 = vunpack.c.h.s8.bf16 %v5819_v17 }
 0x2c9   : > { %2127 = vperm.xlu0 %3734, %v5803_v52   ;;  %2132 = vperm.xlu1 %3735, %v5804_v55   ;;  %v5865_v55 = vld [vmem:[#allocation45_spill] sm:$0xff] }
 0x2cb   : > { %3653 = vmatpush3.bf16.msra.mxu1 %v1675_v11  ;;  %3303 = vmatpush3.bf16.msra.mxu0 %v1675_v11  ;;  %v5829_v11 = vld [vmem:[#allocation9_spill] sm:$0xff] }
 0x2cc   : > { %3400 = vmatprep.subr.bf16.mxu1 %v1692_v29  ;;  %v5830_v29 = vunpack.c.l.s8.bf16 %v5829_v11  ;;  %v5841_v61 = vunpack.c.h.s8.bf16 %v5829_v11 }
 0x2cd   : > { %2137 = vperm.xlu0 %3734, %v5805_v5   ;;  %2142 = vperm.xlu1 %3735, %v5806_v6  }
 0x2ce   : > { %1862 = vmatmul.mubr.bf16.vlgmr.msra.gmra.mrb[0].mxu1 %v5782_v54  ;;  %1766 = vmatmul.mubr.bf16.vlgmr.msra.gmra.mrb[0].mxu0 %v5783_v32  ;;  %v5833_v54 = vld [vmem:[#allocation34_spill] sm:$0xff]  ;;  %v5834_v32 = vld [vmem:[#allocation35_spill] sm:$0xff] }
 0x2cf   : > { %3401 = vmatpush3.bf16.msra.mxu1 %v1684_v31  ;;  %1869 = vmatprep.mubr.bf16.mxu1 %v5784_v38  ;;  %v5831_v31 = vld [vmem:[#allocation15_spill] sm:$0xff]  ;;  %v5835_v38 = vld [vmem:[#allocation36_spill] sm:$0xff] }
 0x2d0   : > { %3402 = vmatprep.subr.bf16.mxu1 %v1693_v33  ;;  %1773 = vmatprep.mubr.bf16.mxu0 %v5785_v39  ;;  %v5832_v33 = vunpack.c.l.s8.bf16 %v5831_v31  ;;  %v5837_v39 = vld [vmem:[#allocation8_spill] sm:$0xff] }
 0x2d1   : > { %2147 = vperm.xlu0 %3734, %v5813_v48   ;;  %2152 = vperm.xlu1 %3735, %v5814_v30   ;;  %v5877_v30 = vld [vmem:[#allocation48_spill] sm:$0xff] }
 0x2d3   : > { %3403 = vmatpush3.bf16.msra.mxu1 %v1685_v36  ;;  %v5836_v36 = vld [vmem:[#allocation37_spill] sm:$0xff] }
 0x2d4   : > { %3404 = vmatprep.subr.bf16.mxu1 %v1694_v40  ;;  %v5838_v40 = vunpack.c.l.s8.bf16 %v5837_v39 }
 0x2d5   : > { %2157 = vperm.xlu0 %3734, %v5815_v44   ;;  %2162 = vperm.xlu1 %3735, %v5816_v8   ;;  %v5878_v44 = vunpack.c.l.s8.bf16 %v5877_v30  ;;  %v3737_v8 = vld [vmem:[%s5566_s5 + $0x8] sm:$0xff]  }
 0x2d6   : > { %1870 = vmatmul.mubr.bf16.gmra.mrb[4].mxu1 %v5787_v28  ;;  %1774 = vmatmul.mubr.bf16.gmra.mrb[4].mxu0 %v5788_v10  ;;  %v5842_v28 = vunpack.c.h.s8.bf16 %v5831_v31  ;;  %v5843_v10 = vld [vmem:[#allocation38_spill] sm:$0xff]  ;;  %v3743_v31 = vld [vmem:[%s5566_s5 + $0x38] sm:$0xff]  }
 0x2d7   : > { %3405 = vmatpush3.bf16.msra.mxu1 %v1686_v58  ;;  %1877 = vmatprep.mubr.bf16.mxu1 %v5790_v37  ;;  %v5839_v58 = vld [vmem:[#allocation14_spill] sm:$0xff]  ;;  %v5845_v37 = vunpack.c.h.s8.bf16 %v5837_v39 }
 0x2d8   : > { %3406 = vmatprep.subr.bf16.mxu1 %v1695_v7  ;;  %1781 = vmatprep.mubr.bf16.mxu0 %v5792_v24  ;;  %v5840_v7 = vunpack.c.l.s8.bf16 %v5839_v58  ;;  %v5848_v24 = vunpack.c.l.s8.bf16 %v5847_v46 }
 0x2d9   : > { %2167 = vperm.xlu0 %3734, %v5823_v22   ;;  %2172 = vperm.xlu1 %3735, %v5824_v49   ;;  %v5883_v49 = vld [vmem:[#allocation50_spill] sm:$0xff] }
 0x2db   : > { %3407 = vmatpush3.bf16.msra.mxu1 %v1687_v45  ;;  %v5846_v45 = vunpack.c.h.s8.bf16 %v5839_v58 }
 0x2dc   : > { %3408 = vmatprep.subr.bf16.mxu1 %v1696_v16  ;;  %v5849_v16 = vld [vmem:[#allocation42_spill] sm:$0xff] }
 0x2dd   : > { %2177 = vperm.xlu0 %3734, %v5825_v18   ;;  %2182 = vperm.xlu1 %3735, %v5826_v27   ;;  %v5850_v14 = vunpack.c.l.s8.bf16 %v5849_v16  ;;  %v5856_v23 = vunpack.c.h.s8.bf16 %v5849_v16  ;;  %v5884_v18 = vunpack.c.l.s8.bf16 %v5883_v49  ;;  %v3741_v27 = vld [vmem:[%s5566_s5 + $0x28] sm:$0xff]  }
 0x2de   : > { %1878 = vmatmul.mubr.bf16.gmra.mrb[8].mxu1 %v5798_v51  ;;  %1782 = vmatmul.mubr.bf16.gmra.mrb[8].mxu0 %v5800_v3  ;;  %v5857_v51 = vunpack.c.h.s8.bf16 %v5851_v47  ;;  %v5859_v3 = vld [vmem:[#allocation40_spill] sm:$0xff] }
 0x2df   : > { %3409 = vmatpush3.bf16.msra.mxu1 %v1688_v9  ;;  %1885 = vmatprep.mubr.bf16.mxu1 %v5801_v12  ;;  %v5852_v9 = vunpack.c.l.s8.bf16 %v5851_v47  ;;  %v5860_v12 = vunpack.c.l.s8.bf16 %v5859_v3 }
 0x2e0   : > { %3410 = vmatprep.subr.bf16.mxu1 %v1697_v60  ;;  %1789 = vmatprep.mubr.bf16.mxu0 %v5802_v59  ;;  %v5853_v60 = vld [vmem:[#allocation41_spill] sm:$0xff] }
 0x2e1   : > { %2187 = vperm.xlu0 %3734, %v5833_v54   ;;  %2192 = vperm.xlu1 %3735, %v5834_v32   ;;  %v5854_v0 = vunpack.c.l.s8.bf16 %v5853_v60  ;;  %v5858_v13 = vunpack.c.h.s8.bf16 %v5853_v60  ;;  %v5889_v54 = vld [vmem:[#allocation54_spill] sm:$0xff] }
 0x2e2   : > { %v5890_v32 = vunpack.c.l.s8.bf16 %v5889_v54  ;;  %v5893_v39 = vunpack.c.h.s8.bf16 %v5889_v54 }
 0x2e3   : > { %3411 = vmatpush3.bf16.msra.mxu1 %v1689_v43  ;;  %v5861_v43 = vld [vmem:[#allocation46_spill] sm:$0xff] }
 0x2e4   : > { %3412 = vmatprep.subr.bf16.mxu1 %v1698_v2  ;;  %v5862_v59 = vunpack.c.l.s8.bf16 %v5861_v43  ;;  %v5863_v2 = vld [vmem:[#allocation16_spill] sm:$0xff]  ;;  %v5868_v5 = vunpack.c.h.s8.bf16 %v5861_v43 }
 0x2e5   : > { %2197 = vperm.xlu0 %3734, %v5835_v38   ;;  %2202 = vperm.xlu1 %3735, %v5836_v36   ;;  %v5864_v52 = vunpack.c.l.s8.bf16 %v5863_v2  ;;  %v5869_v6 = vunpack.c.h.s8.bf16 %v5863_v2  ;;  %v5891_v38 = vld [vmem:[#allocation53_spill] sm:$0xff] }
 0x2e6   : > { %1886 = vmatmul.mubr.bf16.gmra.mrb[12].mxu1 %v5807_v35  ;;  %1790 = vmatmul.mubr.bf16.gmra.mrb[12].mxu0 %v5808_v42  ;;  %v5870_v35 = vunpack.c.h.s8.bf16 %v5865_v55  ;;  %v5871_v42 = vld [vmem:[#allocation44_spill] sm:$0xff]  ;;  %v5892_v36 = vunpack.c.l.s8.bf16 %v5891_v38 }
 0x2e7   : > { %3413 = vmatpush3.bf16.msra.mxu1 %v1690_v21  ;;  %1926 = vmatprep.mubr.bf16.mxu1 %v5810_v4  ;;  %v5866_v21 = vunpack.c.l.s8.bf16 %v5865_v55  ;;  %v5872_v50 = vunpack.c.l.s8.bf16 %v5871_v42  ;;  %v3736_v4 = vld [vmem:[%s5566_s5] sm:$0xff]  }
 0x2e8   : > { %3414 = vmatprep.subr.bf16.mxu1 %v1699_v19  ;;  %1797 = vmatprep.mubr.bf16.mxu0 %v5812_v26  ;;  %v5867_v19 = vunpack.c.h.s8.bf16 %v5859_v3  ;;  %v5875_v26 = vunpack.c.h.s8.bf16 %v5871_v42 }
 0x2e9   : > { %2207 = vperm.xlu0 %3734, %v5843_v10   ;;  %2212 = vperm.xlu1 %3735, %v5844_v1  }
 0x2ea   : > { %3574 = vmatprep.subr.bf16.mxu0 %v3736_v4 }
 0x2eb   : > { %3415 = vmatpush3.bf16.msra.mxu1 %v1691_v53  ;;  %3575 = vmatpush3.bf16.msra.mxu0 %v3736_v4  ;;  %v5873_v53 = vld [vmem:[#allocation43_spill] sm:$0xff] }
 0x2ec   : > { %v5874_v25 = vunpack.c.l.s8.bf16 %v5873_v53  ;;  %v5876_v48 = vunpack.c.h.s8.bf16 %v5873_v53  ;;  %3576 = vmatprep.subr.bf16.mxu0 %v3737_v8 }
 0x2ee   : > { %1927 = vmatmul.mubr.bf16.vlgmr.msra.gmra.mrb[16].mxu1 %v5818_v15  ;;  %1798 = vmatmul.mubr.bf16.gmra.mrb[16].mxu0 %v5820_v62  ;;  %v5879_v15 = vld [vmem:[#allocation47_spill] sm:$0xff]  ;;  %v5881_v62 = vunpack.c.h.s8.bf16 %v5877_v30 }
 0x2ef   : > { %1934 = vmatprep.mubr.bf16.mxu1 %v5821_v41  ;;  %1805 = vmatprep.mubr.bf16.mxu0 %v5822_v57  ;;  %v5880_v17 = vunpack.c.l.s8.bf16 %v5879_v15  ;;  %v3739_v41 = vld [vmem:[%s5566_s5 + $0x18] sm:$0xff]   ;;  %v3740_v57 = vld [vmem:[%s5566_s5 + $0x20] sm:$0xff]   ;;  %v5882_v22 = vunpack.c.h.s8.bf16 %v5879_v15 }
 0x2f0   : > { %3577 = vmatpush3.bf16.msra.mxu0 %v3737_v8 }
 0x2f1   : > { %3578 = vmatprep.subr.bf16.mxu0 %v3738_v34 }
 0x2f4   : > { %3579 = vmatpush3.bf16.msra.mxu0 %v3738_v34 }
 0x2f5   : > { %3580 = vmatprep.subr.bf16.mxu0 %v3739_v41 }
 0x2f6   : > { %1935 = vmatmul.mubr.bf16.gmra.mrb[20].mxu1 %v5827_v20  ;;  %1806 = vmatmul.mubr.bf16.gmra.mrb[20].mxu0 %v5828_v63  ;;  %v3742_v20 = vld [vmem:[%s5566_s5 + $0x30] sm:$0xff]   ;;  %v5885_v63 = vld [vmem:[#allocation49_spill] sm:$0xff] }
 0x2f7   : > { %1942 = vmatprep.mubr.bf16.mxu1 %v5830_v29  ;;  %1813 = vmatprep.mubr.bf16.mxu0 %v5832_v33  ;;  %v5886_v11 = vunpack.c.l.s8.bf16 %v5885_v63  ;;  %v5887_v29 = vunpack.c.h.s8.bf16 %v5883_v49  ;;  %v5888_v33 = vunpack.c.h.s8.bf16 %v5885_v63  ;;  %v1702_v49 = vld [vmem:[%s5097_s28 + $0x8] sm:$0xff] }
 0x2f8   : > { %3581 = vmatpush3.bf16.msra.mxu0 %v3739_v41 }
 0x2f9   : > { %3582 = vmatprep.subr.bf16.mxu0 %v3740_v57 }
 0x2fc   : > { %3583 = vmatpush3.bf16.msra.mxu0 %v3740_v57 }
 0x2fd   : > { %3584 = vmatprep.subr.bf16.mxu0 %v3741_v27 }
 0x2fe   : > { %1943 = vmatmul.mubr.bf16.gmra.mrb[24].mxu1 %v5838_v40  ;;  %1814 = vmatmul.mubr.bf16.gmra.mrb[24].mxu0 %v5840_v7  ;;  %v5894_v40 = vunpack.c.h.s8.bf16 %v5891_v38 }
 0x2ff   : > { %1950 = vmatprep.mubr.bf16.mxu1 %v5841_v61  ;;  %1821 = vmatprep.mubr.bf16.mxu0 %v5842_v28 }
 0x300   : > { %3585 = vmatpush3.bf16.msra.mxu0 %v3741_v27 }
 0x301   : > { %3586 = vmatprep.subr.bf16.mxu0 %v3742_v20 }
 0x304   : > { %3587 = vmatpush3.bf16.msra.mxu0 %v3742_v20 }
 0x305   : > { %3588 = vmatprep.subr.bf16.mxu0 %v3743_v31 }
 0x306   : > { %1951 = vmatmul.mubr.bf16.gmra.mrb[28].mxu1 %v5845_v37  ;;  %1822 = vmatmul.mubr.bf16.gmra.mrb[28].mxu0 %v5846_v45 }
 0x307   : > { %1958 = vmatprep.mubr.bf16.mxu1 %v5848_v24  ;;  %1829 = vmatprep.mubr.bf16.mxu0 %v5850_v14 }
 0x308   : > { %3589 = vmatpush3.bf16.msra.mxu0 %v3743_v31 }
 0x30e   : > { %1959 = vmatmul.mubr.bf16.gmra.mrb[32].mxu1 %v5852_v9  ;;  %1830 = vmatmul.mubr.bf16.gmra.mrb[32].mxu0 %v5854_v0 }
 0x30f   : > { %1966 = vmatprep.mubr.bf16.mxu1 %v5855_v56  ;;  %1837 = vmatprep.mubr.bf16.mxu0 %v5856_v23 }
 0x316   : > { %1967 = vmatmul.mubr.bf16.gmra.mrb[36].mxu1 %v5857_v51  ;;  %1838 = vmatmul.mubr.bf16.gmra.mrb[36].mxu0 %v5858_v13 }
 0x317   : > { %1974 = vmatprep.mubr.bf16.mxu1 %v5860_v12  ;;  %1845 = vmatprep.mubr.bf16.mxu0 %v5862_v59 }
 0x31e   : > { %1975 = vmatmul.mubr.bf16.gmra.mrb[40].mxu1 %v5864_v52  ;;  %1846 = vmatmul.mubr.bf16.gmra.mrb[40].mxu0 %v5866_v21 }
 0x31f   : > { %1982 = vmatprep.mubr.bf16.mxu1 %v5867_v19  ;;  %1853 = vmatprep.mubr.bf16.mxu0 %v5868_v5 }
 0x326   : > { %1983 = vmatmul.mubr.bf16.gmra.mrb[44].mxu1 %v5869_v6  ;;  %1854 = vmatmul.mubr.bf16.gmra.mrb[44].mxu0 %v5870_v35 }
 0x327   : > { %1990 = vmatprep.mubr.bf16.mxu1 %v5872_v50 }
 0x32e   : > { %1991 = vmatmul.mubr.bf16.gmra.mrb[48].mxu1 %v5874_v25 }
 0x32f   : > { %1998 = vmatprep.mubr.bf16.mxu1 %v5875_v26 }
 0x336   : > { %1999 = vmatmul.mubr.bf16.gmra.mrb[52].mxu1 %v5876_v48 }
 0x337   : > { %2006 = vmatprep.mubr.bf16.mxu1 %v5878_v44 }
 0x33e   : > { %2007 = vmatmul.mubr.bf16.gmra.mrb[56].mxu1 %v5880_v17 }
 0x33f   : > { %2014 = vmatprep.mubr.bf16.mxu1 %v5881_v62 }
 0x346   : > { %2015 = vmatmul.mubr.bf16.gmra.mrb[60].mxu1 %v5882_v22  ;;  %v1701_v22 = vld [vmem:[%s5097_s28] sm:$0xff] }
 0x347   : > { %2022 = vmatprep.mubr.bf16.mxu1 %v5884_v18  ;;  %v2058_v18 = vpop.permute.xlu0 %2057 }
 0x34e   : > { %2023 = vmatmul.mubr.bf16.gmra.mrb[64].mxu1 %v5886_v11 }
 0x34f   : > { %2030 = vmatprep.mubr.bf16.mxu1 %v5887_v29 }
 0x356   : > { %2031 = vmatmul.mubr.bf16.gmra.mrb[68].mxu1 %v5888_v33 }
 0x357   : > { %2038 = vmatprep.mubr.bf16.mxu1 %v5890_v32 }
 0x35e   : > { %2039 = vmatmul.mubr.bf16.gmra.mrb[72].mxu1 %v5892_v36 }
 0x35f   : > { %2046 = vmatprep.mubr.bf16.mxu1 %v5893_v39 }
 0x366   : > { %2047 = vmatmul.mubr.bf16.gmra.mrb[76].mxu1 %v5894_v40 }
 0x3a1   : > { %v3376_v58 = vpop.f32.mrb[0].mxu1  ;;  %v3304_v7 = vpop.f32.mrb[0].mxu0 }
 0x3a2   : > { %v3377_v61 = vpop.f32.mrb[1].mxu1  ;;  %v3305_v28 = vpop.f32.mrb[1].mxu0 }
 0x3a3   : > { %v5072_v10 = vadd.f32 %v3377_v61, %v3376_v58  ;;  %v3379_v1 = vpop.f32.mrb[2].mxu1  ;;  %v3306_v37 = vadd.f32 %v3305_v28, %v3304_v7  ;;  %v3307_v45 = vpop.f32.mrb[2].mxu0  ;;  %v1703_v61 = vld [vmem:[%s5097_s28 + $0x10] sm:$0xff] }
 0x3a4   : > { %v3380_v46 = vpop.f32.mrb[3].mxu1  ;;  %v3308_v24 = vpop.f32.mrb[3].mxu0 }
 0x3a5   : > { %v5074_v16 = vadd.f32 %v3380_v46, %v3379_v1  ;;  %v3309_v14 = vadd.f32 %v3308_v24, %v3307_v45  ;;  %v1768_v27 = vadd.f32 %v3306_v37, %v1701_v22  ;;  %v2068_v1 = vpop.permute.xlu1 %2067  ;;  %v2063_v37 = vpop.permute.xlu0 %2062  ;;  %v1704_v45 = vld [vmem:[%s5097_s28 + $0x18] sm:$0xff] }
 0x3a7   : > { %v1771_v31 = vadd.f32 %v3309_v14, %v1702_v49 }
 0x3a9   : > { %v3382_v47 = vpop.f32.mrb[4].mxu1  ;;  %v3310_v9 = vpop.f32.mrb[4].mxu0 }
 0x3aa   : > { %v3383_v60 = vpop.f32.mrb[5].mxu1  ;;  %v3311_v0 = vpop.f32.mrb[5].mxu0 }
 0x3ab   : > { %v5076_v56 = vadd.f32 %v3383_v60, %v3382_v47  ;;  %v3385_v23 = vpop.f32.mrb[6].mxu1  ;;  %v3312_v51 = vadd.f32 %v3311_v0, %v3310_v9  ;;  %v3313_v13 = vpop.f32.mrb[6].mxu0 }
 0x3ac   : > { %v3386_v3 = vpop.f32.mrb[7].mxu1  ;;  %v3314_v12 = vpop.f32.mrb[7].mxu0 }
 0x3ad   : > { %v5078_v43 = vadd.f32 %v3386_v3, %v3385_v23  ;;  %v3315_v59 = vadd.f32 %v3314_v12, %v3313_v13  ;;  %v1776_v47 = vadd.f32 %v3312_v51, %v1703_v61  ;;  %v1705_v51 = vld [vmem:[%s5097_s28 + $0x20] sm:$0xff] }
 0x3af   : > { %v1779_v13 = vadd.f32 %v3315_v59, %v1704_v45 }
 0x3b1   : > { %v3388_v2 = vpop.f32.mrb[8].mxu1  ;;  %v3316_v52 = vpop.f32.mrb[8].mxu0 }
 0x3b2   : > { %v3389_v55 = vpop.f32.mrb[9].mxu1  ;;  %v3317_v21 = vpop.f32.mrb[9].mxu0 }
 0x3b3   : > { %v5080_v19 = vadd.f32 %v3389_v55, %v3388_v2  ;;  %v3391_v5 = vpop.f32.mrb[10].mxu1  ;;  %v5082_v6 = vadd.f32 %v3317_v21, %v3316_v52  ;;  %v3319_v35 = vpop.f32.mrb[10].mxu0 }
 0x3b4   : > { %v3392_v42 = vpop.f32.mrb[11].mxu1  ;;  %v3320_v50 = vpop.f32.mrb[11].mxu0 }
 0x3b5   : > { %v5084_v4 = vadd.f32 %v3392_v42, %v3391_v5  ;;  %v5086_v53 = vadd.f32 %v3320_v50, %v3319_v35  ;;  %v1784_v59 = vadd.f32 %v5082_v6, %v1705_v51 }
 0x3b9   : > { %v3394_v25 = vpop.f32.mrb[12].mxu1  ;;  %v3322_v26 = vpop.f32.mrb[12].mxu0 }
 0x3ba   : > { %v3395_v48 = vpop.f32.mrb[13].mxu1  ;;  %v3323_v30 = vpop.f32.mrb[13].mxu0 }
 0x3bb   : > { %v5088_v44 = vadd.f32 %v3395_v48, %v3394_v25  ;;  %v3397_v8 = vpop.f32.mrb[14].mxu1  ;;  %v5090_v34 = vadd.f32 %v3323_v30, %v3322_v26  ;;  %v3325_v15 = vpop.f32.mrb[14].mxu0  ;;  %v1706_v26 = vld [vmem:[%s5097_s28 + $0x28] sm:$0xff] }
 0x3bc   : > { %v3398_v17 = vpop.f32.mrb[15].mxu1  ;;  %v3326_v62 = vpop.f32.mrb[15].mxu0  ;;  %v1787_v49 = vadd.f32 %v5086_v53, %v1706_v26 }
 0x3bd   : > { %v5092_v41 = vadd.f32 %v3398_v17, %v3397_v8  ;;  %v5094_v57 = vadd.f32 %v3326_v62, %v3325_v15  ;;  %v2073_v25 = vpop.permute.xlu1 %2072 }
 0x3c1   : > { %v3416_v20 = vpop.f32.mrb[16].mxu1  ;;  %v3328_v63 = vpop.f32.mrb[16].mxu0 }
 0x3c2   : > { %v3417_v11 = vpop.f32.mrb[17].mxu1  ;;  %v3329_v29 = vpop.f32.mrb[17].mxu0 }
 0x3c3   : > { %v3418_v33 = vadd.f32 %v3417_v11, %v3416_v20  ;;  %v3419_v54 = vpop.f32.mrb[18].mxu1  ;;  %v5101_v32 = vadd.f32 %v3329_v29, %v3328_v63  ;;  %v3331_v38 = vpop.f32.mrb[18].mxu0 }
 0x3c4   : > { %v3420_v36 = vpop.f32.mrb[19].mxu1  ;;  %v3332_v39 = vpop.f32.mrb[19].mxu0 }
 0x3c5   : > { %v1929_v40 = vadd.f32 %v3418_v33, %v1768_v27  ;;  %v3421_v58 = vadd.f32 %v3420_v36, %v3419_v54  ;;  %v5103_v7 = vadd.f32 %v3332_v39, %v3331_v38  ;;  %v1707_v54 = vld [vmem:[%s5097_s28 + $0x30] sm:$0xff]  ;;  %v2078_v36 = vpop.permute.xlu0 %2077  ;;  %v2083_v39 = vpop.permute.xlu1 %2082 }
 0x3c6   : > { %v1792_v53 = vadd.f32 %v5090_v34, %v1707_v54 }
 0x3c7   : > { %v1932_v28 = vadd.f32 %v3421_v58, %v1771_v31  ;;  %v2215_v46 = vmul.f32 %v2058_v18, %v1929_v40  ;;  %v1708_v40 = vld [vmem:[%s5097_s28 + $0x38] sm:$0xff] }
 0x3c9   : > { %v2216_v24 = vmul.f32 %v2063_v37, %v1932_v28  ;;  %v3422_v14 = vpop.f32.mrb[20].mxu1  ;;  %v3334_v9 = vpop.f32.mrb[20].mxu0 }
 0x3ca   : > { %v3423_v60 = vpop.f32.mrb[21].mxu1  ;;  %v3335_v0 = vpop.f32.mrb[21].mxu0 }
 0x3cb   : > { %v2247_v23 = vpack.c.bf16 %v2216_v24, %v2215_v46  ;;  %v3424_v3 = vadd.f32 %v3423_v60, %v3422_v14  ;;  %v3425_v12 = vpop.f32.mrb[22].mxu1  ;;  %v5107_v2 = vadd.f32 %v3335_v0, %v3334_v9  ;;  %v3337_v52 = vpop.f32.mrb[22].mxu0  ;;  %v1795_v46 = vadd.f32 %v5094_v57, %v1708_v40 }
 0x3cc   : > { %v3426_v55 = vpop.f32.mrb[23].mxu1  ;;  %v3338_v21 = vpop.f32.mrb[23].mxu0 }
 0x3cd   : > { %v1937_v5 = vadd.f32 %v3424_v3, %v1776_v47  ;;  %v3427_v35 = vadd.f32 %v3426_v55, %v3425_v12  ;;  %3590 = vmatprep.mubr.bf16.mxu0 %v2247_v23  ;;  %v5109_v42 = vadd.f32 %v3338_v21, %v3337_v52  ;;  %v1709_v12 = vld [vmem:[%s5097_s28 + $0x40] sm:$0xff]  ;;  %v2088_v55 = vpop.permute.xlu0 %2087  ;;  %v2093_v21 = vpop.permute.xlu1 %2092 }
 0x3ce   : > { %v1800_v51 = vadd.f32 %v5101_v32, %v1709_v12 }
 0x3cf   : > { %v1940_v50 = vadd.f32 %v3427_v35, %v1779_v13  ;;  %v2217_v48 = vmul.f32 %v2068_v1, %v1937_v5  ;;  %v1710_v5 = vld [vmem:[%s5097_s28 + $0x48] sm:$0xff] }
 0x3d1   : > { %v2218_v30 = vmul.f32 %v2073_v25, %v1940_v50  ;;  %v3428_v8 = vpop.f32.mrb[24].mxu1  ;;  %v3340_v15 = vpop.f32.mrb[24].mxu0 }
 0x3d2   : > { %v3429_v17 = vpop.f32.mrb[25].mxu1  ;;  %v3341_v62 = vpop.f32.mrb[25].mxu0 }
 0x3d3   : > { %v2248_v22 = vpack.c.bf16 %v2218_v30, %v2217_v48  ;;  %v3430_v18 = vadd.f32 %v3429_v17, %v3428_v8  ;;  %v3431_v27 = vpop.f32.mrb[26].mxu1  ;;  %v5115_v20 = vadd.f32 %v3341_v62, %v3340_v15  ;;  %v3343_v63 = vpop.f32.mrb[26].mxu0  ;;  %v1803_v30 = vadd.f32 %v5103_v7, %v1710_v5 }
 0x3d4   : > { %v3432_v11 = vpop.f32.mrb[27].mxu1  ;;  %v3344_v29 = vpop.f32.mrb[27].mxu0 }
 0x3d5   : > { %v1945_v31 = vadd.f32 %v3430_v18, %v1784_v59  ;;  %v3433_v33 = vadd.f32 %v3432_v11, %v3431_v27  ;;  %3591 = vmatmul.mubr.bf16.vlgmr.msra.gmra.mrb[48].mxu0 %v2248_v22  ;;  %v5117_v6 = vadd.f32 %v3344_v29, %v3343_v63  ;;  %v1711_v63 = vld [vmem:[%s5097_s28 + $0x50] sm:$0xff]  ;;  %v2098_v29 = vpop.permute.xlu0 %2097 }
 0x3d7   : > { %v1948_v38 = vadd.f32 %v3433_v33, %v1787_v49  ;;  %v2219_v58 = vmul.f32 %v2078_v36, %v1945_v31  ;;  %v2103_v31 = vpop.permute.xlu1 %2102  ;;  %v1712_v33 = vld [vmem:[%s5097_s28 + $0x58] sm:$0xff] }
 0x3d9   : > { %v2220_v61 = vmul.f32 %v2083_v39, %v1948_v38  ;;  %v3434_v28 = vpop.f32.mrb[28].mxu1  ;;  %v3346_v1 = vpop.f32.mrb[28].mxu0  ;;  %v1808_v38 = vadd.f32 %v5107_v2, %v1711_v63 }
 0x3da   : > { %v3435_v37 = vpop.f32.mrb[29].mxu1  ;;  %v3347_v45 = vpop.f32.mrb[29].mxu0 }
 0x3db   : > { %v3436_v24 = vadd.f32 %v3435_v37, %v3434_v28  ;;  %v3437_v47 = vpop.f32.mrb[30].mxu1  ;;  %v2249_v14 = vpack.c.bf16 %v2220_v61, %v2219_v58  ;;  %v5123_v9 = vadd.f32 %v3347_v45, %v3346_v1  ;;  %v3349_v60 = vpop.f32.mrb[30].mxu0  ;;  %v1811_v61 = vadd.f32 %v5109_v42, %v1712_v33 }
 0x3dc   : > { %v3438_v0 = vpop.f32.mrb[31].mxu1  ;;  %v3350_v23 = vpop.f32.mrb[31].mxu0 }
 0x3dd   : > { %v1953_v13 = vadd.f32 %v3436_v24, %v1792_v53  ;;  %v3439_v3 = vadd.f32 %v3438_v0, %v3437_v47  ;;  %3594 = vmatprep.mubr.bf16.mxu0 %v2249_v14  ;;  %v5125_v34 = vadd.f32 %v3350_v23, %v3349_v60  ;;  %v1713_v60 = vld [vmem:[%s5097_s28 + $0x60] sm:$0xff]  ;;  %v2108_v23 = vpop.permute.xlu0 %2107 }
 0x3df   : > { %v1956_v52 = vadd.f32 %v3439_v3, %v1795_v46  ;;  %v2221_v57 = vmul.f32 %v2088_v55, %v1953_v13  ;;  %v2113_v13 = vpop.permute.xlu1 %2112  ;;  %v1714_v3 = vld [vmem:[%s5097_s28 + $0x68] sm:$0xff] }
 0x3e1   : > { %v2222_v35 = vmul.f32 %v2093_v21, %v1956_v52  ;;  %v3440_v50 = vpop.f32.mrb[32].mxu1  ;;  %v3352_v25 = vpop.f32.mrb[32].mxu0  ;;  %v1816_v52 = vadd.f32 %v5115_v20, %v1713_v60 }
 0x3e2   : > { %v3441_v26 = vpop.f32.mrb[33].mxu1  ;;  %v3353_v48 = vpop.f32.mrb[33].mxu0 }
 0x3e3   : > { %v3442_v59 = vadd.f32 %v3441_v26, %v3440_v50  ;;  %v3443_v8 = vpop.f32.mrb[34].mxu1  ;;  %v2250_v15 = vpack.c.bf16 %v2222_v35, %v2221_v57  ;;  %v5131_v17 = vadd.f32 %v3353_v48, %v3352_v25  ;;  %v3355_v62 = vpop.f32.mrb[34].mxu0  ;;  %v1819_v35 = vadd.f32 %v5117_v6, %v1714_v3 }
 0x3e4   : > { %v3444_v22 = vpop.f32.mrb[35].mxu1  ;;  %v3356_v49 = vpop.f32.mrb[35].mxu0 }
 0x3e5   : > { %v1961_v18 = vadd.f32 %v3442_v59, %v1800_v51  ;;  %v3445_v27 = vadd.f32 %v3444_v22, %v3443_v8  ;;  %3595 = vmatmul.mubr.bf16.gmra.mrb[52].mxu0 %v2250_v15  ;;  %v5133_v32 = vadd.f32 %v3356_v49, %v3355_v62  ;;  %v1715_v62 = vld [vmem:[%s5097_s28 + $0x70] sm:$0xff]  ;;  %v2118_v49 = vpop.permute.xlu0 %2117 }
 0x3e7   : > { %v1964_v11 = vadd.f32 %v3445_v27, %v1803_v30  ;;  %v2223_v7 = vmul.f32 %v2098_v29, %v1961_v18  ;;  %v2123_v18 = vpop.permute.xlu1 %2122  ;;  %v1716_v27 = vld [vmem:[%s5097_s28 + $0x78] sm:$0xff] }
 0x3e9   : > { %v2224_v54 = vmul.f32 %v2103_v31, %v1964_v11  ;;  %v3446_v36 = vpop.f32.mrb[36].mxu1  ;;  %v3358_v39 = vpop.f32.mrb[36].mxu0  ;;  %v1824_v11 = vadd.f32 %v5123_v9, %v1715_v62 }
 0x3ea   : > { %v3447_v40 = vpop.f32.mrb[37].mxu1  ;;  %v3359_v58 = vpop.f32.mrb[37].mxu0 }
 0x3eb   : > { %v3448_v53 = vadd.f32 %v3447_v40, %v3446_v36  ;;  %v3449_v28 = vpop.f32.mrb[38].mxu1  ;;  %v2251_v1 = vpack.c.bf16 %v2224_v54, %v2223_v7  ;;  %v5139_v37 = vadd.f32 %v3359_v58, %v3358_v39  ;;  %v3361_v45 = vpop.f32.mrb[38].mxu0  ;;  %v1827_v54 = vadd.f32 %v5125_v34, %v1716_v27  ;;  %v1718_v34 = vld [vmem:[%s5097_s28 + $0x88] sm:$0xff] }
 0x3ec   : > { %v3450_v46 = vpop.f32.mrb[39].mxu1  ;;  %v3362_v24 = vpop.f32.mrb[39].mxu0  ;;  %v1835_v3 = vadd.f32 %v5133_v32, %v1718_v34 }
 0x3ed   : > { %v1969_v47 = vadd.f32 %v3448_v53, %v1808_v38  ;;  %v3451_v14 = vadd.f32 %v3450_v46, %v3449_v28  ;;  %3598 = vmatprep.mubr.bf16.mxu0 %v2251_v1  ;;  %v5141_v2 = vadd.f32 %v3362_v24, %v3361_v45  ;;  %v1717_v45 = vld [vmem:[%s5097_s28 + $0x80] sm:$0xff]  ;;  %v2128_v24 = vpop.permute.xlu0 %2127 }
 0x3ef   : > { %v1972_v0 = vadd.f32 %v3451_v14, %v1811_v61  ;;  %v2225_v42 = vmul.f32 %v2108_v23, %v1969_v47  ;;  %v2133_v47 = vpop.permute.xlu1 %2132 }
 0x3f1   : > { %v2226_v12 = vmul.f32 %v2113_v13, %v1972_v0  ;;  %v3452_v55 = vpop.f32.mrb[40].mxu1  ;;  %v3364_v21 = vpop.f32.mrb[40].mxu0  ;;  %v1832_v0 = vadd.f32 %v5131_v17, %v1717_v45 }
 0x3f2   : > { %v3453_v5 = vpop.f32.mrb[41].mxu1  ;;  %v3365_v57 = vpop.f32.mrb[41].mxu0 }
 0x3f3   : > { %v3454_v51 = vadd.f32 %v3453_v5, %v3452_v55  ;;  %v3455_v50 = vpop.f32.mrb[42].mxu1  ;;  %v2252_v25 = vpack.c.bf16 %v2226_v12, %v2225_v42  ;;  %v5147_v26 = vadd.f32 %v3365_v57, %v3364_v21  ;;  %v3367_v48 = vpop.f32.mrb[42].mxu0  ;;  %v1719_v57 = vld [vmem:[%s5097_s28 + $0x90] sm:$0xff] }
 0x3f4   : > { %v3456_v30 = vpop.f32.mrb[43].mxu1  ;;  %v3368_v59 = vpop.f32.mrb[43].mxu0  ;;  %v1840_v17 = vadd.f32 %v5139_v37, %v1719_v57 }
 0x3f5   : > { %v1977_v8 = vadd.f32 %v3454_v51, %v1816_v52  ;;  %v3457_v15 = vadd.f32 %v3456_v30, %v3455_v50  ;;  %3599 = vmatmul.mubr.bf16.gmra.mrb[56].mxu0 %v2252_v25  ;;  %v5149_v20 = vadd.f32 %v3368_v59, %v3367_v48  ;;  %v2138_v51 = vpop.permute.xlu0 %2137  ;;  %v2143_v50 = vpop.permute.xlu1 %2142  ;;  %v1720_v25 = vld [vmem:[%s5097_s28 + $0x98] sm:$0xff] }
 0x3f7   : > { %v1980_v22 = vadd.f32 %v3457_v15, %v1819_v35  ;;  %v2227_v6 = vmul.f32 %v2118_v49, %v1977_v8  ;;  %v1843_v8 = vadd.f32 %v5141_v2, %v1720_v25 }
 0x3f9   : > { %v2228_v63 = vmul.f32 %v2123_v18, %v1980_v22  ;;  %v3458_v29 = vpop.f32.mrb[44].mxu1  ;;  %v3370_v31 = vpop.f32.mrb[44].mxu0 }
 0x3fa   : > { %v3459_v33 = vpop.f32.mrb[45].mxu1  ;;  %v3371_v7 = vpop.f32.mrb[45].mxu0 }
 0x3fb   : > { %v3460_v38 = vadd.f32 %v3459_v33, %v3458_v29  ;;  %v3461_v36 = vpop.f32.mrb[46].mxu1  ;;  %v2253_v39 = vpack.c.bf16 %v2228_v63, %v2227_v6  ;;  %v5155_v40 = vadd.f32 %v3371_v7, %v3370_v31  ;;  %v3373_v58 = vpop.f32.mrb[46].mxu0  ;;  %v1721_v6 = vld [vmem:[%s5097_s28 + $0xa0] sm:$0xff]  ;;  %v1722_v31 = vld [vmem:[%s5097_s28 + $0xa8] sm:$0xff] }
 0x3fc   : > { %v3462_v61 = vpop.f32.mrb[47].mxu1  ;;  %v3374_v53 = vpop.f32.mrb[47].mxu0  ;;  %v1848_v37 = vadd.f32 %v5147_v26, %v1721_v6 }
 0x3fd   : > { %v1985_v28 = vadd.f32 %v3460_v38, %v1824_v11  ;;  %v3463_v1 = vadd.f32 %v3462_v61, %v3461_v36  ;;  %3602 = vmatprep.mubr.bf16.mxu0 %v2253_v39  ;;  %v5157_v9 = vadd.f32 %v3374_v53, %v3373_v58  ;;  %v2148_v11 = vpop.permute.xlu0 %2147  ;;  %v2153_v29 = vpop.permute.xlu1 %2152  ;;  %v1851_v38 = vadd.f32 %v5149_v20, %v1722_v31 }
 0x3ff   : > { %v1988_v46 = vadd.f32 %v3463_v1, %v1827_v54  ;;  %v2229_v14 = vmul.f32 %v2128_v24, %v1985_v28  ;;  %v1723_v1 = vld [vmem:[%s5097_s28 + $0xb0] sm:$0xff] }
 0x400   : > { %v1856_v26 = vadd.f32 %v5155_v40, %v1723_v1  ;;  %v1730_v1 = vld [vmem:[%s5097_s28 + $0xe8] sm:$0xff] }
 0x401   : > { %v2230_v60 = vmul.f32 %v2133_v47, %v1988_v46  ;;  %v3464_v23 = vpop.f32.mrb[48].mxu1  ;;  %v2158_v46 = vpop.permute.xlu0 %2157  ;;  %v1724_v47 = vld [vmem:[%s5097_s28 + $0xb8] sm:$0xff] }
 0x402   : > { %v3465_v13 = vpop.f32.mrb[49].mxu1  ;;  %v2163_v24 = vpop.permute.xlu1 %2162  ;;  %v1859_v20 = vadd.f32 %v5157_v9, %v1724_v47 }
 0x403   : > { %v3466_v42 = vadd.f32 %v3465_v13, %v3464_v23  ;;  %v3467_v12 = vpop.f32.mrb[50].mxu1  ;;  %v2254_v52 = vpack.c.bf16 %v2230_v60, %v2229_v14 }
 0x404   : > { %v3468_v55 = vpop.f32.mrb[51].mxu1 }
 0x405   : > { %v1993_v21 = vadd.f32 %v3466_v42, %v1832_v0  ;;  %v3469_v5 = vadd.f32 %v3468_v55, %v3467_v12  ;;  %3603 = vmatmul.mubr.bf16.gmra.mrb[60].mxu0 %v2254_v52 }
 0x406   : > { %v2173_v57 = vpop.permute.xlu1 %2172 }
 0x407   : > { %v1996_v35 = vadd.f32 %v3469_v5, %v1835_v3  ;;  %v2231_v48 = vmul.f32 %v2138_v51, %v1993_v21  ;;  %v1725_v21 = vld [vmem:[%s5097_s28 + $0xc0] sm:$0xff]  ;;  %v2168_v5 = vpop.permute.xlu0 %2167 }
 0x409   : > { %v2232_v30 = vmul.f32 %v2143_v50, %v1996_v35  ;;  %v3470_v59 = vpop.f32.mrb[52].mxu1  ;;  %v1726_v50 = vld [vmem:[%s5097_s28 + $0xc8] sm:$0xff] }
 0x40a   : > { %v3471_v32 = vpop.f32.mrb[53].mxu1 }
 0x40b   : > { %v3472_v15 = vadd.f32 %v3471_v32, %v3470_v59  ;;  %v3473_v62 = vpop.f32.mrb[54].mxu1  ;;  %v2255_v22 = vpack.c.bf16 %v2232_v30, %v2231_v48  ;;  %v1864_v48 = vadd.f32 %v5072_v10, %v1725_v21  ;;  %v1867_v32 = vadd.f32 %v5074_v16, %v1726_v50 }
 0x40c   : > { %v3474_v49 = vpop.f32.mrb[55].mxu1 }
 0x40d   : > { %v2001_v18 = vadd.f32 %v3472_v15, %v1840_v17  ;;  %v3475_v27 = vadd.f32 %v3474_v49, %v3473_v62  ;;  %3606 = vmatprep.mubr.bf16.mxu0 %v2255_v22  ;;  %v1727_v22 = vld [vmem:[%s5097_s28 + $0xd0] sm:$0xff]  ;;  %v2178_v49 = vpop.permute.xlu0 %2177 }
 0x40f   : > { %v2004_v63 = vadd.f32 %v3475_v27, %v1843_v8  ;;  %v2233_v33 = vmul.f32 %v2148_v11, %v2001_v18  ;;  %v2183_v18 = vpop.permute.xlu1 %2182  ;;  %v1728_v11 = vld [vmem:[%s5097_s28 + $0xd8] sm:$0xff] }
 0x411   : > { %v2234_v7 = vmul.f32 %v2153_v29, %v2004_v63  ;;  %v3476_v54 = vpop.f32.mrb[56].mxu1  ;;  %v1872_v29 = vadd.f32 %v5076_v56, %v1727_v22 }
 0x412   : > { %v3477_v2 = vpop.f32.mrb[57].mxu1 }
 0x413   : > { %v3478_v36 = vadd.f32 %v3477_v2, %v3476_v54  ;;  %v3479_v39 = vpop.f32.mrb[58].mxu1  ;;  %v2256_v58 = vpack.c.bf16 %v2234_v7, %v2233_v33 }
 0x414   : > { %v3480_v61 = vpop.f32.mrb[59].mxu1 }
 0x415   : > { %v2009_v53 = vadd.f32 %v3478_v36, %v1848_v37  ;;  %v3481_v28 = vadd.f32 %v3480_v61, %v3479_v39  ;;  %3607 = vmatmul.mubr.bf16.gmra.mrb[64].mxu0 %v2256_v58  ;;  %v1875_v37 = vadd.f32 %v5078_v43, %v1728_v11  ;;  %v1729_v36 = vld [vmem:[%s5097_s28 + $0xe0] sm:$0xff]  ;;  %v2188_v39 = vpop.permute.xlu0 %2187  ;;  %v2193_v58 = vpop.permute.xlu1 %2192 }
 0x417   : > { %v2012_v45 = vadd.f32 %v3481_v28, %v1851_v38  ;;  %v2235_v34 = vmul.f32 %v2158_v46, %v2009_v53 }
 0x419   : > { %v2236_v14 = vmul.f32 %v2163_v24, %v2012_v45  ;;  %v3482_v60 = vpop.f32.mrb[60].mxu1  ;;  %v1880_v45 = vadd.f32 %v5080_v19, %v1729_v36 }
 0x41a   : > { %v3483_v0 = vpop.f32.mrb[61].mxu1 }
 0x41b   : > { %v3484_v23 = vadd.f32 %v3483_v0, %v3482_v60  ;;  %v3485_v13 = vpop.f32.mrb[62].mxu1  ;;  %v2257_v3 = vpack.c.bf16 %v2236_v14, %v2235_v34  ;;  %v1883_v34 = vadd.f32 %v5084_v4, %v1730_v1  ;;  %v1731_v0 = vld [vmem:[%s5097_s28 + $0xf0] sm:$0xff] }
 0x41c   : > { %v3486_v42 = vpop.f32.mrb[63].mxu1  ;;  %v1888_v19 = vadd.f32 %v5088_v44, %v1731_v0 }
 0x41d   : > { %v2017_v12 = vadd.f32 %v3484_v23, %v1856_v26  ;;  %v3487_v52 = vadd.f32 %v3486_v42, %v3485_v13  ;;  %3610 = vmatprep.mubr.bf16.mxu0 %v2257_v3  ;;  %v2203_v23 = vpop.permute.xlu1 %2202 }
 0x41f   : > { %v2020_v55 = vadd.f32 %v3487_v52, %v1859_v20  ;;  %v2237_v35 = vmul.f32 %v2168_v5, %v2017_v12  ;;  %v2198_v20 = vpop.permute.xlu0 %2197  ;;  %v1732_v12 = vld [vmem:[%s5097_s28 + $0xf8] sm:$0xff] }
 0x420   : > { %v1891_v4 = vadd.f32 %v5092_v41, %v1732_v12 }
 0x421   : > { %v2238_v51 = vmul.f32 %v2173_v57, %v2020_v55  ;;  %v3488_v40 = vpop.f32.mrb[64].mxu1 }
 0x422   : > { %v3489_v25 = vpop.f32.mrb[65].mxu1 }
 0x423   : > { %v3490_v9 = vadd.f32 %v3489_v25, %v3488_v40  ;;  %v3491_v30 = vpop.f32.mrb[66].mxu1  ;;  %v2258_v17 = vpack.c.bf16 %v2238_v51, %v2237_v35  ;;  %v2208_v50 = vpop.permute.xlu0 %2207 }
 0x424   : > { %v3492_v59 = vpop.f32.mrb[67].mxu1  ;;  %v2213_v25 = vpop.permute.xlu1 %2212 }
 0x425   : > { %v2025_v8 = vadd.f32 %v3490_v9, %v1864_v48  ;;  %v3493_v15 = vadd.f32 %v3492_v59, %v3491_v30  ;;  %3611 = vmatmul.mubr.bf16.gmra.mrb[68].mxu0 %v2258_v17  ;;  %v2488_v17 = vlaneseq }
 0x427   : > { %v2028_v62 = vadd.f32 %v3493_v15, %v1867_v32  ;;  %v2239_v27 = vmul.f32 %v2178_v49, %v2025_v8  ;;  %v5191_v59 = vand.u32 127, %v2488_v17 }
 0x429   : > { %v2240_v6 = vmul.f32 %v2183_v18, %v2028_v62  ;;  %v3494_v63 = vpop.f32.mrb[68].mxu1  ;;  %vm2490_vm1 = vcmp.lt.s32.totalorder %v5191_v59, 7 }
 0x42a   : > { %v3495_v10 = vpop.f32.mrb[69].mxu1 }
 0x42b   : > { %v3496_v31 = vadd.f32 %v3495_v10, %v3494_v63  ;;  %v3497_v33 = vpop.f32.mrb[70].mxu1  ;;  %v2259_v7 = vpack.c.bf16 %v2240_v6, %v2239_v27 }
 0x42c   : > { %v3498_v16 = vpop.f32.mrb[71].mxu1 }
 0x42d   : > { %v2033_v54 = vadd.f32 %v3496_v31, %v1872_v29  ;;  %v3499_v2 = vadd.f32 %v3498_v16, %v3497_v33  ;;  %3614 = vmatprep.mubr.bf16.mxu0 %v2259_v7 }
 0x42f   : > { %v2036_v38 = vadd.f32 %v3499_v2, %v1875_v37  ;;  %v2241_v61 = vmul.f32 %v2188_v39, %v2033_v54 }
 0x431   : > { %v2242_v53 = vmul.f32 %v2193_v58, %v2036_v38  ;;  %v3500_v28 = vpop.f32.mrb[72].mxu1 }
 0x432   : > { %v3501_v56 = vpop.f32.mrb[73].mxu1 }
 0x433   : > { %v3502_v46 = vadd.f32 %v3501_v56, %v3500_v28  ;;  %v3503_v24 = vpop.f32.mrb[74].mxu1  ;;  %v2260_v47 = vpack.c.bf16 %v2242_v53, %v2241_v61 }
 0x434   : > { %v3504_v43 = vpop.f32.mrb[75].mxu1 }
 0x435   : > { %v2041_v14 = vadd.f32 %v3502_v46, %v1880_v45  ;;  %v3505_v26 = vadd.f32 %v3504_v43, %v3503_v24  ;;  %3615 = vmatmul.mubr.bf16.gmra.mrb[72].mxu0 %v2260_v47 }
 0x437   : > { %v2044_v60 = vadd.f32 %v3505_v26, %v1883_v34  ;;  %v2243_v13 = vmul.f32 %v2198_v20, %v2041_v14 }
 0x439   : > { %v2244_v3 = vmul.f32 %v2203_v23, %v2044_v60  ;;  %v3506_v42 = vpop.f32.mrb[76].mxu1 }
 0x43a   : > { %v3507_v52 = vpop.f32.mrb[77].mxu1 }
 0x43b   : > { %v3508_v55 = vadd.f32 %v3507_v52, %v3506_v42  ;;  %v3509_v21 = vpop.f32.mrb[78].mxu1  ;;  %v2261_v5 = vpack.c.bf16 %v2244_v3, %v2243_v13 }
 0x43c   : > { %v3510_v57 = vpop.f32.mrb[79].mxu1 }
 0x43d   : > { %v2049_v35 = vadd.f32 %v3508_v55, %v1888_v19  ;;  %v3511_v51 = vadd.f32 %v3510_v57, %v3509_v21  ;;  %3618 = vmatprep.mubr.bf16.mxu0 %v2261_v5 }
 0x43f   : > { %v2052_v40 = vadd.f32 %v3511_v51, %v1891_v4  ;;  %v2245_v48 = vmul.f32 %v2208_v50, %v2049_v35 }
 0x441   : > { %v2246_v9 = vmul.f32 %v2213_v25, %v2052_v40 }
 0x443   : > { %v2262_v30 = vpack.c.bf16 %v2246_v9, %v2245_v48 }
 0x445   : > { %3619 = vmatmul.mubr.bf16.gmra.mrb[76].mxu0 %v2262_v30 }
 0x4a8   : > { %v3592_v44 = vpop.f32.mrb[48].mxu0 }
 0x4a9   : > { %v2361_v32 = vpop.f32.mrb[49].mxu0  ;;  %v5196_v41 = vsel %vm2490_vm1, %v3592_v44, -inf }
 0x4aa   : > { %2527 = vmax.xlane.f32.xlu0 %v5196_v41  ;;  %v3593_v8 = vpop.f32.mrb[50].mxu0  ;;  %v5206_v22 = vsel %vm2490_vm1, %v2361_v32, -inf }
 0x4ab   : > { %v2364_v15 = vpop.f32.mrb[51].mxu0  ;;  %v5211_v49 = vsel %vm2490_vm1, %v3593_v8, -inf }
 0x4ac   : > { %v5201_v62 = vsel %vm2490_vm1, %v2364_v15, -inf }
 0x4ad   : > { %2525 = vmax.xlane.f32.xlu1 %v5201_v62 }
 0x4ae   : > { %2523 = vmax.xlane.f32.xlu0 %v5206_v22 }
 0x4b2   : > { %2529 = vmax.xlane.f32.xlu0 %v5211_v49 }
 0x4b8   : > { %v3596_v18 = vpop.f32.mrb[52].mxu0 }
 0x4b9   : > { %v2377_v27 = vpop.f32.mrb[53].mxu0  ;;  %v5216_v6 = vsel %vm2490_vm1, %v3596_v18, -inf }
 0x4ba   : > { %2535 = vmax.xlane.f32.xlu1 %v5216_v6  ;;  %v3597_v63 = vpop.f32.mrb[54].mxu0  ;;  %v5226_v29 = vsel %vm2490_vm1, %v2377_v27, -inf }
 0x4bb   : > { %v2380_v11 = vpop.f32.mrb[55].mxu0  ;;  %v5221_v10 = vsel %vm2490_vm1, %v3597_v63, -inf }
 0x4bc   : > { %2537 = vmax.xlane.f32.xlu0 %v5221_v10  ;;  %v5231_v31 = vsel %vm2490_vm1, %v2380_v11, -inf }
 0x4be   : > { %2531 = vmax.xlane.f32.xlu1 %v5226_v29 }
 0x4c0   : > { %2533 = vmax.xlane.f32.xlu0 %v5231_v31 }
 0x4c8   : > { %v3600_v33 = vpop.f32.mrb[56].mxu0 }
 0x4c9   : > { %v2393_v7 = vpop.f32.mrb[57].mxu0  ;;  %v5236_v16 = vsel %vm2490_vm1, %v3600_v33, -inf }
 0x4ca   : > { %2543 = vmax.xlane.f32.xlu1 %v5236_v16  ;;  %v3601_v37 = vpop.f32.mrb[58].mxu0  ;;  %v5246_v38 = vsel %vm2490_vm1, %v2393_v7, -inf }
 0x4cb   : > { %v2396_v54 = vpop.f32.mrb[59].mxu0  ;;  %v5241_v2 = vsel %vm2490_vm1, %v3601_v37, -inf }
 0x4cc   : > { %2545 = vmax.xlane.f32.xlu0 %v5241_v2  ;;  %v5251_v36 = vsel %vm2490_vm1, %v2396_v54, -inf }
 0x4ce   : > { %2539 = vmax.xlane.f32.xlu1 %v5246_v38 }
 0x4d0   : > { %2541 = vmax.xlane.f32.xlu0 %v5251_v36 }
 0x4d8   : > { %v3604_v39 = vpop.f32.mrb[60].mxu0 }
 0x4d9   : > { %v2409_v58 = vpop.f32.mrb[61].mxu0  ;;  %v5256_v61 = vsel %vm2490_vm1, %v3604_v39, -inf }
 0x4da   : > { %2551 = vmax.xlane.f32.xlu1 %v5256_v61  ;;  %v3605_v53 = vpop.f32.mrb[62].mxu0  ;;  %v5266_v56 = vsel %vm2490_vm1, %v2409_v58, -inf }
 0x4db   : > { %v2412_v28 = vpop.f32.mrb[63].mxu0  ;;  %v5261_v1 = vsel %vm2490_vm1, %v3605_v53, -inf }
 0x4dc   : > { %2553 = vmax.xlane.f32.xlu0 %v5261_v1  ;;  %v5271_v45 = vsel %vm2490_vm1, %v2412_v28, -inf }
 0x4de   : > { %2547 = vmax.xlane.f32.xlu1 %v5266_v56 }
 0x4e0   : > { %2549 = vmax.xlane.f32.xlu0 %v5271_v45 }
 0x4e8   : > { %v3608_v46 = vpop.f32.mrb[64].mxu0 }
 0x4e9   : > { %v2425_v24 = vpop.f32.mrb[65].mxu0  ;;  %v5276_v47 = vsel %vm2490_vm1, %v3608_v46, -inf }
 0x4ea   : > { %2559 = vmax.xlane.f32.xlu1 %v5276_v47  ;;  %v3609_v43 = vpop.f32.mrb[66].mxu0  ;;  %v5286_v26 = vsel %vm2490_vm1, %v2425_v24, -inf }
 0x4eb   : > { %v2428_v34 = vpop.f32.mrb[67].mxu0  ;;  %v5281_v14 = vsel %vm2490_vm1, %v3609_v43, -inf }
 0x4ec   : > { %2561 = vmax.xlane.f32.xlu0 %v5281_v14  ;;  %v5291_v60 = vsel %vm2490_vm1, %v2428_v34, -inf }
 0x4ee   : > { %2555 = vmax.xlane.f32.xlu1 %v5286_v26 }
 0x4f0   : > { %2557 = vmax.xlane.f32.xlu0 %v5291_v60 }
 0x4f8   : > { %v3612_v0 = vpop.f32.mrb[68].mxu0 }
 0x4f9   : > { %v2441_v20 = vpop.f32.mrb[69].mxu0  ;;  %v5296_v23 = vsel %vm2490_vm1, %v3612_v0, -inf }
 0x4fa   : > { %2567 = vmax.xlane.f32.xlu1 %v5296_v23  ;;  %v3613_v13 = vpop.f32.mrb[70].mxu0  ;;  %v5306_v12 = vsel %vm2490_vm1, %v2441_v20, -inf }
 0x4fb   : > { %v2444_v3 = vpop.f32.mrb[71].mxu0  ;;  %v5301_v42 = vsel %vm2490_vm1, %v3613_v13, -inf }
 0x4fc   : > { %2569 = vmax.xlane.f32.xlu0 %v5301_v42  ;;  %v5311_v52 = vsel %vm2490_vm1, %v2444_v3, -inf }
 0x4fe   : > { %2563 = vmax.xlane.f32.xlu1 %v5306_v12 }
 0x500   : > { %2565 = vmax.xlane.f32.xlu0 %v5311_v52 }
 0x508   : > { %v3616_v19 = vpop.f32.mrb[72].mxu0 }
 0x509   : > { %v2457_v55 = vpop.f32.mrb[73].mxu0  ;;  %v5316_v21 = vsel %vm2490_vm1, %v3616_v19, -inf }
 0x50a   : > { %2575 = vmax.xlane.f32.xlu1 %v5316_v21  ;;  %v3617_v5 = vpop.f32.mrb[74].mxu0  ;;  %v5326_v35 = vsel %vm2490_vm1, %v2457_v55, -inf }
 0x50b   : > { %v2460_v57 = vpop.f32.mrb[75].mxu0  ;;  %v5321_v4 = vsel %vm2490_vm1, %v3617_v5, -inf }
 0x50c   : > { %2577 = vmax.xlane.f32.xlu0 %v5321_v4  ;;  %v5331_v51 = vsel %vm2490_vm1, %v2460_v57, -inf }
 0x50e   : > { %2571 = vmax.xlane.f32.xlu1 %v5326_v35 }
 0x510   : > { %2573 = vmax.xlane.f32.xlu0 %v5331_v51 }
 0x518   : > { %v3620_v40 = vpop.f32.mrb[76].mxu0 }
 0x519   : > { %v2473_v50 = vpop.f32.mrb[77].mxu0  ;;  %v5346_v17 = vsel %vm2490_vm1, %v3620_v40, -inf }
 0x51a   : > { %v3621_v25 = vpop.f32.mrb[78].mxu0  ;;  %v5336_v48 = vsel %vm2490_vm1, %v2473_v50, -inf }
 0x51b   : > { %2579 = vmax.xlane.f32.xlu1 %v5336_v48  ;;  %v2476_v9 = vpop.f32.mrb[79].mxu0  ;;  %v5351_v44 = vsel %vm2490_vm1, %v3621_v25, -inf }
 0x51c   : > { %v5341_v30 = vsel %vm2490_vm1, %v2476_v9, -inf }
 0x51d   : > { %2581 = vmax.xlane.f32.xlu0 %v5341_v30 }
 0x51f   : > { %2583 = vmax.xlane.f32.xlu1 %v5346_v17 }
 0x521   : > { %2585 = vmax.xlane.f32.xlu0 %v5351_v44 }
 0x537   : > { %v2528_v32 = vpop.xlane.xlu0 %2527 }
 0x538   : > { %v5355_v8 = vsub.f32 %v5196_v41, %v2528_v32 }
 0x53a   : > { %v2623_v15 = vmul.f32 1.442695, %v5355_v8  ;;  %v2526_v63 = vpop.xlane.xlu1 %2525 }
 0x53b   : > { %v2524_v18 = vpop.xlane.xlu0 %2523  ;;  %v5363_v59 = vsub.f32 %v5201_v62, %v2526_v63 }
 0x53c   : > { %3744 = vpow2.f32 %v2623_v15  ;;  %v5359_v27 = vsub.f32 %v5206_v22, %v2524_v18 }
 0x53d   : > { %v2621_v37 = vmul.f32 1.442695, %v5363_v59 }
 0x53e   : > { %v2619_v11 = vmul.f32 1.442695, %v5359_v27 }
 0x53f   : > { %v2530_v33 = vpop.xlane.xlu0 %2529 }
 0x540   : > { %3746 = vpow2.f32 %v2619_v11  ;;  %v5366_v7 = vsub.f32 %v5211_v49, %v2530_v33 }
 0x542   : > { %v2625_v41 = vmul.f32 1.442695, %v5366_v7 }
 0x544   : > { %3748 = vpow2.f32 %v2625_v41 }
 0x545   : > { %3750 = vpow2.f32 %v2621_v37 }
 0x546   : > { %v3745_v54 = vpop.eup %3744 }
 0x547   : > { %v2536_v39 = vpop.xlane.xlu1 %2535  ;;  %2687 = vadd.xlane.f32.xlu1 %v3745_v54 }
 0x548   : > { %v5371_v22 = vsub.f32 %v5216_v6, %v2536_v39 }
 0x549   : > { %v2538_v58 = vpop.xlane.xlu0 %2537 }
 0x54a   : > { %v3747_v53 = vpop.eup %3746  ;;  %v2631_v62 = vmul.f32 1.442695, %v5371_v22  ;;  %v5375_v28 = vsub.f32 %v5221_v10, %v2538_v58 }
 0x54b   : > { %v2532_v49 = vpop.xlane.xlu1 %2531  ;;  %2683 = vadd.xlane.f32.xlu1 %v3747_v53 }
 0x54c   : > { %3752 = vpow2.f32 %v2631_v62  ;;  %v2633_v46 = vmul.f32 1.442695, %v5375_v28  ;;  %v5379_v24 = vsub.f32 %v5226_v29, %v2532_v49 }
 0x54d   : > { %v2534_v43 = vpop.xlane.xlu0 %2533 }
 0x54e   : > { %v3749_v34 = vpop.eup %3748  ;;  %3754 = vpow2.f32 %v2633_v46  ;;  %v2627_v6 = vmul.f32 1.442695, %v5379_v24  ;;  %v5383_v0 = vsub.f32 %v5231_v31, %v2534_v43 }
 0x54f   : > { %2689 = vadd.xlane.f32.xlu0 %v3749_v34  ;;  %v3751_v20 = vpop.eup %3750 }
 0x550   : > { %3756 = vpow2.f32 %v2627_v6  ;;  %v2629_v10 = vmul.f32 1.442695, %v5383_v0 }
 0x552   : > { %3758 = vpow2.f32 %v2629_v10 }
 0x553   : > { %2685 = vadd.xlane.f32.xlu0 %v3751_v20 }
 0x556   : > { %v3753_v13 = vpop.eup %3752 }
 0x557   : > { %v2544_v3 = vpop.xlane.xlu1 %2543  ;;  %2695 = vadd.xlane.f32.xlu1 %v3753_v13 }
 0x558   : > { %v3755_v29 = vpop.eup %3754  ;;  %v5387_v19 = vsub.f32 %v5236_v16, %v2544_v3 }
 0x559   : > { %v2546_v55 = vpop.xlane.xlu0 %2545  ;;  %2697 = vadd.xlane.f32.xlu0 %v3755_v29 }
 0x55a   : > { %v3757_v5 = vpop.eup %3756  ;;  %v2639_v31 = vmul.f32 1.442695, %v5387_v19  ;;  %v5391_v57 = vsub.f32 %v5241_v2, %v2546_v55 }
 0x55b   : > { %v2540_v40 = vpop.xlane.xlu1 %2539  ;;  %2691 = vadd.xlane.f32.xlu1 %v3757_v5 }
 0x55c   : > { %v3759_v50 = vpop.eup %3758  ;;  %3760 = vpow2.f32 %v2639_v31  ;;  %v2641_v25 = vmul.f32 1.442695, %v5391_v57  ;;  %v5395_v9 = vsub.f32 %v5246_v38, %v2540_v40 }
 0x55d   : > { %v2542_v32 = vpop.xlane.xlu0 %2541  ;;  %2693 = vadd.xlane.f32.xlu0 %v3759_v50 }
 0x55e   : > { %3762 = vpow2.f32 %v2641_v25  ;;  %v2635_v16 = vmul.f32 1.442695, %v5395_v9  ;;  %v5399_v15 = vsub.f32 %v5251_v36, %v2542_v32 }
 0x560   : > { %3764 = vpow2.f32 %v2635_v16  ;;  %v2637_v2 = vmul.f32 1.442695, %v5399_v15 }
 0x562   : > { %3766 = vpow2.f32 %v2637_v2 }
 0x566   : > { %v3761_v18 = vpop.eup %3760 }
 0x567   : > { %v2552_v63 = vpop.xlane.xlu1 %2551  ;;  %2703 = vadd.xlane.f32.xlu1 %v3761_v18 }
 0x568   : > { %v3763_v11 = vpop.eup %3762  ;;  %v5403_v33 = vsub.f32 %v5256_v61, %v2552_v63 }
 0x569   : > { %v2554_v38 = vpop.xlane.xlu0 %2553  ;;  %2705 = vadd.xlane.f32.xlu0 %v3763_v11 }
 0x56a   : > { %v3765_v41 = vpop.eup %3764  ;;  %v2647_v37 = vmul.f32 1.442695, %v5403_v33  ;;  %v5407_v54 = vsub.f32 %v5261_v1, %v2554_v38 }
 0x56b   : > { %v2548_v36 = vpop.xlane.xlu1 %2547  ;;  %2699 = vadd.xlane.f32.xlu1 %v3765_v41 }
 0x56c   : > { %v3767_v39 = vpop.eup %3766  ;;  %3768 = vpow2.f32 %v2647_v37  ;;  %v2649_v58 = vmul.f32 1.442695, %v5407_v54  ;;  %v5411_v53 = vsub.f32 %v5266_v56, %v2548_v36 }
 0x56d   : > { %v2550_v62 = vpop.xlane.xlu0 %2549  ;;  %2701 = vadd.xlane.f32.xlu0 %v3767_v39 }
 0x56e   : > { %3770 = vpow2.f32 %v2649_v58  ;;  %v2643_v61 = vmul.f32 1.442695, %v5411_v53  ;;  %v5415_v49 = vsub.f32 %v5271_v45, %v2550_v62 }
 0x570   : > { %3772 = vpow2.f32 %v2643_v61  ;;  %v2645_v1 = vmul.f32 1.442695, %v5415_v49 }
 0x572   : > { %3774 = vpow2.f32 %v2645_v1 }
 0x576   : > { %v3769_v46 = vpop.eup %3768 }
 0x577   : > { %v2560_v43 = vpop.xlane.xlu1 %2559  ;;  %2711 = vadd.xlane.f32.xlu1 %v3769_v46 }
 0x578   : > { %v3771_v34 = vpop.eup %3770  ;;  %v5419_v6 = vsub.f32 %v5276_v47, %v2560_v43 }
 0x579   : > { %v2562_v56 = vpop.xlane.xlu0 %2561  ;;  %2713 = vadd.xlane.f32.xlu0 %v3771_v34 }
 0x57a   : > { %v3773_v10 = vpop.eup %3772  ;;  %v2655_v20 = vmul.f32 1.442695, %v5419_v6  ;;  %v5423_v13 = vsub.f32 %v5281_v14, %v2562_v56 }
 0x57b   : > { %v2556_v45 = vpop.xlane.xlu1 %2555  ;;  %2707 = vadd.xlane.f32.xlu1 %v3773_v10 }
 0x57c   : > { %v3775_v3 = vpop.eup %3774  ;;  %3776 = vpow2.f32 %v2655_v20  ;;  %v2657_v29 = vmul.f32 1.442695, %v5423_v13  ;;  %v5427_v55 = vsub.f32 %v5286_v26, %v2556_v45 }
 0x57d   : > { %v2558_v5 = vpop.xlane.xlu0 %2557  ;;  %2709 = vadd.xlane.f32.xlu0 %v3775_v3 }
 0x57e   : > { %3778 = vpow2.f32 %v2657_v29  ;;  %v2651_v47 = vmul.f32 1.442695, %v5427_v55  ;;  %v5431_v31 = vsub.f32 %v5291_v60, %v2558_v5 }
 0x580   : > { %3780 = vpow2.f32 %v2651_v47  ;;  %v2653_v14 = vmul.f32 1.442695, %v5431_v31 }
 0x582   : > { %3782 = vpow2.f32 %v2653_v14 }
 0x586   : > { %v3777_v40 = vpop.eup %3776 }
 0x587   : > { %v2568_v50 = vpop.xlane.xlu1 %2567  ;;  %2719 = vadd.xlane.f32.xlu1 %v3777_v40 }
 0x588   : > { %v3779_v25 = vpop.eup %3778  ;;  %v5435_v32 = vsub.f32 %v5296_v23, %v2568_v50 }
 0x589   : > { %v2570_v26 = vpop.xlane.xlu0 %2569  ;;  %2721 = vadd.xlane.f32.xlu0 %v3779_v25 }
 0x58a   : > { %v3781_v16 = vpop.eup %3780  ;;  %v2663_v2 = vmul.f32 1.442695, %v5435_v32  ;;  %v5439_v18 = vsub.f32 %v5301_v42, %v2570_v26 }
 0x58b   : > { %v2564_v60 = vpop.xlane.xlu1 %2563  ;;  %2715 = vadd.xlane.f32.xlu1 %v3781_v16 }
 0x58c   : > { %v3783_v63 = vpop.eup %3782  ;;  %3784 = vpow2.f32 %v2663_v2  ;;  %v2665_v11 = vmul.f32 1.442695, %v5439_v18  ;;  %v5443_v38 = vsub.f32 %v5306_v12, %v2564_v60 }
 0x58d   : > { %v2566_v41 = vpop.xlane.xlu0 %2565  ;;  %2717 = vadd.xlane.f32.xlu0 %v3783_v63 }
 0x58e   : > { %3786 = vpow2.f32 %v2665_v11  ;;  %v2659_v23 = vmul.f32 1.442695, %v5443_v38  ;;  %v5447_v37 = vsub.f32 %v5311_v52, %v2566_v41 }
 0x590   : > { %3788 = vpow2.f32 %v2659_v23  ;;  %v2661_v42 = vmul.f32 1.442695, %v5447_v37 }
 0x592   : > { %3790 = vpow2.f32 %v2661_v42 }
 0x596   : > { %v3785_v36 = vpop.eup %3784 }
 0x597   : > { %v2576_v39 = vpop.xlane.xlu1 %2575  ;;  %2727 = vadd.xlane.f32.xlu1 %v3785_v36 }
 0x598   : > { %v3787_v58 = vpop.eup %3786  ;;  %v5451_v62 = vsub.f32 %v5316_v21, %v2576_v39 }
 0x599   : > { %v2578_v12 = vpop.xlane.xlu0 %2577  ;;  %2729 = vadd.xlane.f32.xlu0 %v3787_v58 }
 0x59a   : > { %v3789_v61 = vpop.eup %3788  ;;  %v2671_v1 = vmul.f32 1.442695, %v5451_v62  ;;  %v5455_v46 = vsub.f32 %v5321_v4, %v2578_v12 }
 0x59b   : > { %v2572_v52 = vpop.xlane.xlu1 %2571  ;;  %2723 = vadd.xlane.f32.xlu1 %v3789_v61 }
 0x59c   : > { %v3791_v43 = vpop.eup %3790  ;;  %3792 = vpow2.f32 %v2671_v1  ;;  %v2673_v34 = vmul.f32 1.442695, %v5455_v46  ;;  %v5459_v56 = vsub.f32 %v5326_v35, %v2572_v52 }
 0x59d   : > { %v2574_v10 = vpop.xlane.xlu0 %2573  ;;  %2725 = vadd.xlane.f32.xlu0 %v3791_v43 }
 0x59e   : > { %3794 = vpow2.f32 %v2673_v34  ;;  %v2667_v21 = vmul.f32 1.442695, %v5459_v56  ;;  %v5463_v20 = vsub.f32 %v5331_v51, %v2574_v10 }
 0x5a0   : > { %3796 = vpow2.f32 %v2667_v21  ;;  %v2669_v4 = vmul.f32 1.442695, %v5463_v20 }
 0x5a2   : > { %3798 = vpow2.f32 %v2669_v4 }
 0x5a6   : > { %v3793_v45 = vpop.eup %3792 }
 0x5a7   : > { %2735 = vadd.xlane.f32.xlu1 %v3793_v45 }
 0x5a8   : > { %v3795_v3 = vpop.eup %3794  ;;  %v2580_v29 = vpop.xlane.xlu1 %2579 }
 0x5a9   : > { %v5467_v5 = vsub.f32 %v5336_v48, %v2580_v29  ;;  %2737 = vadd.xlane.f32.xlu0 %v3795_v3 }
 0x5aa   : > { %v3797_v35 = vpop.eup %3796  ;;  %v2582_v47 = vpop.xlane.xlu0 %2581 }
 0x5ab   : > { %v2675_v14 = vmul.f32 1.442695, %v5467_v5  ;;  %v5471_v40 = vsub.f32 %v5341_v30, %v2582_v47  ;;  %2731 = vadd.xlane.f32.xlu1 %v3797_v35 }
 0x5ac   : > { %v3799_v51 = vpop.eup %3798  ;;  %v2584_v50 = vpop.xlane.xlu1 %2583 }
 0x5ad   : > { %3800 = vpow2.f32 %v2675_v14  ;;  %v2677_v25 = vmul.f32 1.442695, %v5471_v40  ;;  %v5475_v26 = vsub.f32 %v5346_v17, %v2584_v50  ;;  %2733 = vadd.xlane.f32.xlu0 %v3799_v51 }
 0x5ae   : > { %v2586_v48 = vpop.xlane.xlu0 %2585 }
 0x5af   : > { %3802 = vpow2.f32 %v2677_v25  ;;  %v2679_v16 = vmul.f32 1.442695, %v5475_v26  ;;  %v5479_v2 = vsub.f32 %v5351_v44, %v2586_v48 }
 0x5b1   : > { %3804 = vpow2.f32 %v2679_v16  ;;  %v2681_v30 = vmul.f32 1.442695, %v5479_v2 }
 0x5b3   : > { %3806 = vpow2.f32 %v2681_v30 }
 0x5b7   : > { %v3801_v60 = vpop.eup %3800 }
 0x5b8   : > { %2739 = vadd.xlane.f32.xlu1 %v3801_v60 }
 0x5b9   : > { %v3803_v63 = vpop.eup %3802 }
 0x5ba   : > { %2741 = vadd.xlane.f32.xlu0 %v3803_v63 }
 0x5bb   : > { %v3805_v11 = vpop.eup %3804 }
 0x5bc   : > { %2743 = vadd.xlane.f32.xlu1 %v3805_v11 }
 0x5bd   : > { %v3807_v17 = vpop.eup %3806 }
 0x5be   : > { %2745 = vadd.xlane.f32.xlu0 %v3807_v17 }
 0x5d4   : > { %v2688_v41 = vpop.xlane.xlu1 %2687 }
 0x5d5   : > { %3808 = vlog2.f32 %v2688_v41 }
 0x5d8   : > { %v2684_v23 = vpop.xlane.xlu1 %2683 }
 0x5d9   : > { %3810 = vlog2.f32 %v2684_v23 }
 0x5dc   : > { %v2690_v42 = vpop.xlane.xlu0 %2689 }
 0x5dd   : > { %3812 = vlog2.f32 %v2690_v42 }
 0x5df   : > { %v3809_v44 = vpop.eup %3808 }
 0x5e0   : > { %v2752_v36 = vmul.f32 0.6931472, %v3809_v44  ;;  %v2686_v39 = vpop.xlane.xlu0 %2685 }
 0x5e1   : > { %3814 = vlog2.f32 %v2686_v39 }
 0x5e2   : > { %v2813_v58 = vsub.f32 %v5355_v8, %v2752_v36 }
 0x5e3   : > { %v3811_v12 = vpop.eup %3810 }
 0x5e4   : > { %2845 = vst [vmem:[%s4128_s7 + $0x10] sm:$0xff] %v2813_v58  ;;  %v2748_v61 = vmul.f32 0.6931472, %v3811_v12  ;;  %v2696_v1 = vpop.xlane.xlu1 %2695 }
 0x5e5   : > { %3816 = vlog2.f32 %v2696_v1 }
 0x5e6   : > { %v2811_v52 = vsub.f32 %v5359_v27, %v2748_v61  ;;  %v2698_v43 = vpop.xlane.xlu0 %2697 }
 0x5e7   : > { %v3813_v34 = vpop.eup %3812  ;;  %3818 = vlog2.f32 %v2698_v43 }
 0x5e8   : > { %2843 = vst [vmem:[%s4128_s7] sm:$0xff] %v2811_v52  ;;  %v2754_v10 = vmul.f32 0.6931472, %v3813_v34  ;;  %v2692_v21 = vpop.xlane.xlu1 %2691 }
 0x5e9   : > { %3820 = vlog2.f32 %v2692_v21 }
 0x5ea   : > { %v2814_v4 = vsub.f32 %v5366_v7, %v2754_v10  ;;  %v2694_v8 = vpop.xlane.xlu0 %2693 }
 0x5eb   : > { %v3815_v45 = vpop.eup %3814  ;;  %3822 = vlog2.f32 %v2694_v8 }
 0x5ec   : > { %2846 = vst [vmem:[%s4128_s7 + $0x18] sm:$0xff] %v2814_v4  ;;  %v2750_v3 = vmul.f32 0.6931472, %v3815_v45 }
 0x5ee   : > { %v2812_v29 = vsub.f32 %v5363_v59, %v2750_v3 }
 0x5ef   : > { %v3817_v27 = vpop.eup %3816 }
 0x5f0   : > { %2844 = vst [vmem:[%s4128_s7 + $0x8] sm:$0xff] %v2812_v29  ;;  %v2760_v35 = vmul.f32 0.6931472, %v3817_v27 }
 0x5f1   : > { %v3819_v47 = vpop.eup %3818 }
 0x5f2   : > { %v2817_v14 = vsub.f32 %v5371_v22, %v2760_v35  ;;  %v2762_v51 = vmul.f32 0.6931472, %v3819_v47 }
 0x5f3   : > { %v3821_v50 = vpop.eup %3820 }
 0x5f4   : > { %2849 = vst [vmem:[%s4128_s7 + $0x30] sm:$0xff] %v2817_v14  ;;  %v2818_v7 = vsub.f32 %v5375_v28, %v2762_v51  ;;  %v2756_v25 = vmul.f32 0.6931472, %v3821_v50  ;;  %v2704_v48 = vpop.xlane.xlu1 %2703 }
 0x5f5   : > { %v3823_v16 = vpop.eup %3822  ;;  %3824 = vlog2.f32 %v2704_v48 }
 0x5f6   : > { %2850 = vst [vmem:[%s4128_s7 + $0x38] sm:$0xff] %v2818_v7  ;;  %v2815_v59 = vsub.f32 %v5379_v24, %v2756_v25  ;;  %v2758_v30 = vmul.f32 0.6931472, %v3823_v16  ;;  %v2706_v60 = vpop.xlane.xlu0 %2705 }
 0x5f7   : > { %3826 = vlog2.f32 %v2706_v60 }
 0x5f8   : > { %2847 = vst [vmem:[%s4128_s7 + $0x20] sm:$0xff] %v2815_v59  ;;  %v2816_v22 = vsub.f32 %v5383_v0, %v2758_v30  ;;  %v2700_v63 = vpop.xlane.xlu1 %2699 }
 0x5f9   : > { %3828 = vlog2.f32 %v2700_v63 }
 0x5fa   : > { %2848 = vst [vmem:[%s4128_s7 + $0x28] sm:$0xff] %v2816_v22  ;;  %v2702_v11 = vpop.xlane.xlu0 %2701 }
 0x5fb   : > { %3830 = vlog2.f32 %v2702_v11 }
 0x5ff   : > { %v3825_v28 = vpop.eup %3824 }
 0x600   : > { %v2768_v17 = vmul.f32 0.6931472, %v3825_v28 }
 0x601   : > { %v3827_v41 = vpop.eup %3826 }
 0x602   : > { %v2821_v23 = vsub.f32 %v5387_v19, %v2768_v17  ;;  %v2770_v24 = vmul.f32 0.6931472, %v3827_v41 }
 0x603   : > { %v3829_v42 = vpop.eup %3828 }
 0x604   : > { %2853 = vst [vmem:[%s4128_s7 + $0x50] sm:$0xff] %v2821_v23  ;;  %v2822_v44 = vsub.f32 %v5391_v57, %v2770_v24  ;;  %v2764_v36 = vmul.f32 0.6931472, %v3829_v42  ;;  %v2712_v0 = vpop.xlane.xlu1 %2711 }
 0x605   : > { %v3831_v39 = vpop.eup %3830  ;;  %3832 = vlog2.f32 %v2712_v0 }
 0x606   : > { %2854 = vst [vmem:[%s4128_s7 + $0x58] sm:$0xff] %v2822_v44  ;;  %v2819_v58 = vsub.f32 %v5395_v9, %v2764_v36  ;;  %v2766_v12 = vmul.f32 0.6931472, %v3831_v39  ;;  %v2714_v61 = vpop.xlane.xlu0 %2713 }
 0x607   : > { %3834 = vlog2.f32 %v2714_v61 }
 0x608   : > { %2851 = vst [vmem:[%s4128_s7 + $0x40] sm:$0xff] %v2819_v58  ;;  %v2820_v19 = vsub.f32 %v5399_v15, %v2766_v12  ;;  %v2708_v1 = vpop.xlane.xlu1 %2707 }
 0x609   : > { %3836 = vlog2.f32 %v2708_v1 }
 0x60a   : > { %2852 = vst [vmem:[%s4128_s7 + $0x48] sm:$0xff] %v2820_v19  ;;  %v2710_v52 = vpop.xlane.xlu0 %2709 }
 0x60b   : > { %3838 = vlog2.f32 %v2710_v52 }
 0x60f   : > { %v3833_v57 = vpop.eup %3832 }
 0x610   : > { %v2776_v43 = vmul.f32 0.6931472, %v3833_v57 }
 0x611   : > { %v3835_v34 = vpop.eup %3834 }
 0x612   : > { %v2825_v10 = vsub.f32 %v5403_v33, %v2776_v43  ;;  %v2778_v9 = vmul.f32 0.6931472, %v3835_v34 }
 0x613   : > { %v3837_v21 = vpop.eup %3836 }
 0x614   : > { %2857 = vst [vmem:[%s4128_s7 + $0x70] sm:$0xff] %v2825_v10  ;;  %v2826_v4 = vsub.f32 %v5407_v54, %v2778_v9  ;;  %v2772_v8 = vmul.f32 0.6931472, %v3837_v21  ;;  %v2720_v15 = vpop.xlane.xlu1 %2719 }
 0x615   : > { %v3839_v45 = vpop.eup %3838  ;;  %3840 = vlog2.f32 %v2720_v15 }
 0x616   : > { %2858 = vst [vmem:[%s4128_s7 + $0x78] sm:$0xff] %v2826_v4  ;;  %v2823_v3 = vsub.f32 %v5411_v53, %v2772_v8  ;;  %v2774_v29 = vmul.f32 0.6931472, %v3839_v45  ;;  %v2722_v27 = vpop.xlane.xlu0 %2721 }
 0x617   : > { %3842 = vlog2.f32 %v2722_v27 }
 0x618   : > { %2855 = vst [vmem:[%s4128_s7 + $0x60] sm:$0xff] %v2823_v3  ;;  %v2824_v33 = vsub.f32 %v5415_v49, %v2774_v29  ;;  %v2716_v35 = vpop.xlane.xlu1 %2715 }
 0x619   : > { %3844 = vlog2.f32 %v2716_v35 }
 0x61a   : > { %2856 = vst [vmem:[%s4128_s7 + $0x68] sm:$0xff] %v2824_v33  ;;  %v2718_v47 = vpop.xlane.xlu0 %2717 }
 0x61b   : > { %3846 = vlog2.f32 %v2718_v47 }
 0x61f   : > { %v3841_v54 = vpop.eup %3840 }
 0x620   : > { %v2784_v14 = vmul.f32 0.6931472, %v3841_v54 }
 0x621   : > { %v3843_v51 = vpop.eup %3842 }
 0x622   : > { %v2829_v50 = vsub.f32 %v5419_v6, %v2784_v14  ;;  %v2786_v53 = vmul.f32 0.6931472, %v3843_v51 }
 0x623   : > { %v3845_v7 = vpop.eup %3844 }
 0x624   : > { %2861 = vst [vmem:[%s4128_s7 + $0x90] sm:$0xff] %v2829_v50  ;;  %v2830_v25 = vsub.f32 %v5423_v13, %v2786_v53  ;;  %v2780_v48 = vmul.f32 0.6931472, %v3845_v7  ;;  %v2728_v49 = vpop.xlane.xlu1 %2727 }
 0x625   : > { %v3847_v16 = vpop.eup %3846  ;;  %3848 = vlog2.f32 %v2728_v49 }
 0x626   : > { %2862 = vst [vmem:[%s4128_s7 + $0x98] sm:$0xff] %v2830_v25  ;;  %v2827_v59 = vsub.f32 %v5427_v55, %v2780_v48  ;;  %v2782_v30 = vmul.f32 0.6931472, %v3847_v16  ;;  %v2730_v60 = vpop.xlane.xlu0 %2729 }
 0x627   : > { %3850 = vlog2.f32 %v2730_v60 }
 0x628   : > { %2859 = vst [vmem:[%s4128_s7 + $0x80] sm:$0xff] %v2827_v59  ;;  %v2828_v6 = vsub.f32 %v5431_v31, %v2782_v30  ;;  %v2724_v22 = vpop.xlane.xlu1 %2723 }
 0x629   : > { %3852 = vlog2.f32 %v2724_v22 }
 0x62a   : > { %2860 = vst [vmem:[%s4128_s7 + $0x88] sm:$0xff] %v2828_v6  ;;  %v2726_v63 = vpop.xlane.xlu0 %2725 }
 0x62b   : > { %3854 = vlog2.f32 %v2726_v63 }
 0x62f   : > { %v3849_v13 = vpop.eup %3848 }
 0x630   : > { %v2792_v11 = vmul.f32 0.6931472, %v3849_v13 }
 0x631   : > { %v3851_v28 = vpop.eup %3850 }
 0x632   : > { %v2833_v17 = vsub.f32 %v5435_v32, %v2792_v11  ;;  %v2794_v55 = vmul.f32 0.6931472, %v3851_v28 }
 0x633   : > { %v3853_v41 = vpop.eup %3852 }
 0x634   : > { %2865 = vst [vmem:[%s4128_s7 + $0xb0] sm:$0xff] %v2833_v17  ;;  %v2834_v23 = vsub.f32 %v5439_v18, %v2794_v55  ;;  %v2788_v24 = vmul.f32 0.6931472, %v3853_v41  ;;  %v2736_v31 = vpop.xlane.xlu1 %2735 }
 0x635   : > { %v3855_v42 = vpop.eup %3854  ;;  %3856 = vlog2.f32 %v2736_v31 }
 0x636   : > { %2866 = vst [vmem:[%s4128_s7 + $0xb8] sm:$0xff] %v2834_v23  ;;  %v2831_v44 = vsub.f32 %v5443_v38, %v2788_v24  ;;  %v2790_v36 = vmul.f32 0.6931472, %v3855_v42  ;;  %v2738_v0 = vpop.xlane.xlu0 %2737 }
 0x637   : > { %3858 = vlog2.f32 %v2738_v0 }
 0x638   : > { %2863 = vst [vmem:[%s4128_s7 + $0xa0] sm:$0xff] %v2831_v44  ;;  %v2832_v32 = vsub.f32 %v5447_v37, %v2790_v36  ;;  %v2732_v39 = vpop.xlane.xlu1 %2731 }
 0x639   : > { %3860 = vlog2.f32 %v2732_v39 }
 0x63a   : > { %2864 = vst [vmem:[%s4128_s7 + $0xa8] sm:$0xff] %v2832_v32  ;;  %v2734_v58 = vpop.xlane.xlu0 %2733 }
 0x63b   : > { %3862 = vlog2.f32 %v2734_v58 }
 0x63f   : > { %v3857_v18 = vpop.eup %3856 }
 0x640   : > { %v2800_v12 = vmul.f32 0.6931472, %v3857_v18 }
 0x641   : > { %v3859_v61 = vpop.eup %3858 }
 0x642   : > { %v2837_v19 = vsub.f32 %v5451_v62, %v2800_v12  ;;  %v2802_v38 = vmul.f32 0.6931472, %v3859_v61 }
 0x643   : > { %v3861_v1 = vpop.eup %3860 }
 0x644   : > { %2869 = vst [vmem:[%s4128_s7 + $0xd0] sm:$0xff] %v2837_v19  ;;  %v2838_v52 = vsub.f32 %v5455_v46, %v2802_v38  ;;  %v2796_v57 = vmul.f32 0.6931472, %v3861_v1 }
 0x645   : > { %v3863_v37 = vpop.eup %3862  ;;  %v2740_v43 = vpop.xlane.xlu1 %2739 }
 0x646   : > { %2870 = vst [vmem:[%s4128_s7 + $0xd8] sm:$0xff] %v2838_v52  ;;  %v2835_v34 = vsub.f32 %v5459_v56, %v2796_v57  ;;  %v2798_v10 = vmul.f32 0.6931472, %v3863_v37  ;;  %3864 = vlog2.f32 %v2740_v43 }
 0x647   : > { %v2742_v9 = vpop.xlane.xlu0 %2741 }
 0x648   : > { %2867 = vst [vmem:[%s4128_s7 + $0xc0] sm:$0xff] %v2835_v34  ;;  %v2836_v21 = vsub.f32 %v5463_v20, %v2798_v10  ;;  %3866 = vlog2.f32 %v2742_v9 }
 0x649   : > { %v2744_v62 = vpop.xlane.xlu1 %2743 }
 0x64a   : > { %2868 = vst [vmem:[%s4128_s7 + $0xc8] sm:$0xff] %v2836_v21  ;;  %3868 = vlog2.f32 %v2744_v62 }
 0x64b   : > { %v2746_v46 = vpop.xlane.xlu0 %2745 }
 0x64c   : > { %3870 = vlog2.f32 %v2746_v46 }
 0x650   : > { %v3865_v4 = vpop.eup %3864 }
 0x651   : > { %v2804_v8 = vmul.f32 0.6931472, %v3865_v4 }
 0x652   : > { %v3867_v15 = vpop.eup %3866 }
 0x653   : > { %v2839_v56 = vsub.f32 %v5467_v5, %v2804_v8  ;;  %v2806_v45 = vmul.f32 0.6931472, %v3867_v15 }
 0x654   : > { %v3869_v3 = vpop.eup %3868 }
 0x655   : > { %2871 = vst [vmem:[%s4128_s7 + $0xe0] sm:$0xff] %v2839_v56  ;;  %v2840_v29 = vsub.f32 %v5471_v40, %v2806_v45  ;;  %v2808_v20 = vmul.f32 0.6931472, %v3869_v3 }
 0x656   : > { %v3871_v27 = vpop.eup %3870 }
 0x657   : > { %2872 = vst [vmem:[%s4128_s7 + $0xe8] sm:$0xff] %v2840_v29  ;;  %v2841_v33 = vsub.f32 %v5475_v26, %v2808_v20  ;;  %v2810_v35 = vmul.f32 0.6931472, %v3871_v27 }
 0x659   : > { %2873 = vst [vmem:[%s4128_s7 + $0xf0] sm:$0xff] %v2841_v33  ;;  %v2842_v47 = vsub.f32 %v5479_v2, %v2810_v35 }
 0x65b   : > { %2874 = vst [vmem:[%s4128_s7 + $0xf8] sm:$0xff] %v2842_v47 }
 0x65c PF: > { %s16_s25 = sadd.s32 1, %s3910_s25   ;;  %s5895_s21 = smov %s3902_s23 }
 0x65d   : > { %p13_p10 = scmp.ge.s32.totalorder %s16_s25, 6   ;;  %s5896_s22 = smov %s3906_s24 }
 0x65e   : > { %s5897_s23 = smov %s5900_s26  ;;  %s5898_s24 = smov %s5904_s27 }
 0x65f   :  { %15 = sbr.rel (!%p13_p10) target bundleno = 3 (0x3), region = 89 }

</bundles_post_ra>
